<compile_context>
chip_gen: v6e
topology: v6e:2x2x1
jax: 0.10.0
libtpu: 0.0.40
codegen_flags: <defaults>
</compile_context>

<pallas_src>
import jax
import jax.numpy as jnp
import numpy as np
from jax.experimental import pallas as pl
from jax.experimental.pallas import tpu as pltpu

_LPAD = 8  # left zero-pad columns in the conv scratch (sublane-aligned interior store)
_TAPS = tuple((dy, dx) for dy in range(3) for dx in range(3))


def _round_up(x, m):
    return (x + m - 1) // m * m


def _scratch_width(Wp):
    # Data columns live at [_LPAD, _LPAD + Wp); at least one zero column on the
    # right; total width a multiple of 8 sublanes.
    return _LPAD + _round_up(Wp + 1, 8)


def _pick_vmem_limit():
    """~75% of physical VMEM, clamped to [32, 100] MiB (v7x->48, v5e/v6e->96)."""
    cap = 64 * 1024 * 1024
    try:
        cap = int(getattr(pltpu.get_tpu_info(), "vmem_capacity_bytes", cap))
    except Exception:
        pass
    return max(32 * 1024 * 1024, min(cap * 3 // 4, 100 * 1024 * 1024))


def _zero_pad_border(pad_ref, Hp, Wp):
    """Zero the halo of a (Hp+2, W_scr, C) conv scratch with aligned slab stores.

    Four regions: top row, bottom row, 8-column left slab, >=8-column right
    slab — all full-width / sublane-aligned writes (no single-column masked
    vst).  Interior (rows 1..Hp, cols _LPAD.._LPAD+Wp-1) is fully overwritten
    by the caller every step.
    """
    Hs, Ws, C = pad_ref.shape
    dt = pad_ref.dtype
    pad_ref[0:1, :, :] = jnp.zeros((1, Ws, C), dt)
    pad_ref[Hs - 1:Hs, :, :] = jnp.zeros((1, Ws, C), dt)
    pad_ref[:, 0:_LPAD, :] = jnp.zeros((Hs, _LPAD, C), dt)
    pad_ref[:, _LPAD + Wp:Ws, :] = jnp.zeros((Hs, Ws - _LPAD - Wp, C), dt)


def _conv3x3_lrelu(pad_ref, w_ref, b_ref, Hp, Wp):
    """3x3 conv over a zero-haloed bf16 scratch + bias + LeakyReLU(0.2).

    Nine accumulated (Hp*Wp, C) x (C, Cout) MXU matmuls into one f32
    accumulator (no im2col concat / 9x slab).  Each tap window is only an H
    (leading-dim) / W (sublane) offset of the scratch — no lane movement.
    Returns f32 (Hp*Wp, Cout).
    """
    C = pad_ref.shape[-1]
    acc = None
    for t, (dy, dx) in enumerate(_TAPS):
        col0 = _LPAD - 1 + dx
        win = pad_ref[dy:dy + Hp, col0:col0 + Wp, :]            # (Hp, Wp, C) bf16
        part = jnp.dot(win.reshape(Hp * Wp, C), w_ref[t],       # (C, Cout) bf16
                       preferred_element_type=jnp.float32)      # f32 MXU accumulate
        acc = part if acc is None else acc + part
    y = acc + b_ref[...]                                        # (1, Cout) broadcast, f32
    return jnp.where(y >= 0.0, y, 0.2 * y)                      # LeakyReLU(0.2), f32 VPU


def down_kernel(x_ref, w1_ref, b1_ref, w2_ref, b2_ref, o_ref, pad1_ref, pad2_ref):
    # x_ref : (H, Wp, 2*Cin) f32  -- one image, W-pool taps packed on the lane dim
    # w1_ref: (9, Cin,  Cout) bf16   b1_ref: (1, Cout) f32
    # w2_ref: (9, Cout, Cout) bf16   b2_ref: (1, Cout) f32
    # o_ref : (Hp, Wp, Cout)
    # pad1_ref: (Hp+2, W_scr, Cin)  bf16 scratch (zero halo, data at cols LPAD..LPAD+Wp-1)
    # pad2_ref: (Hp+2, W_scr, Cout) bf16 scratch
    H, Wp, C2 = x_ref.shape
    Cin = C2 // 2
    Hp = H // 2
    Cout = o_ref.shape[-1]

    # ---- AvgPool2d(2) ---- (f32 elementwise; leading-dim split + two lane slices)
    x = x_ref[...].astype(jnp.float32)                        # (H, Wp, 2*Cin)
    xr = x.reshape(Hp, 2, Wp, C2)                             # leading-dim split only
    hsum = xr[:, 0] + xr[:, 1]                                # (Hp, Wp, 2*Cin)
    pooled = 0.25 * (hsum[:, :, :Cin] + hsum[:, :, Cin:])     # (Hp, Wp, Cin) f32

    # ---- conv1 + LeakyReLU ----
    _zero_pad_border(pad1_ref, Hp, Wp)
    pad1_ref[1:Hp + 1, _LPAD:_LPAD + Wp, :] = pooled.astype(pad1_ref.dtype)  # cast once, aligned store
    h = _conv3x3_lrelu(pad1_ref, w1_ref, b1_ref, Hp, Wp)      # (Hp*Wp, Cout) f32

    # ---- conv2 + LeakyReLU ----
    _zero_pad_border(pad2_ref, Hp, Wp)
    pad2_ref[1:Hp + 1, _LPAD:_LPAD + Wp, :] = h.reshape(Hp, Wp, Cout).astype(pad2_ref.dtype)
    y = _conv3x3_lrelu(pad2_ref, w2_ref, b2_ref, Hp, Wp)      # (Hp*Wp, Cout) f32

    o_ref[...] = y.reshape(Hp, Wp, Cout).astype(o_ref.dtype)


def down_pallas_nhwc(x_nhwc, w1, b1, w2, b2):
    """x_nhwc: (N, H, W, Cin) NHWC; returns (N, H//2, W//2, Cout) NHWC."""
    N, H, W, Cin = x_nhwc.shape
    Cout = w1.shape[0]
    Hp, Wp = H // 2, W // 2
    # Match PyTorch AvgPool2d(2): an odd trailing row/column is dropped.
    x_nhwc = x_nhwc[:, :2 * Hp, :2 * Wp, :]
    # Free reshape: pack the two W-pool taps onto the lane dim (no extra HBM pass).
    x_packed = x_nhwc.reshape(N, 2 * Hp, Wp, 2 * Cin)

    # PyTorch OIHW -> (kh, kw, cin, cout) -> (9, Cin, Cout): one (C, Cout) bf16
    # matrix per tap (tap index t = kh*3 + kw), indexed by the leading dim in-kernel.
    w1_k = jnp.transpose(w1, (2, 3, 1, 0)).reshape(9, Cin, Cout).astype(jnp.bfloat16)
    w2_k = jnp.transpose(w2, (2, 3, 1, 0)).reshape(9, Cout, Cout).astype(jnp.bfloat16)
    b1_k = b1.reshape(1, Cout).astype(jnp.float32)
    b2_k = b2.reshape(1, Cout).astype(jnp.float32)

    W_scr = _scratch_width(Wp)

    return pl.pallas_call(
        down_kernel,
        out_shape=jax.ShapeDtypeStruct((N, Hp, Wp, Cout), x_nhwc.dtype),
        grid=(N,),
        in_specs=[
            # one image per grid step (batch dim squeezed out of the kernel view)
            pl.BlockSpec((None, 2 * Hp, Wp, 2 * Cin), lambda n: (n, 0, 0, 0)),
            # weights / biases: constant index_map -> DMA'd once, resident in VMEM
            pl.BlockSpec((9, Cin, Cout), lambda n: (0, 0, 0)),
            pl.BlockSpec((1, Cout), lambda n: (0, 0)),
            pl.BlockSpec((9, Cout, Cout), lambda n: (0, 0, 0)),
            pl.BlockSpec((1, Cout), lambda n: (0, 0)),
        ],
        out_specs=pl.BlockSpec((None, Hp, Wp, Cout), lambda n: (n, 0, 0, 0)),
        scratch_shapes=[
            pltpu.VMEM((Hp + 2, W_scr, Cin), jnp.bfloat16),   # padded pooled activations
            pltpu.VMEM((Hp + 2, W_scr, Cout), jnp.bfloat16),  # padded conv1 activations
        ],
        compiler_params=pltpu.CompilerParams(
            # batch axis shards across the 2 TensorCores on v7x; pipelined otherwise
            dimension_semantics=("parallel",),
            vmem_limit_bytes=_pick_vmem_limit(),
        ),
    )(x_packed, w1_k, b1_k, w2_k, b2_k)


def down_pallas(x, w1, b1, w2, b2):
    """x: (N, Cin, H, W) NCHW (PyTorch layout); returns (N, Cout, H//2, W//2) NCHW.

    Prefer down_pallas_nhwc in a full network: each transpose below is a full
    HBM read+write of the activation tensor.
    """
    x_nhwc = jnp.transpose(x, (0, 2, 3, 1))
    out_nhwc = down_pallas_nhwc(x_nhwc, w1, b1, w2, b2)
    return jnp.transpose(out_nhwc, (0, 3, 1, 2))


def down_reference(x, w1, b1, w2, b2):
    """Pure-JAX f32 reference mirroring the PyTorch module (NCHW)."""
    xp = jax.lax.reduce_window(x, 0.0, jax.lax.add, (1, 1, 2, 2), (1, 1, 2, 2), "VALID") / 4.0
    dn = ("NCHW", "OIHW", "NCHW")
    y = jax.lax.conv_general_dilated(xp, w1, (1, 1), ((1, 1), (1, 1)), dimension_numbers=dn)
    y = y + b1[None, :, None, None]
    y = jnp.where(y >= 0, y, 0.2 * y)
    y = jax.lax.conv_general_dilated(y, w2, (1, 1), ((1, 1), (1, 1)), dimension_numbers=dn)
    y = y + b2[None, :, None, None]
    y = jnp.where(y >= 0, y, 0.2 * y)
    return y


if __name__ == "__main__":
    N, Cin, H, W = 2, 4, 16, 16
    Cout = 8

    key = jax.random.PRNGKey(0)
    kx, kw1, kb1, kw2, kb2 = jax.random.split(key, 5)

    x = jax.random.normal(kx, (N, Cin, H, W), jnp.float32)
    # deterministic synthetic params (shapes match nn.Conv2d(in, out, 3, padding=1))
    w1 = jax.random.normal(kw1, (Cout, Cin, 3, 3), jnp.float32) * 0.1
    b1 = jax.random.normal(kb1, (Cout,), jnp.float32) * 0.1
    w2 = jax.random.normal(kw2, (Cout, Cout, 3, 3), jnp.float32) * 0.1
    b2 = jax.random.normal(kb2, (Cout,), jnp.float32) * 0.1

    out = jax.block_until_ready(down_pallas(x, w1, b1, w2, b2))
    ref = jax.block_until_ready(down_reference(x, w1, b1, w2, b2))

    assert out.shape == (N, Cout, H // 2, W // 2), out.shape
    # bf16 MXU operands / bf16 inter-conv activations (f32 accumulation) ->
    # loosened tolerance vs the f32 reference.
    np.testing.assert_allclose(np.asarray(out), np.asarray(ref), rtol=2e-2, atol=2e-2)

    print("KERNEL_OK")
</pallas_src>

<mosaic_0001>
module attributes {stable_mosaic.version = 11 : i64} {
  func.func @down_kernel(%arg0: i32, %arg1: memref<1x16x8x8xf32, #tpu.memory_space<vmem>>, %arg2: memref<9x4x8xbf16, #tpu.memory_space<vmem>>, %arg3: memref<1x8xf32, #tpu.memory_space<vmem>>, %arg4: memref<9x8x8xbf16, #tpu.memory_space<vmem>>, %arg5: memref<1x8xf32, #tpu.memory_space<vmem>>, %arg6: memref<1x8x8x8xf32, #tpu.memory_space<vmem>>, %arg7: memref<10x24x4xbf16, #tpu.memory_space<vmem>>, %arg8: memref<10x24x8xbf16, #tpu.memory_space<vmem>>) attributes {dimension_semantics = [#tpu.dimension_semantics<parallel>], iteration_bounds = array<i64: 2>, scalar_prefetch = 0 : i64, scratch_operands = 2 : i64, tpu.core_type = #tpu.core_type<tc>, window_params = [{transform_indices = @transform_0, window_bounds = array<i64: 1, 16, 8, 8>}, {pipeline_mode = #tpu.pipeline_mode<synchronous>, transform_indices = @transform_1, window_bounds = array<i64: 9, 4, 8>}, {pipeline_mode = #tpu.pipeline_mode<synchronous>, transform_indices = @transform_2, window_bounds = array<i64: 1, 8>}, {pipeline_mode = #tpu.pipeline_mode<synchronous>, transform_indices = @transform_3, window_bounds = array<i64: 9, 8, 8>}, {pipeline_mode = #tpu.pipeline_mode<synchronous>, transform_indices = @transform_4, window_bounds = array<i64: 1, 8>}, {transform_indices = @transform_5, window_bounds = array<i64: 1, 8, 8, 8>}]} {
    %c0 = arith.constant 0 : index
    %c0_0 = arith.constant 0 : index
    %c0_1 = arith.constant 0 : index
    %c0_2 = arith.constant 0 : index
    %0 = vector.load %arg1[%c0, %c0_0, %c0_1, %c0_2] : memref<1x16x8x8xf32, #tpu.memory_space<vmem>>, vector<1x16x8x8xf32>
    %1 = vector.shape_cast %0 : vector<1x16x8x8xf32> to vector<16x8x8xf32>
    %2 = vector.shape_cast %1 : vector<16x8x8xf32> to vector<8x2x8x8xf32>
    %3 = vector.extract_strided_slice %2 {offsets = [0, 0, 0, 0], sizes = [8, 1, 8, 8], strides = [1, 1, 1, 1]} : vector<8x2x8x8xf32> to vector<8x1x8x8xf32>
    %4 = vector.shape_cast %3 : vector<8x1x8x8xf32> to vector<8x8x8xf32>
    %5 = vector.extract_strided_slice %2 {offsets = [0, 1, 0, 0], sizes = [8, 1, 8, 8], strides = [1, 1, 1, 1]} : vector<8x2x8x8xf32> to vector<8x1x8x8xf32>
    %6 = vector.shape_cast %5 : vector<8x1x8x8xf32> to vector<8x8x8xf32>
    %7 = arith.addf %4, %6 : vector<8x8x8xf32>
    %8 = vector.extract_strided_slice %7 {offsets = [0, 0, 0], sizes = [8, 8, 4], strides = [1, 1, 1]} : vector<8x8x8xf32> to vector<8x8x4xf32>
    %9 = vector.extract_strided_slice %7 {offsets = [0, 0, 4], sizes = [8, 8, 4], strides = [1, 1, 1]} : vector<8x8x8xf32> to vector<8x8x4xf32>
    %10 = arith.addf %8, %9 : vector<8x8x4xf32>
    %cst = arith.constant 2.500000e-01 : f32
    %11 = vector.broadcast %cst : f32 to vector<8x8x4xf32>
    %12 = arith.mulf %11, %10 : vector<8x8x4xf32>
    %cst_3 = arith.constant 0.000000e+00 : bf16
    %13 = vector.broadcast %cst_3 : bf16 to vector<1x24x4xbf16>
    %c0_4 = arith.constant 0 : index
    %c0_5 = arith.constant 0 : index
    %c0_6 = arith.constant 0 : index
    %14 = vector.load %arg7[%c0_4, %c0_5, %c0_6] : memref<10x24x4xbf16, #tpu.memory_space<vmem>>, vector<1x24x4xbf16>
    tpu.vector_store %arg7[%c0_4, %c0_5, %c0_6], %13 {strides = array<i32>} : memref<10x24x4xbf16, #tpu.memory_space<vmem>>, vector<1x24x4xbf16>,
    %cst_7 = arith.constant 0.000000e+00 : bf16
    %15 = vector.broadcast %cst_7 : bf16 to vector<1x24x4xbf16>
    %c9 = arith.constant 9 : index
    %c0_8 = arith.constant 0 : index
    %c0_9 = arith.constant 0 : index
    %16 = vector.load %arg7[%c9, %c0_8, %c0_9] : memref<10x24x4xbf16, #tpu.memory_space<vmem>>, vector<1x24x4xbf16>
    tpu.vector_store %arg7[%c9, %c0_8, %c0_9], %15 {strides = array<i32>} : memref<10x24x4xbf16, #tpu.memory_space<vmem>>, vector<1x24x4xbf16>,
    %cst_10 = arith.constant 0.000000e+00 : bf16
    %17 = vector.broadcast %cst_10 : bf16 to vector<10x8x4xbf16>
    %c0_11 = arith.constant 0 : index
    %c0_12 = arith.constant 0 : index
    %c0_13 = arith.constant 0 : index
    %18 = vector.load %arg7[%c0_11, %c0_12, %c0_13] : memref<10x24x4xbf16, #tpu.memory_space<vmem>>, vector<10x8x4xbf16>
    tpu.vector_store %arg7[%c0_11, %c0_12, %c0_13], %17 {strides = array<i32>} : memref<10x24x4xbf16, #tpu.memory_space<vmem>>, vector<10x8x4xbf16>,
    %cst_14 = arith.constant 0.000000e+00 : bf16
    %19 = vector.broadcast %cst_14 : bf16 to vector<10x8x4xbf16>
    %c0_15 = arith.constant 0 : index
    %c16 = arith.constant 16 : index
    %c0_16 = arith.constant 0 : index
    %20 = vector.load %arg7[%c0_15, %c16, %c0_16] : memref<10x24x4xbf16, #tpu.memory_space<vmem>>, vector<10x8x4xbf16>
    tpu.vector_store %arg7[%c0_15, %c16, %c0_16], %19 {strides = array<i32>} : memref<10x24x4xbf16, #tpu.memory_space<vmem>>, vector<10x8x4xbf16>,
    %21 = arith.truncf %12 : vector<8x8x4xf32> to vector<8x8x4xbf16>
    %c1 = arith.constant 1 : index
    %c8 = arith.constant 8 : index
    %c0_17 = arith.constant 0 : index
    %22 = vector.load %arg7[%c1, %c8, %c0_17] : memref<10x24x4xbf16, #tpu.memory_space<vmem>>, vector<8x8x4xbf16>
    tpu.vector_store %arg7[%c1, %c8, %c0_17], %21 {strides = array<i32>} : memref<10x24x4xbf16, #tpu.memory_space<vmem>>, vector<8x8x4xbf16>,
    %c0_18 = arith.constant 0 : index
    %c7 = arith.constant 7 : index
    %c0_19 = arith.constant 0 : index
    %23 = vector.load %arg7[%c0_18, %c7, %c0_19] : memref<10x24x4xbf16, #tpu.memory_space<vmem>>, vector<8x8x4xbf16>
    %24 = vector.shape_cast %23 : vector<8x8x4xbf16> to vector<64x4xbf16>
    %c0_20 = arith.constant 0 : index
    %c0_21 = arith.constant 0 : index
    %c0_22 = arith.constant 0 : index
    %25 = vector.load %arg2[%c0_20, %c0_21, %c0_22] : memref<9x4x8xbf16, #tpu.memory_space<vmem>>, vector<1x4x8xbf16>
    %26 = vector.shape_cast %25 : vector<1x4x8xbf16> to vector<4x8xbf16>
    %cst_23 = arith.constant dense<0.000000e+00> : vector<64x8xf32>
    %27 = tpu.matmul %24, %26, %cst_23 {dimension_numbers = #tpu.dot_dimension_numbers<[1], [0], [0], [1], [0, 0, 1, 1], [], []>} : vector<64x4xbf16>, vector<4x8xbf16>, vector<64x8xf32> -> vector<64x8xf32>
    %c0_24 = arith.constant 0 : index
    %c8_25 = arith.constant 8 : index
    %c0_26 = arith.constant 0 : index
    %28 = vector.load %arg7[%c0_24, %c8_25, %c0_26] : memref<10x24x4xbf16, #tpu.memory_space<vmem>>, vector<8x8x4xbf16>
    %29 = vector.shape_cast %28 : vector<8x8x4xbf16> to vector<64x4xbf16>
    %c1_27 = arith.constant 1 : index
    %c0_28 = arith.constant 0 : index
    %c0_29 = arith.constant 0 : index
    %30 = vector.load %arg2[%c1_27, %c0_28, %c0_29] : memref<9x4x8xbf16, #tpu.memory_space<vmem>>, vector<1x4x8xbf16>
    %31 = vector.shape_cast %30 : vector<1x4x8xbf16> to vector<4x8xbf16>
    %cst_30 = arith.constant dense<0.000000e+00> : vector<64x8xf32>
    %32 = tpu.matmul %29, %31, %cst_30 {dimension_numbers = #tpu.dot_dimension_numbers<[1], [0], [0], [1], [0, 0, 1, 1], [], []>} : vector<64x4xbf16>, vector<4x8xbf16>, vector<64x8xf32> -> vector<64x8xf32>
    %33 = arith.addf %27, %32 : vector<64x8xf32>
    %c0_31 = arith.constant 0 : index
    %c9_32 = arith.constant 9 : index
    %c0_33 = arith.constant 0 : index
    %34 = vector.load %arg7[%c0_31, %c9_32, %c0_33] : memref<10x24x4xbf16, #tpu.memory_space<vmem>>, vector<8x8x4xbf16>
    %35 = vector.shape_cast %34 : vector<8x8x4xbf16> to vector<64x4xbf16>
    %c2 = arith.constant 2 : index
    %c0_34 = arith.constant 0 : index
    %c0_35 = arith.constant 0 : index
    %36 = vector.load %arg2[%c2, %c0_34, %c0_35] : memref<9x4x8xbf16, #tpu.memory_space<vmem>>, vector<1x4x8xbf16>
    %37 = vector.shape_cast %36 : vector<1x4x8xbf16> to vector<4x8xbf16>
    %cst_36 = arith.constant dense<0.000000e+00> : vector<64x8xf32>
    %38 = tpu.matmul %35, %37, %cst_36 {dimension_numbers = #tpu.dot_dimension_numbers<[1], [0], [0], [1], [0, 0, 1, 1], [], []>} : vector<64x4xbf16>, vector<4x8xbf16>, vector<64x8xf32> -> vector<64x8xf32>
    %39 = arith.addf %33, %38 : vector<64x8xf32>
    %c1_37 = arith.constant 1 : index
    %c7_38 = arith.constant 7 : index
    %c0_39 = arith.constant 0 : index
    %40 = vector.load %arg7[%c1_37, %c7_38, %c0_39] : memref<10x24x4xbf16, #tpu.memory_space<vmem>>, vector<8x8x4xbf16>
    %41 = vector.shape_cast %40 : vector<8x8x4xbf16> to vector<64x4xbf16>
    %c3 = arith.constant 3 : index
    %c0_40 = arith.constant 0 : index
    %c0_41 = arith.constant 0 : index
    %42 = vector.load %arg2[%c3, %c0_40, %c0_41] : memref<9x4x8xbf16, #tpu.memory_space<vmem>>, vector<1x4x8xbf16>
    %43 = vector.shape_cast %42 : vector<1x4x8xbf16> to vector<4x8xbf16>
    %cst_42 = arith.constant dense<0.000000e+00> : vector<64x8xf32>
    %44 = tpu.matmul %41, %43, %cst_42 {dimension_numbers = #tpu.dot_dimension_numbers<[1], [0], [0], [1], [0, 0, 1, 1], [], []>} : vector<64x4xbf16>, vector<4x8xbf16>, vector<64x8xf32> -> vector<64x8xf32>
    %45 = arith.addf %39, %44 : vector<64x8xf32>
    %c1_43 = arith.constant 1 : index
    %c8_44 = arith.constant 8 : index
    %c0_45 = arith.constant 0 : index
    %46 = vector.load %arg7[%c1_43, %c8_44, %c0_45] : memref<10x24x4xbf16, #tpu.memory_space<vmem>>, vector<8x8x4xbf16>
    %47 = vector.shape_cast %46 : vector<8x8x4xbf16> to vector<64x4xbf16>
    %c4 = arith.constant 4 : index
    %c0_46 = arith.constant 0 : index
    %c0_47 = arith.constant 0 : index
    %48 = vector.load %arg2[%c4, %c0_46, %c0_47] : memref<9x4x8xbf16, #tpu.memory_space<vmem>>, vector<1x4x8xbf16>
    %49 = vector.shape_cast %48 : vector<1x4x8xbf16> to vector<4x8xbf16>
    %cst_48 = arith.constant dense<0.000000e+00> : vector<64x8xf32>
    %50 = tpu.matmul %47, %49, %cst_48 {dimension_numbers = #tpu.dot_dimension_numbers<[1], [0], [0], [1], [0, 0, 1, 1], [], []>} : vector<64x4xbf16>, vector<4x8xbf16>, vector<64x8xf32> -> vector<64x8xf32>
    %51 = arith.addf %45, %50 : vector<64x8xf32>
    %c1_49 = arith.constant 1 : index
    %c9_50 = arith.constant 9 : index
    %c0_51 = arith.constant 0 : index
    %52 = vector.load %arg7[%c1_49, %c9_50, %c0_51] : memref<10x24x4xbf16, #tpu.memory_space<vmem>>, vector<8x8x4xbf16>
    %53 = vector.shape_cast %52 : vector<8x8x4xbf16> to vector<64x4xbf16>
    %c5 = arith.constant 5 : index
    %c0_52 = arith.constant 0 : index
    %c0_53 = arith.constant 0 : index
    %54 = vector.load %arg2[%c5, %c0_52, %c0_53] : memref<9x4x8xbf16, #tpu.memory_space<vmem>>, vector<1x4x8xbf16>
    %55 = vector.shape_cast %54 : vector<1x4x8xbf16> to vector<4x8xbf16>
    %cst_54 = arith.constant dense<0.000000e+00> : vector<64x8xf32>
    %56 = tpu.matmul %53, %55, %cst_54 {dimension_numbers = #tpu.dot_dimension_numbers<[1], [0], [0], [1], [0, 0, 1, 1], [], []>} : vector<64x4xbf16>, vector<4x8xbf16>, vector<64x8xf32> -> vector<64x8xf32>
    %57 = arith.addf %51, %56 : vector<64x8xf32>
    %c2_55 = arith.constant 2 : index
    %c7_56 = arith.constant 7 : index
    %c0_57 = arith.constant 0 : index
    %58 = vector.load %arg7[%c2_55, %c7_56, %c0_57] : memref<10x24x4xbf16, #tpu.memory_space<vmem>>, vector<8x8x4xbf16>
    %59 = vector.shape_cast %58 : vector<8x8x4xbf16> to vector<64x4xbf16>
    %c6 = arith.constant 6 : index
    %c0_58 = arith.constant 0 : index
    %c0_59 = arith.constant 0 : index
    %60 = vector.load %arg2[%c6, %c0_58, %c0_59] : memref<9x4x8xbf16, #tpu.memory_space<vmem>>, vector<1x4x8xbf16>
    %61 = vector.shape_cast %60 : vector<1x4x8xbf16> to vector<4x8xbf16>
    %cst_60 = arith.constant dense<0.000000e+00> : vector<64x8xf32>
    %62 = tpu.matmul %59, %61, %cst_60 {dimension_numbers = #tpu.dot_dimension_numbers<[1], [0], [0], [1], [0, 0, 1, 1], [], []>} : vector<64x4xbf16>, vector<4x8xbf16>, vector<64x8xf32> -> vector<64x8xf32>
    %63 = arith.addf %57, %62 : vector<64x8xf32>
    %c2_61 = arith.constant 2 : index
    %c8_62 = arith.constant 8 : index
    %c0_63 = arith.constant 0 : index
    %64 = vector.load %arg7[%c2_61, %c8_62, %c0_63] : memref<10x24x4xbf16, #tpu.memory_space<vmem>>, vector<8x8x4xbf16>
    %65 = vector.shape_cast %64 : vector<8x8x4xbf16> to vector<64x4xbf16>
    %c7_64 = arith.constant 7 : index
    %c0_65 = arith.constant 0 : index
    %c0_66 = arith.constant 0 : index
    %66 = vector.load %arg2[%c7_64, %c0_65, %c0_66] : memref<9x4x8xbf16, #tpu.memory_space<vmem>>, vector<1x4x8xbf16>
    %67 = vector.shape_cast %66 : vector<1x4x8xbf16> to vector<4x8xbf16>
    %cst_67 = arith.constant dense<0.000000e+00> : vector<64x8xf32>
    %68 = tpu.matmul %65, %67, %cst_67 {dimension_numbers = #tpu.dot_dimension_numbers<[1], [0], [0], [1], [0, 0, 1, 1], [], []>} : vector<64x4xbf16>, vector<4x8xbf16>, vector<64x8xf32> -> vector<64x8xf32>
    %69 = arith.addf %63, %68 : vector<64x8xf32>
    %c2_68 = arith.constant 2 : index
    %c9_69 = arith.constant 9 : index
    %c0_70 = arith.constant 0 : index
    %70 = vector.load %arg7[%c2_68, %c9_69, %c0_70] : memref<10x24x4xbf16, #tpu.memory_space<vmem>>, vector<8x8x4xbf16>
    %71 = vector.shape_cast %70 : vector<8x8x4xbf16> to vector<64x4xbf16>
    %c8_71 = arith.constant 8 : index
    %c0_72 = arith.constant 0 : index
    %c0_73 = arith.constant 0 : index
    %72 = vector.load %arg2[%c8_71, %c0_72, %c0_73] : memref<9x4x8xbf16, #tpu.memory_space<vmem>>, vector<1x4x8xbf16>
    %73 = vector.shape_cast %72 : vector<1x4x8xbf16> to vector<4x8xbf16>
    %cst_74 = arith.constant dense<0.000000e+00> : vector<64x8xf32>
    %74 = tpu.matmul %71, %73, %cst_74 {dimension_numbers = #tpu.dot_dimension_numbers<[1], [0], [0], [1], [0, 0, 1, 1], [], []>} : vector<64x4xbf16>, vector<4x8xbf16>, vector<64x8xf32> -> vector<64x8xf32>
    %75 = arith.addf %69, %74 : vector<64x8xf32>
    %c0_75 = arith.constant 0 : index
    %c0_76 = arith.constant 0 : index
    %76 = vector.load %arg3[%c0_75, %c0_76] : memref<1x8xf32, #tpu.memory_space<vmem>>, vector<1x8xf32>
    %77 = vector.broadcast %76 : vector<1x8xf32> to vector<64x8xf32>
    %78 = arith.addf %75, %77 : vector<64x8xf32>
    %cst_77 = arith.constant 0.000000e+00 : f32
    %79 = vector.broadcast %cst_77 : f32 to vector<64x8xf32>
    %80 = arith.cmpf oge, %78, %79 : vector<64x8xf32>
    %cst_78 = arith.constant 2.000000e-01 : f32
    %81 = vector.broadcast %cst_78 : f32 to vector<64x8xf32>
    %82 = arith.mulf %81, %78 : vector<64x8xf32>
    %83 = arith.select %80, %78, %82 : vector<64x8xi1>, vector<64x8xf32>
    %cst_79 = arith.constant 0.000000e+00 : bf16
    %84 = vector.broadcast %cst_79 : bf16 to vector<1x24x8xbf16>
    %c0_80 = arith.constant 0 : index
    %c0_81 = arith.constant 0 : index
    %c0_82 = arith.constant 0 : index
    %85 = vector.load %arg8[%c0_80, %c0_81, %c0_82] : memref<10x24x8xbf16, #tpu.memory_space<vmem>>, vector<1x24x8xbf16>
    tpu.vector_store %arg8[%c0_80, %c0_81, %c0_82], %84 {strides = array<i32>} : memref<10x24x8xbf16, #tpu.memory_space<vmem>>, vector<1x24x8xbf16>,
    %cst_83 = arith.constant 0.000000e+00 : bf16
    %86 = vector.broadcast %cst_83 : bf16 to vector<1x24x8xbf16>
    %c9_84 = arith.constant 9 : index
    %c0_85 = arith.constant 0 : index
    %c0_86 = arith.constant 0 : index
    %87 = vector.load %arg8[%c9_84, %c0_85, %c0_86] : memref<10x24x8xbf16, #tpu.memory_space<vmem>>, vector<1x24x8xbf16>
    tpu.vector_store %arg8[%c9_84, %c0_85, %c0_86], %86 {strides = array<i32>} : memref<10x24x8xbf16, #tpu.memory_space<vmem>>, vector<1x24x8xbf16>,
    %cst_87 = arith.constant 0.000000e+00 : bf16
    %88 = vector.broadcast %cst_87 : bf16 to vector<10x8x8xbf16>
    %c0_88 = arith.constant 0 : index
    %c0_89 = arith.constant 0 : index
    %c0_90 = arith.constant 0 : index
    %89 = vector.load %arg8[%c0_88, %c0_89, %c0_90] : memref<10x24x8xbf16, #tpu.memory_space<vmem>>, vector<10x8x8xbf16>
    tpu.vector_store %arg8[%c0_88, %c0_89, %c0_90], %88 {strides = array<i32>} : memref<10x24x8xbf16, #tpu.memory_space<vmem>>, vector<10x8x8xbf16>,
    %cst_91 = arith.constant 0.000000e+00 : bf16
    %90 = vector.broadcast %cst_91 : bf16 to vector<10x8x8xbf16>
    %c0_92 = arith.constant 0 : index
    %c16_93 = arith.constant 16 : index
    %c0_94 = arith.constant 0 : index
    %91 = vector.load %arg8[%c0_92, %c16_93, %c0_94] : memref<10x24x8xbf16, #tpu.memory_space<vmem>>, vector<10x8x8xbf16>
    tpu.vector_store %arg8[%c0_92, %c16_93, %c0_94], %90 {strides = array<i32>} : memref<10x24x8xbf16, #tpu.memory_space<vmem>>, vector<10x8x8xbf16>,
    %92 = vector.shape_cast %83 : vector<64x8xf32> to vector<8x8x8xf32>
    %93 = arith.truncf %92 : vector<8x8x8xf32> to vector<8x8x8xbf16>
    %c1_95 = arith.constant 1 : index
    %c8_96 = arith.constant 8 : index
    %c0_97 = arith.constant 0 : index
    %94 = vector.load %arg8[%c1_95, %c8_96, %c0_97] : memref<10x24x8xbf16, #tpu.memory_space<vmem>>, vector<8x8x8xbf16>
    tpu.vector_store %arg8[%c1_95, %c8_96, %c0_97], %93 {strides = array<i32>} : memref<10x24x8xbf16, #tpu.memory_space<vmem>>, vector<8x8x8xbf16>,
    %c0_98 = arith.constant 0 : index
    %c7_99 = arith.constant 7 : index
    %c0_100 = arith.constant 0 : index
    %95 = vector.load %arg8[%c0_98, %c7_99, %c0_100] : memref<10x24x8xbf16, #tpu.memory_space<vmem>>, vector<8x8x8xbf16>
    %96 = vector.shape_cast %95 : vector<8x8x8xbf16> to vector<64x8xbf16>
    %c0_101 = arith.constant 0 : index
    %c0_102 = arith.constant 0 : index
    %c0_103 = arith.constant 0 : index
    %97 = vector.load %arg4[%c0_101, %c0_102, %c0_103] : memref<9x8x8xbf16, #tpu.memory_space<vmem>>, vector<1x8x8xbf16>
    %98 = vector.shape_cast %97 : vector<1x8x8xbf16> to vector<8x8xbf16>
    %cst_104 = arith.constant dense<0.000000e+00> : vector<64x8xf32>
    %99 = tpu.matmul %96, %98, %cst_104 {dimension_numbers = #tpu.dot_dimension_numbers<[1], [0], [0], [1], [0, 0, 1, 1], [], []>} : vector<64x8xbf16>, vector<8x8xbf16>, vector<64x8xf32> -> vector<64x8xf32>
    %c0_105 = arith.constant 0 : index
    %c8_106 = arith.constant 8 : index
    %c0_107 = arith.constant 0 : index
    %100 = vector.load %arg8[%c0_105, %c8_106, %c0_107] : memref<10x24x8xbf16, #tpu.memory_space<vmem>>, vector<8x8x8xbf16>
    %101 = vector.shape_cast %100 : vector<8x8x8xbf16> to vector<64x8xbf16>
    %c1_108 = arith.constant 1 : index
    %c0_109 = arith.constant 0 : index
    %c0_110 = arith.constant 0 : index
    %102 = vector.load %arg4[%c1_108, %c0_109, %c0_110] : memref<9x8x8xbf16, #tpu.memory_space<vmem>>, vector<1x8x8xbf16>
    %103 = vector.shape_cast %102 : vector<1x8x8xbf16> to vector<8x8xbf16>
    %cst_111 = arith.constant dense<0.000000e+00> : vector<64x8xf32>
    %104 = tpu.matmul %101, %103, %cst_111 {dimension_numbers = #tpu.dot_dimension_numbers<[1], [0], [0], [1], [0, 0, 1, 1], [], []>} : vector<64x8xbf16>, vector<8x8xbf16>, vector<64x8xf32> -> vector<64x8xf32>
    %105 = arith.addf %99, %104 : vector<64x8xf32>
    %c0_112 = arith.constant 0 : index
    %c9_113 = arith.constant 9 : index
    %c0_114 = arith.constant 0 : index
    %106 = vector.load %arg8[%c0_112, %c9_113, %c0_114] : memref<10x24x8xbf16, #tpu.memory_space<vmem>>, vector<8x8x8xbf16>
    %107 = vector.shape_cast %106 : vector<8x8x8xbf16> to vector<64x8xbf16>
    %c2_115 = arith.constant 2 : index
    %c0_116 = arith.constant 0 : index
    %c0_117 = arith.constant 0 : index
    %108 = vector.load %arg4[%c2_115, %c0_116, %c0_117] : memref<9x8x8xbf16, #tpu.memory_space<vmem>>, vector<1x8x8xbf16>
    %109 = vector.shape_cast %108 : vector<1x8x8xbf16> to vector<8x8xbf16>
    %cst_118 = arith.constant dense<0.000000e+00> : vector<64x8xf32>
    %110 = tpu.matmul %107, %109, %cst_118 {dimension_numbers = #tpu.dot_dimension_numbers<[1], [0], [0], [1], [0, 0, 1, 1], [], []>} : vector<64x8xbf16>, vector<8x8xbf16>, vector<64x8xf32> -> vector<64x8xf32>
    %111 = arith.addf %105, %110 : vector<64x8xf32>
    %c1_119 = arith.constant 1 : index
    %c7_120 = arith.constant 7 : index
    %c0_121 = arith.constant 0 : index
    %112 = vector.load %arg8[%c1_119, %c7_120, %c0_121] : memref<10x24x8xbf16, #tpu.memory_space<vmem>>, vector<8x8x8xbf16>
    %113 = vector.shape_cast %112 : vector<8x8x8xbf16> to vector<64x8xbf16>
    %c3_122 = arith.constant 3 : index
    %c0_123 = arith.constant 0 : index
    %c0_124 = arith.constant 0 : index
    %114 = vector.load %arg4[%c3_122, %c0_123, %c0_124] : memref<9x8x8xbf16, #tpu.memory_space<vmem>>, vector<1x8x8xbf16>
    %115 = vector.shape_cast %114 : vector<1x8x8xbf16> to vector<8x8xbf16>
    %cst_125 = arith.constant dense<0.000000e+00> : vector<64x8xf32>
    %116 = tpu.matmul %113, %115, %cst_125 {dimension_numbers = #tpu.dot_dimension_numbers<[1], [0], [0], [1], [0, 0, 1, 1], [], []>} : vector<64x8xbf16>, vector<8x8xbf16>, vector<64x8xf32> -> vector<64x8xf32>
    %117 = arith.addf %111, %116 : vector<64x8xf32>
    %c1_126 = arith.constant 1 : index
    %c8_127 = arith.constant 8 : index
    %c0_128 = arith.constant 0 : index
    %118 = vector.load %arg8[%c1_126, %c8_127, %c0_128] : memref<10x24x8xbf16, #tpu.memory_space<vmem>>, vector<8x8x8xbf16>
    %119 = vector.shape_cast %118 : vector<8x8x8xbf16> to vector<64x8xbf16>
    %c4_129 = arith.constant 4 : index
    %c0_130 = arith.constant 0 : index
    %c0_131 = arith.constant 0 : index
    %120 = vector.load %arg4[%c4_129, %c0_130, %c0_131] : memref<9x8x8xbf16, #tpu.memory_space<vmem>>, vector<1x8x8xbf16>
    %121 = vector.shape_cast %120 : vector<1x8x8xbf16> to vector<8x8xbf16>
    %cst_132 = arith.constant dense<0.000000e+00> : vector<64x8xf32>
    %122 = tpu.matmul %119, %121, %cst_132 {dimension_numbers = #tpu.dot_dimension_numbers<[1], [0], [0], [1], [0, 0, 1, 1], [], []>} : vector<64x8xbf16>, vector<8x8xbf16>, vector<64x8xf32> -> vector<64x8xf32>
    %123 = arith.addf %117, %122 : vector<64x8xf32>
    %c1_133 = arith.constant 1 : index
    %c9_134 = arith.constant 9 : index
    %c0_135 = arith.constant 0 : index
    %124 = vector.load %arg8[%c1_133, %c9_134, %c0_135] : memref<10x24x8xbf16, #tpu.memory_space<vmem>>, vector<8x8x8xbf16>
    %125 = vector.shape_cast %124 : vector<8x8x8xbf16> to vector<64x8xbf16>
    %c5_136 = arith.constant 5 : index
    %c0_137 = arith.constant 0 : index
    %c0_138 = arith.constant 0 : index
    %126 = vector.load %arg4[%c5_136, %c0_137, %c0_138] : memref<9x8x8xbf16, #tpu.memory_space<vmem>>, vector<1x8x8xbf16>
    %127 = vector.shape_cast %126 : vector<1x8x8xbf16> to vector<8x8xbf16>
    %cst_139 = arith.constant dense<0.000000e+00> : vector<64x8xf32>
    %128 = tpu.matmul %125, %127, %cst_139 {dimension_numbers = #tpu.dot_dimension_numbers<[1], [0], [0], [1], [0, 0, 1, 1], [], []>} : vector<64x8xbf16>, vector<8x8xbf16>, vector<64x8xf32> -> vector<64x8xf32>
    %129 = arith.addf %123, %128 : vector<64x8xf32>
    %c2_140 = arith.constant 2 : index
    %c7_141 = arith.constant 7 : index
    %c0_142 = arith.constant 0 : index
    %130 = vector.load %arg8[%c2_140, %c7_141, %c0_142] : memref<10x24x8xbf16, #tpu.memory_space<vmem>>, vector<8x8x8xbf16>
    %131 = vector.shape_cast %130 : vector<8x8x8xbf16> to vector<64x8xbf16>
    %c6_143 = arith.constant 6 : index
    %c0_144 = arith.constant 0 : index
    %c0_145 = arith.constant 0 : index
    %132 = vector.load %arg4[%c6_143, %c0_144, %c0_145] : memref<9x8x8xbf16, #tpu.memory_space<vmem>>, vector<1x8x8xbf16>
    %133 = vector.shape_cast %132 : vector<1x8x8xbf16> to vector<8x8xbf16>
    %cst_146 = arith.constant dense<0.000000e+00> : vector<64x8xf32>
    %134 = tpu.matmul %131, %133, %cst_146 {dimension_numbers = #tpu.dot_dimension_numbers<[1], [0], [0], [1], [0, 0, 1, 1], [], []>} : vector<64x8xbf16>, vector<8x8xbf16>, vector<64x8xf32> -> vector<64x8xf32>
    %135 = arith.addf %129, %134 : vector<64x8xf32>
    %c2_147 = arith.constant 2 : index
    %c8_148 = arith.constant 8 : index
    %c0_149 = arith.constant 0 : index
    %136 = vector.load %arg8[%c2_147, %c8_148, %c0_149] : memref<10x24x8xbf16, #tpu.memory_space<vmem>>, vector<8x8x8xbf16>
    %137 = vector.shape_cast %136 : vector<8x8x8xbf16> to vector<64x8xbf16>
    %c7_150 = arith.constant 7 : index
    %c0_151 = arith.constant 0 : index
    %c0_152 = arith.constant 0 : index
    %138 = vector.load %arg4[%c7_150, %c0_151, %c0_152] : memref<9x8x8xbf16, #tpu.memory_space<vmem>>, vector<1x8x8xbf16>
    %139 = vector.shape_cast %138 : vector<1x8x8xbf16> to vector<8x8xbf16>
    %cst_153 = arith.constant dense<0.000000e+00> : vector<64x8xf32>
    %140 = tpu.matmul %137, %139, %cst_153 {dimension_numbers = #tpu.dot_dimension_numbers<[1], [0], [0], [1], [0, 0, 1, 1], [], []>} : vector<64x8xbf16>, vector<8x8xbf16>, vector<64x8xf32> -> vector<64x8xf32>
    %141 = arith.addf %135, %140 : vector<64x8xf32>
    %c2_154 = arith.constant 2 : index
    %c9_155 = arith.constant 9 : index
    %c0_156 = arith.constant 0 : index
    %142 = vector.load %arg8[%c2_154, %c9_155, %c0_156] : memref<10x24x8xbf16, #tpu.memory_space<vmem>>, vector<8x8x8xbf16>
    %143 = vector.shape_cast %142 : vector<8x8x8xbf16> to vector<64x8xbf16>
    %c8_157 = arith.constant 8 : index
    %c0_158 = arith.constant 0 : index
    %c0_159 = arith.constant 0 : index
    %144 = vector.load %arg4[%c8_157, %c0_158, %c0_159] : memref<9x8x8xbf16, #tpu.memory_space<vmem>>, vector<1x8x8xbf16>
    %145 = vector.shape_cast %144 : vector<1x8x8xbf16> to vector<8x8xbf16>
    %cst_160 = arith.constant dense<0.000000e+00> : vector<64x8xf32>
    %146 = tpu.matmul %143, %145, %cst_160 {dimension_numbers = #tpu.dot_dimension_numbers<[1], [0], [0], [1], [0, 0, 1, 1], [], []>} : vector<64x8xbf16>, vector<8x8xbf16>, vector<64x8xf32> -> vector<64x8xf32>
    %147 = arith.addf %141, %146 : vector<64x8xf32>
    %c0_161 = arith.constant 0 : index
    %c0_162 = arith.constant 0 : index
    %148 = vector.load %arg5[%c0_161, %c0_162] : memref<1x8xf32, #tpu.memory_space<vmem>>, vector<1x8xf32>
    %149 = vector.broadcast %148 : vector<1x8xf32> to vector<64x8xf32>
    %150 = arith.addf %147, %149 : vector<64x8xf32>
    %cst_163 = arith.constant 0.000000e+00 : f32
    %151 = vector.broadcast %cst_163 : f32 to vector<64x8xf32>
    %152 = arith.cmpf oge, %150, %151 : vector<64x8xf32>
    %cst_164 = arith.constant 2.000000e-01 : f32
    %153 = vector.broadcast %cst_164 : f32 to vector<64x8xf32>
    %154 = arith.mulf %153, %150 : vector<64x8xf32>
    %155 = arith.select %152, %150, %154 : vector<64x8xi1>, vector<64x8xf32>
    %156 = vector.shape_cast %155 : vector<64x8xf32> to vector<8x8x8xf32>
    %c0_165 = arith.constant 0 : index
    %c0_166 = arith.constant 0 : index
    %c0_167 = arith.constant 0 : index
    %c0_168 = arith.constant 0 : index
    %157 = vector.load %arg6[%c0_165, %c0_166, %c0_167, %c0_168] : memref<1x8x8x8xf32, #tpu.memory_space<vmem>>, vector<1x8x8x8xf32>
    %158 = vector.shape_cast %157 : vector<1x8x8x8xf32> to vector<8x8x8xf32>
    %159 = vector.shape_cast %156 : vector<8x8x8xf32> to vector<1x8x8x8xf32>
    tpu.vector_store %arg6[%c0_165, %c0_166, %c0_167, %c0_168], %159 {strides = array<i32>} : memref<1x8x8x8xf32, #tpu.memory_space<vmem>>, vector<1x8x8x8xf32>,
    return
  }
  func.func @transform_0(%arg0: i32) -> (i32, i32, i32, i32) {
    %c0_i32 = arith.constant 0 : i32
    %c0_i32_0 = arith.constant 0 : i32
    %c0_i32_1 = arith.constant 0 : i32
    %c0_i32_2 = arith.constant 0 : i32
    return %arg0, %c0_i32, %c0_i32_0, %c0_i32_1 : i32, i32, i32, i32
  }
  func.func @transform_1(%arg0: i32) -> (i32, i32, i32) {
    %c0_i32 = arith.constant 0 : i32
    %c0_i32_0 = arith.constant 0 : i32
    %c0_i32_1 = arith.constant 0 : i32
    %c0_i32_2 = arith.constant 0 : i32
    return %c0_i32, %c0_i32_0, %c0_i32_1 : i32, i32, i32
  }
  func.func @transform_2(%arg0: i32) -> (i32, i32) {
    %c0_i32 = arith.constant 0 : i32
    %c0_i32_0 = arith.constant 0 : i32
    %c0_i32_1 = arith.constant 0 : i32
    return %c0_i32, %c0_i32_0 : i32, i32
  }
  func.func @transform_3(%arg0: i32) -> (i32, i32, i32) {
    %c0_i32 = arith.constant 0 : i32
    %c0_i32_0 = arith.constant 0 : i32
    %c0_i32_1 = arith.constant 0 : i32
    %c0_i32_2 = arith.constant 0 : i32
    return %c0_i32, %c0_i32_0, %c0_i32_1 : i32, i32, i32
  }
  func.func @transform_4(%arg0: i32) -> (i32, i32) {
    %c0_i32 = arith.constant 0 : i32
    %c0_i32_0 = arith.constant 0 : i32
    %c0_i32_1 = arith.constant 0 : i32
    return %c0_i32, %c0_i32_0 : i32, i32
  }
  func.func @transform_5(%arg0: i32) -> (i32, i32, i32, i32) {
    %c0_i32 = arith.constant 0 : i32
    %c0_i32_0 = arith.constant 0 : i32
    %c0_i32_1 = arith.constant 0 : i32
    %c0_i32_2 = arith.constant 0 : i32
    return %arg0, %c0_i32, %c0_i32_0, %c0_i32_1 : i32, i32, i32, i32
  }
}

</mosaic_0001>

<bundles_post_ra>
// kernel: tpu_custom_call.1
= control target key start
LH: loop header
LB: loop body
LE: loop exit
PB: predicated region body
PF: predicated region fallthrough
CT: control target
= control target key end

     0   :  { %10 = vsyncpa [#allocation5], 0  ;;  %s6133_s0 = inlined_call_operand.vmem [shape: f32[2,16,8,8], index: 0, kind: input, shape index: {}]   ;;  %s6134_s1 = inlined_call_operand.vmem [shape: bf16[9,4,8], index: 1, kind: input, shape index: {}]   ;;  %s6135_s2 = inlined_call_operand.vmem [shape: f32[1,8], index: 2, kind: input, shape index: {}]   ;;  %s6136_s3 = inlined_call_operand.vmem [shape: bf16[9,8,8], index: 3, kind: input, shape index: {}]   ;;  %s6137_s4 = inlined_call_operand.vmem [shape: f32[1,8], index: 4, kind: input, shape index: {}]   ;;  %s6138_s5 = inlined_call_operand.hbm [shape: f32[2,8,8,8], index: 5, kind: output, shape index: {}]  }
   0x1   :  { %12 = vsyncpa [#allocation5 + $0x1], 0  ;;  %s4575_s18 = smov 0   ;;  %s4577_s19 = smov 0  }
   0x2   :  { %s4579_s20 = smov 0   ;;  %s4581_s21 = smov 0  }
   0x3 LB: > { %s4596_s22 = sadd.s32 4294967295, %s4538_s21   ;;  %s3898_s23 = sadd.s32 4294967294, %s4538_s21   ;;  %s4538_s21 = sphi %s4581_s21, %s6342_s21   ;;  %s4534_s20 = sphi %s4579_s20, %s6341_s20   ;;  %s4530_s19 = sphi %s4577_s19, %s6340_s19   ;;  %s4526_s18 = sphi %s4575_s18, %s6339_s18  }
   0x4   : > { %s4600_s24 = sadd.s32 1, %s4538_s21   ;;  %s135_s25 = sadd.s32 1, %s4534_s20 }
   0x5   : > { %s132_s26 = ssub.s32 %s4538_s21, %s4600_s24  ;;  %p145_p0 = scmp.ne.s32.totalorder %s4534_s20, %s4530_s19 }
   0x6   : > { %p133_p1 = scmp.eq.s32.totalorder %s132_s26, 0  ;;  %p146_p2 = scmp.eq.s32.totalorder %s4596_s22, 1 }
   0x7   : > { %p151_p3 = scmp.ne.s32.totalorder %s4530_s19, %s4526_s18  ;;  %p152_p4 = scmp.eq.s32.totalorder %s3898_s23, 1 }
   0x8   : > { %s4611_s27 = scalar_select %p133_p1, %s4534_s20, %s135_s25  }
   0x9   : > { %p4613_p5 = por %p146_p2, %p145_p0  ;;  %p4617_p6 = por %p152_p4, %p151_p3 }
   0xa   : > { %p3901_p7 = scmp.ge.s32.totalorder %s4538_s21, 1  ;;  %p190_p8 = scmp.lt.s32.totalorder %s4538_s21, 3 }
   0xc   : > { %p191_p9 = pnand %p3901_p7, %p190_p8 }
   0xe   : > { %194 = sbr.rel (%p191_p9) target bundleno = 758 (0x2f6), region = 40 }
  0x13   : > { %p218_p10 = scmp.lt.s32.totalorder %s4596_s22, 1  ;;  %vm296_vm0 = vcmask 27648   ;;  %v6139_v0 = vmov 0   ;;  %s4541_s10 = smov 124   ;;  %v3913_v17 = vld [vmem:[%s6134_s1 + $0x2] sm:$0x3] }
  0x14   : > { %298 = vst.msk [vmem:[#allocation2 + $0x4] sm:$0xf] %vm296_vm0, %v6139_v0  ;;  %297 = vst.msk [vmem:[#allocation2] sm:$0xf] %vm296_vm0, %v6139_v0  ;;  %vm500_vm1 = vcmask 1041408   ;;  %vm487_vm8 = vcmask 31744  }
  0x15   : > { %s4625_s30 = scalar_select %p218_p10, %s4596_s22, 1  ;;  %299 = vst.msk [vmem:[#allocation2 + $0x8] sm:$0xf] %vm296_vm0, %v6139_v0  ;;  %301 = vst.msk [vmem:[#allocation2 + $0x6c] sm:$0xf] %vm296_vm0, %v6139_v0  ;;  %4392 = vmatprep.subr.msk.bf16.mxu0 %vm500_vm1, %v3913_v17  ;;  %v502_v19 = vsel %vm500_vm1, %v3913_v17, 0 }
  0x16   : > { %302 = vst.msk [vmem:[#allocation2 + $0x70] sm:$0xf] %vm296_vm0, %v6139_v0  ;;  %303 = vst.msk [vmem:[#allocation2 + $0x74] sm:$0xf] %vm296_vm0, %v6139_v0  ;;  %4213 = vmatpush3.bf16.msra.mxu0 %v502_v19  ;;  %v3930_v25 = vld [vmem:[%s6134_s1 + $0x4] sm:$0x3] }
  0x17   : > { %305 = vst.msk [vmem:[#allocation2 + $0xc] sm:$0xf] %vm296_vm0, %v6139_v0  ;;  %306 = vst.msk [vmem:[#allocation2 + $0x18] sm:$0xf] %vm296_vm0, %v6139_v0  ;;  %s4120_s6 = sshll.u32 %s4625_s30, 7  ;;  %4394 = vmatprep.subr.msk.bf16.mxu0 %vm500_vm1, %v3930_v25  ;;  %v4763_v53 = vsel %vm500_vm1, %v3930_v25, 0 }
  0x18   : > { %307 = vst.msk [vmem:[#allocation2 + $0x24] sm:$0xf] %vm296_vm0, %v6139_v0  ;;  %308 = vst.msk [vmem:[#allocation2 + $0x30] sm:$0xf] %vm296_vm0, %v6139_v0  ;;  %s4683_s9 = scalar_lea.vmem %s6133_s0, %s4120_s6  ;;  %v464_v28 = vld [vmem:[%s6134_s1] sm:$0x3] }
  0x19   : > { %309 = vst.msk [vmem:[#allocation2 + $0x3c] sm:$0xf] %vm296_vm0, %v6139_v0  ;;  %310 = vst.msk [vmem:[#allocation2 + $0x48] sm:$0xf] %vm296_vm0, %v6139_v0  ;;  %v228_v1 = vld [vmem:[%s4683_s9 + $0x20] sm:$0xff]  ;;  %v229_v2 = vld [vmem:[%s4683_s9 + $0x28] sm:$0xff]  ;;  %4393 = vmatprep.subr.msk.bf16.mxu1 %vm500_vm1, %v464_v28 }
  0x1a   : > { %311 = vst.msk [vmem:[#allocation2 + $0x54] sm:$0xf] %vm296_vm0, %v6139_v0  ;;  %312 = vst.msk [vmem:[#allocation2 + $0x60] sm:$0xf] %vm296_vm0, %v6139_v0  ;;  %v224_v3 = vld [vmem:[%s4683_s9] sm:$0xff]  ;;  %v4688_v4 = vadd.f32 %v229_v2, %v228_v1  ;;  %v225_v5 = vld [vmem:[%s4683_s9 + $0x8] sm:$0xff] }
  0x1b   : > { %315 = vst.msk [vmem:[#allocation2 + $0x14] sm:$0xf] %vm296_vm0, %v6139_v0  ;;  %316 = vst.msk [vmem:[#allocation2 + $0x20] sm:$0xf] %vm296_vm0, %v6139_v0  ;;  %v230_v6 = vld [vmem:[%s4683_s9 + $0x30] sm:$0xff]  ;;  %v231_v7 = vld [vmem:[%s4683_s9 + $0x38] sm:$0xff]  ;;  %v4693_v8 = vadd.f32 %v225_v5, %v224_v3 }
  0x1c   : > { %317 = vst.msk [vmem:[#allocation2 + $0x2c] sm:$0xf] %vm296_vm0, %v6139_v0  ;;  %318 = vst.msk [vmem:[#allocation2 + $0x38] sm:$0xf] %vm296_vm0, %v6139_v0  ;;  %v226_v9 = vld [vmem:[%s4683_s9 + $0x10] sm:$0xff]  ;;  %v227_v10 = vld [vmem:[%s4683_s9 + $0x18] sm:$0xff]  ;;  %260 = vrot.lane.b32.xlu1 %v4688_v4, %s4541_s10  ;;  %v4699_v11 = vadd.f32 %v231_v7, %v230_v6 }
  0x1d   : > { %319 = vst.msk [vmem:[#allocation2 + $0x44] sm:$0xf] %vm296_vm0, %v6139_v0  ;;  %320 = vst.msk [vmem:[#allocation2 + $0x50] sm:$0xf] %vm296_vm0, %v6139_v0  ;;  %256 = vrot.lane.b32.xlu0 %v4693_v8, %s4541_s10  ;;  %v4703_v12 = vadd.f32 %v227_v10, %v226_v9  ;;  %v234_v13 = vld [vmem:[%s4683_s9 + $0x50] sm:$0xff]  ;;  %v235_v14 = vld [vmem:[%s4683_s9 + $0x58] sm:$0xff] }
  0x1e   : > { %321 = vst.msk [vmem:[#allocation2 + $0x5c] sm:$0xf] %vm296_vm0, %v6139_v0  ;;  %322 = vst.msk [vmem:[#allocation2 + $0x68] sm:$0xf] %vm296_vm0, %v6139_v0  ;;  %v232_v15 = vld [vmem:[%s4683_s9 + $0x40] sm:$0xff]  ;;  %v233_v16 = vld [vmem:[%s4683_s9 + $0x48] sm:$0xff]  ;;  %v4714_v18 = vadd.f32 %v235_v14, %v234_v13 }
  0x1f   : > { %304 = vst.msk [vmem:[#allocation2] sm:$0xf] %vm296_vm0, %v6139_v0  ;;  %313 = vst.msk [vmem:[#allocation2 + $0x6c] sm:$0xf] %vm296_vm0, %v6139_v0  ;;  %v4720_v20 = vadd.f32 %v233_v16, %v232_v15  ;;  %v238_v21 = vld [vmem:[%s4683_s9 + $0x70] sm:$0xff]  ;;  %v239_v22 = vld [vmem:[%s4683_s9 + $0x78] sm:$0xff] }
  0x20   : > { %314 = vst.msk [vmem:[#allocation2 + $0x8] sm:$0xf] %vm296_vm0, %v6139_v0  ;;  %323 = vst.msk [vmem:[#allocation2 + $0x74] sm:$0xf] %vm296_vm0, %v6139_v0  ;;  %262 = vrot.lane.b32.xlu1 %v4699_v11, %s4541_s10  ;;  %v236_v23 = vld [vmem:[%s4683_s9 + $0x60] sm:$0xff]  ;;  %v237_v24 = vld [vmem:[%s4683_s9 + $0x68] sm:$0xff]  ;;  %v4732_v26 = vadd.f32 %v239_v22, %v238_v21 }
  0x21   : > { %258 = vrot.lane.b32.xlu0 %v4703_v12, %s4541_s10  ;;  %v4736_v27 = vadd.f32 %v237_v24, %v236_v23  ;;  %v594_v29 = vsel %vm500_vm1, %v464_v28, 0  ;;  %v4750_v30 = vld [vmem:[%s6134_s1 + $0x6] sm:$0x3]  ;;  %v343_v34 = vld [vmem:[#allocation2 + $0xc] sm:$0x8]  ;;  %vm2058_vm9 = vcmask 60416  }
  0x22   : > { %4223 = vmatpush3.bf16.msra.mxu1 %v594_v29  ;;  %v4754_v31 = vld [vmem:[#allocation2 + $0x4] sm:$0xf]  ;;  %v345_v37 = vld [vmem:[#allocation2 + $0x18] sm:$0x8]  ;;  %v374_v41 = vshrl.u32 %v343_v34, 16  ;;  %vm2259_vm10 = vcmask 1043456  }
  0x23   : > { %4395 = vmatprep.subr.msk.bf16.mxu1 %vm500_vm1, %v4750_v30  ;;  %v661_v33 = vld [vmem:[#allocation2 + $0x4] sm:$0xf]  ;;  %v366_v35 = vshrl.u32 %v4754_v31, 16  ;;  %v369_v42 = vshll.u32 %v4754_v31, 16  ;;  %v387_v43 = vshrl.u32 %v345_v37, 16  ;;  %vm2246_vm15 = vcmask 64512  }
  0x24   : > { %266 = vrot.lane.b32.xlu1 %v4714_v18, %s4541_s10  ;;  %v347_v38 = vld [vmem:[#allocation2 + $0x24] sm:$0x8]  ;;  %v681_v39 = vshrl.u32 %v661_v33, 16  ;;  %v684_v40 = vshll.u32 %v661_v33, 16  ;;  %v664_v48 = vld [vmem:[#allocation2 + $0x14] sm:$0x1] }
  0x25   : > { %264 = vrot.lane.b32.xlu0 %v4720_v20, %s4541_s10  ;;  %v400_v44 = vshrl.u32 %v347_v38, 16  ;;  %v4758_v45 = vrot.slane %v366_v35, 7  ;;  %v349_v51 = vld [vmem:[#allocation2 + $0x30] sm:$0x8]  ;;  %v894_v52 = vld [vmem:[#allocation2 + $0xc] sm:$0x8] }
  0x26   : > { %v341_v32 = vld [vmem:[#allocation2] sm:$0x8]  ;;  %v683_v49 = vrot.slane %v681_v39, 4  ;;  %v686_v50 = vrot.slane %v684_v40, 5  ;;  %v4765_v54 = vrot.slane %v374_v41, 11  ;;  %v4767_v57 = vrot.slane %v387_v43, 11 }
  0x27   : > { %v361_v36 = vshrl.u32 %v341_v32, 16  ;;  %v662_v47 = vld [vmem:[#allocation2 + $0x8] sm:$0x1]  ;;  %v351_v55 = vld [vmem:[#allocation2 + $0x3c] sm:$0x8]  ;;  %v4769_v58 = vrot.slane %v400_v44, 11 }
  0x28   : > { %270 = vrot.lane.b32.xlu1 %v4732_v26, %s4541_s10  ;;  %v666_v56 = vld [vmem:[#allocation2 + $0x20] sm:$0x1]  ;;  %v690_v59 = vshll.u32 %v662_v47, 16  ;;  %v704_v60 = vshll.u32 %v664_v48, 16  ;;  %v668_v61 = vld [vmem:[#allocation2 + $0x2c] sm:$0x1]  ;;  %v687_v3 = vor.u32 %v686_v50, %v683_v49 }
  0x29   : > { %268 = vrot.lane.b32.xlu0 %v4736_v27, %s4541_s10  ;;  %v4760_v46 = vrot.slane %v361_v36, 11  ;;  %v413_v62 = vshrl.u32 %v349_v51, 16  ;;  %v353_v63 = vld [vmem:[#allocation2 + $0x48] sm:$0x8]  ;;  %v896_v1 = vld [vmem:[#allocation2 + $0x18] sm:$0x8] }
  0x2a   : > { %v911_v2 = vshrl.u32 %v894_v52, 16  ;;  %v426_v5 = vshrl.u32 %v351_v55, 16  ;;  %v355_v6 = vld [vmem:[#allocation2 + $0x54] sm:$0x8]  ;;  %v718_v7 = vshll.u32 %v666_v56, 16  ;;  %v4771_v15 = vrot.slane %v690_v59, 5 }
  0x2b   : > { %v898_v9 = vld [vmem:[#allocation2 + $0x24] sm:$0x8]  ;;  %v670_v10 = vld [vmem:[#allocation2 + $0x38] sm:$0x1]  ;;  %v672_v13 = vld [vmem:[#allocation2 + $0x44] sm:$0x1] }
  0x2c   : > { %v900_v14 = vld [vmem:[#allocation2 + $0x30] sm:$0x8]  ;;  %v4773_v16 = vrot.slane %v704_v60, 5  ;;  %v439_v17 = vshrl.u32 %v353_v63, 16  ;;  %v732_v19 = vshll.u32 %v668_v61, 16  ;;  %v4775_v22 = vrot.slane %v413_v62, 11 }
  0x2d   : > { %v902_v21 = vld [vmem:[#allocation2 + $0x3c] sm:$0x8]  ;;  %v452_v23 = vshrl.u32 %v355_v6, 16  ;;  %v924_v24 = vshrl.u32 %v896_v1, 16  ;;  %v937_v25 = vshrl.u32 %v898_v9, 16  ;;  %v4777_v29 = vrot.slane %v687_v3, 4 }
  0x2e   : > { %v904_v28 = vld [vmem:[#allocation2 + $0x48] sm:$0x8]  ;;  %v4782_v32 = vld [vmem:[%s6134_s1 + $0x8] sm:$0x3]  ;;  %v746_v33 = vshll.u32 %v670_v10, 16  ;;  %v760_v34 = vshll.u32 %v672_v13, 16 }
  0x2f   : > { %v950_v35 = vshrl.u32 %v900_v14, 16  ;;  %v4784_v36 = vrot.slane %v426_v5, 11  ;;  %v4786_v37 = vrot.slane %v718_v7, 5  ;;  %v4788_v38 = vrot.slane %v911_v2, 11  ;;  %v674_v39 = vld [vmem:[#allocation2 + $0x50] sm:$0x1] }
  0x30   : > { %v963_v40 = vshrl.u32 %v902_v21, 16  ;;  %vm357_vm2 = vsmask.f32 256  ;;  %vm358_vm3 = vsmask.f32 4368  ;;  %v4792_v41 = vsel %vm500_vm1, %v4750_v30, 0 }
  0x31   : > { %v4794_v43 = vrot.slane %v439_v17, 11  ;;  %v4796_v44 = vrot.slane %v732_v19, 5  ;;  %v676_v47 = vld [vmem:[#allocation2 + $0x5c] sm:$0x1]  ;;  %v976_v48 = vshrl.u32 %v904_v28, 16  ;;  %v4798_v49 = vrot.slane %v452_v23, 11  ;;  %vm4847_vm6 = vmor %vm357_vm2, %vm358_vm3 }
  0x32   : > { %vm677_vm4 = vsmask.f32 3328  ;;  %vm678_vm5 = vsmask.f32 7440  ;;  %v4800_v50 = vrot.slane %v924_v24, 11  ;;  %v4804_v51 = vsel %vm500_vm1, %v4782_v32, 0 }
  0x33   : > { %v4806_v52 = vrot.slane %v937_v25, 11  ;;  %v906_v30 = vld [vmem:[#allocation2 + $0x54] sm:$0x8]  ;;  %v4808_v55 = vrot.slane %v746_v33, 5  ;;  %v4810_v56 = vrot.slane %v760_v34, 5  ;;  %v4812_v59 = vrot.slane %v950_v35, 11  ;;  %vm4861_vm7 = vmor %vm677_vm4, %vm678_vm5 }
  0x34   : > { %v774_v60 = vshll.u32 %v674_v39, 16  ;;  %v788_v61 = vshll.u32 %v676_v47, 16  ;;  %v4814_v62 = vrot.slane %v963_v40, 11  ;;  %v908_v63 = vld [vmem:[#allocation2 + $0x60] sm:$0x8]  ;;  %v4816_v2 = vrot.slane %v976_v48, 11 }
  0x35   : > { %v1227_v1 = vld [vmem:[#allocation2 + $0x14] sm:$0x1]  ;;  %v989_v3 = vshrl.u32 %v906_v30, 16  ;;  %v1229_v5 = vld [vmem:[#allocation2 + $0x20] sm:$0x1]  ;;  %v1002_v14 = vshrl.u32 %v908_v63, 16 }
  0x36   : > { %6151 = vst [vmem:[#allocation7_spill] sm:$0xff] %v4814_v62  ;;  %6152 = vst [vmem:[#allocation8_spill] sm:$0xff] %v4816_v2  ;;  %v1457_v6 = vld [vmem:[#allocation2 + $0x18] sm:$0x8]  ;;  %v4821_v7 = vld [vmem:[%s6134_s1 + $0xa] sm:$0x3] }
  0x37   : > { %v1231_v9 = vld [vmem:[#allocation2 + $0x2c] sm:$0x1]  ;;  %v1233_v10 = vld [vmem:[#allocation2 + $0x38] sm:$0x1]  ;;  %v4823_v13 = vrot.slane %v774_v60, 5  ;;  %v4825_v21 = vrot.slane %v788_v61, 5  ;;  %v4836_v61 = vor.u32 %v369_v42, %v4758_v45 }
  0x38   : > { %v1235_v17 = vld [vmem:[#allocation2 + $0x44] sm:$0x1]  ;;  %v1459_v19 = vld [vmem:[#allocation2 + $0x24] sm:$0x8]  ;;  %v1252_v23 = vshll.u32 %v1227_v1, 16  ;;  %v1266_v24 = vshll.u32 %v1229_v5, 16 }
  0x39   : > { %v1237_v25 = vld [vmem:[#allocation2 + $0x50] sm:$0x1]  ;;  %v1474_v28 = vshrl.u32 %v1457_v6, 16  ;;  %v4829_v33 = vsel %vm500_vm1, %v4821_v7, 0  ;;  %v4831_v34 = vrot.slane %v989_v3, 11  ;;  %v1280_v35 = vshll.u32 %v1231_v9, 16 }
  0x3a   : > { %v1294_v39 = vshll.u32 %v1233_v10, 16  ;;  %v1461_v40 = vld [vmem:[#allocation2 + $0x30] sm:$0x8]  ;;  %v1308_v47 = vshll.u32 %v1235_v17, 16  ;;  %v1487_v48 = vshrl.u32 %v1459_v19, 16  ;;  %v4838_v63 = vrot.slane %v1002_v14, 11 }
  0x3b   : > { %6153 = vst [vmem:[#allocation9_spill] sm:$0xff] %v4831_v34  ;;  %v1239_v30 = vld [vmem:[#allocation2 + $0x5c] sm:$0x1]  ;;  %v1463_v60 = vld [vmem:[#allocation2 + $0x3c] sm:$0x8]  ;;  %v1322_v3 = vshll.u32 %v1237_v25, 16 }
  0x3c   : > { %6154 = vst [vmem:[#allocation10_spill] sm:$0xff] %v4838_v63  ;;  %v4843_v1 = vld [vmem:[%s6134_s1 + $0xc] sm:$0x3]  ;;  %v1241_v5 = vld [vmem:[#allocation2 + $0x68] sm:$0x1]  ;;  %v4851_v9 = vrot.slane %v1252_v23, 5 }
  0x3d   : > { %v4853_v10 = vrot.slane %v1266_v24, 5  ;;  %v4855_v42 = vrot.slane %v1474_v28, 11  ;;  %v1500_v45 = vshrl.u32 %v1461_v40, 16  ;;  %v4857_v14 = vld [vmem:[#allocation2 + $0x70] sm:$0xf]  ;;  %v4865_v19 = vrot.slane %v1280_v35, 5 }
  0x3e   : > { %6157 = vst [vmem:[#allocation11_spill] sm:$0xff] %v4851_v9  ;;  %6160 = vst [vmem:[#allocation14_spill] sm:$0xff] %v4857_v14  ;;  %v4867_v25 = vrot.slane %v1294_v39, 5  ;;  %v1336_v0 = vshll.u32 %v1239_v30, 16  ;;  %v1513_v23 = vshrl.u32 %v1463_v60, 16  ;;  %v4871_v28 = vsel %vm500_vm1, %v4843_v1, 0 }
  0x3f   : > { %6158 = vst [vmem:[#allocation12_spill] sm:$0xff] %v4853_v10  ;;  %6159 = vst [vmem:[#allocation13_spill] sm:$0xff] %v4855_v42  ;;  %v1465_v9 = vld [vmem:[#allocation2 + $0x48] sm:$0x8]  ;;  %v4873_v40 = vrot.slane %v1308_v47, 5  ;;  %v4875_v42 = vrot.slane %v1487_v48, 11 }
  0x40   : > { %6163 = vst [vmem:[#allocation15_spill] sm:$0xff] %v4865_v19  ;;  %6164 = vst [vmem:[#allocation16_spill] sm:$0xff] %v4867_v25  ;;  %v4880_v10 = vld [vmem:[%s6134_s1 + $0xe] sm:$0x3]  ;;  %v1350_v35 = vshll.u32 %v1241_v5, 16  ;;  %v4887_v25 = vrot.slane %v1322_v3, 5 }
  0x41   : > { %6165 = vst [vmem:[#allocation17_spill] sm:$0xff] %v4871_v28  ;;  %6166 = vst [vmem:[#allocation18_spill] sm:$0xff] %v4873_v40  ;;  %v4892_v47 = vld [vmem:[%s6134_s1 + $0x10] sm:$0x3]  ;;  %v1471_v48 = vld [vmem:[#allocation2 + $0x6c] sm:$0x8] }
  0x42   : > { %6167 = vst [vmem:[#allocation19_spill] sm:$0xff] %v4875_v42  ;;  %6168 = vst [vmem:[#allocation20_spill] sm:$0xff] %v4880_v10  ;;  %v1570_v42 = vshrl.u32 %v4857_v14, 16  ;;  %v1526_v60 = vshrl.u32 %v1465_v9, 16  ;;  %v1790_v3 = vld [vmem:[#allocation2 + $0x20] sm:$0x1] }
  0x43   : > { %6169 = vst [vmem:[#allocation21_spill] sm:$0xff] %v4887_v25  ;;  %6170 = vst [vmem:[#allocation22_spill] sm:$0xff] %v4892_v47  ;;  %v1792_v25 = vld [vmem:[#allocation2 + $0x2c] sm:$0x1]  ;;  %v4904_v19 = vsel %vm500_vm1, %v4880_v10, 0  ;;  %v4906_v28 = vrot.slane %v1336_v0, 5 }
  0x44   : > { %6172 = vst [vmem:[#allocation24_spill] sm:$0xff] %v4904_v19  ;;  %v4908_v63 = vrot.slane %v1513_v23, 11  ;;  %v4910_v2 = vrot.slane %v1350_v35, 5  ;;  %v1469_v9 = vld [vmem:[#allocation2 + $0x60] sm:$0x8]  ;;  %v1572_v19 = vrot.slane %v1570_v42, 7 }
  0x45   : > { %6173 = vst [vmem:[#allocation25_spill] sm:$0xff] %v4906_v28  ;;  %v1573_v0 = vshll.u32 %v4857_v14, 16  ;;  %v1794_v23 = vld [vmem:[#allocation2 + $0x38] sm:$0x1]  ;;  %v4919_v35 = vrot.slane %v1526_v60, 11  ;;  %s215_s17 = sand.u32 1, %s4530_s19  }
  0x46   : > { %6174 = vst [vmem:[#allocation26_spill] sm:$0xff] %v4908_v63  ;;  %6175 = vst [vmem:[#allocation27_spill] sm:$0xff] %v4910_v2  ;;  %v1796_v63 = vld [vmem:[#allocation2 + $0x44] sm:$0x1]  ;;  %v1798_v62 = vld [vmem:[#allocation2 + $0x50] sm:$0x1] }
  0x47   : > { %6177 = vst [vmem:[#allocation29_spill] sm:$0xff] %v4919_v35  ;;  %s3902_s26 = sshll.u32 %s215_s17, 6  ;;  %s4121_s6 = sshll.u32 %s4596_s22, 10 }
  0x48   : > { %s6057_s30 = scalar_lea.vmem [#allocation4], %s3902_s26  ;;  %s6085_s10 = scalar_lea.hbm %s6138_s5, %s4121_s6 }
  0x49   : > { %s3836_s7 = sshll.u32 %s6057_s30, 4  ;;  %s6093_s22 = scalar_lea.sflag [#allocation5], %s215_s17  ;;  %s6087_s7 = int_to_ptr.vmem [resolvable:$true] %s3836_s7 }
  0x4a   : > { %s4478_s11 = scalar_lea.vmem %s6087_s7, 1024  ;;  %s4542_s12 = smov [#allocation4]  }
  0x4b   : > { %p4479_p11 = scmp.ne.s32.totalorder %s6087_s7, %s4478_s11  ;;  %s4482_s13 = sshll.u32 %s4542_s12, 4  ;;  %s4483_s13 = int_to_ptr.vmem [resolvable:$false] %s4482_s13 }
  0x4c   : > { %s4484_s14 = scalar_lea.vmem %s4483_s13, 2048  ;;  %p4485_p0 = scmp.lt.s32.totalorder %s6087_s7, %s4483_s13 }
  0x4d   : > { %p4480_p12 = pnand %p4479_p11, %p4613_p5  ;;  %p4486_p1 = scmp.lt.s32.totalorder %s4484_s14, %s4478_s11 }
  0x4f   : > { %p4481_p13 = pneg %p4480_p12  ;;  %p4487_p2 = por %p4486_p1, %p4485_p0 }
  0x51   : > { %p4488_p3 = pnand %p4487_p2, %p4481_p13 }
  0x8e   : > { %v261_v24 = vpop.permute.xlu1 %260 }
  0x8f   : > { %v282_v39 = vadd.f32 %v261_v24, %v4688_v4  ;;  %v257_v30 = vpop.permute.xlu0 %256  ;;  %v4900_v24 = vrot.slane %v1500_v45, 11  ;;  %v4914_v45 = vsel %vm500_vm1, %v4892_v47, 0  ;;  %v1565_v4 = vshrl.u32 %v1471_v48, 16 }
  0x90   : > { %v280_v5 = vadd.f32 %v257_v30, %v4693_v8  ;;  %v1467_v8 = vld [vmem:[#allocation2 + $0x54] sm:$0x8]  ;;  %6176 = vst [vmem:[#allocation28_spill] sm:$0xff] %v4914_v45  ;;  %v1815_v48 = vshll.u32 %v1790_v3, 16  ;;  %v1871_v3 = vshll.u32 %v1798_v62, 16 }
  0x91   : > { %6171 = vst [vmem:[#allocation23_spill] sm:$0xff] %v4900_v24  ;;  %v290_v40 = vmul.f32 0.25, %v282_v39  ;;  %v1539_v2 = vshrl.u32 %v1467_v8, 16 }
  0x92   : > { %v288_v30 = vmul.f32 0.25, %v280_v5  ;;  %v263_v34 = vpop.permute.xlu1 %262 }
  0x93   : > { %v326_v39 = vpack.c.bf16 %v290_v40, %v290_v40  ;;  %v283_v24 = vadd.f32 %v263_v34, %v4699_v11  ;;  %v259_v10 = vpop.permute.xlu0 %258  ;;  %v1552_v40 = vshrl.u32 %v1469_v9, 16  ;;  %v1829_v11 = vshll.u32 %v1792_v25, 16  ;;  %v4922_v34 = vld [vmem:[#allocation2 + $0x70] sm:$0xf] }
  0x94   : > { %v324_v28 = vpack.c.bf16 %v288_v30, %v288_v30  ;;  %v281_v5 = vadd.f32 %v259_v10, %v4703_v12  ;;  %v4925_v30 = vrot.slane %v1565_v4, 11  ;;  %v1843_v12 = vshll.u32 %v1794_v23, 16 }
  0x95   : > { %335 = vst.msk [vmem:[#allocation2 + $0x28] sm:$0xf] %vm296_vm0, %v326_v39  ;;  %v291_v45 = vmul.f32 0.25, %v283_v24  ;;  %v1857_v10 = vshll.u32 %v1796_v63, 16  ;;  %v4928_v39 = vor.u32 %v1573_v0, %v1572_v19  ;;  %v4930_v24 = vld [vmem:[#allocation2 + $0x5c] sm:$0x1] }
  0x96   : > { %333 = vst.msk [vmem:[#allocation2 + $0x10] sm:$0xf] %vm296_vm0, %v324_v28  ;;  %v289_v42 = vmul.f32 0.25, %v281_v5  ;;  %v267_v14 = vpop.permute.xlu1 %266  ;;  %6178 = vst [vmem:[#allocation30_spill] sm:$0xff] %v4930_v24  ;;  %v4933_v47 = vrot.slane %v1539_v2, 11  ;;  %v1904_v28 = vshrl.u32 %v4922_v34, 16 }
  0x97   : > { %v327_v60 = vpack.c.bf16 %v291_v45, %v291_v45  ;;  %v285_v8 = vadd.f32 %v267_v14, %v4714_v18  ;;  %v265_v35 = vpop.permute.xlu0 %264  ;;  %v4937_v63 = vrot.slane %v1552_v40, 11  ;;  %v4939_v45 = vrot.slane %v1815_v48, 5 }
  0x98   : > { %v325_v25 = vpack.c.bf16 %v289_v42, %v289_v42  ;;  %v284_v9 = vadd.f32 %v265_v35, %v4720_v20  ;;  %v4941_v18 = vrot.slane %v1829_v11, 5  ;;  %v4944_v19 = vrot.slane %v1843_v12, 5 }
  0x99   : > { %336 = vst.msk [vmem:[#allocation2 + $0x34] sm:$0xf] %vm296_vm0, %v327_v60  ;;  %v293_v4 = vmul.f32 0.25, %v285_v8  ;;  %v4946_v20 = vrot.slane %v1857_v10, 5  ;;  %v4954_v40 = vrot.slane %v1871_v3, 5  ;;  %v4957_v10 = vrot.slane %v1904_v28, 4 }
  0x9a   : > { %6179 = vst [vmem:[#allocation31_spill] sm:$0xff] %v4941_v18  ;;  %334 = vst.msk [vmem:[#allocation2 + $0x1c] sm:$0xf] %vm296_vm0, %v325_v25  ;;  %v292_v14 = vmul.f32 0.25, %v284_v9  ;;  %v271_v62 = vpop.permute.xlu1 %270 }
  0x9b   : > { %6180 = vst [vmem:[#allocation32_spill] sm:$0xff] %v4944_v19  ;;  %6181 = vst [vmem:[#allocation33_spill] sm:$0xff] %v4946_v20  ;;  %v329_v0 = vpack.c.bf16 %v293_v4, %v293_v4  ;;  %v287_v23 = vadd.f32 %v271_v62, %v4732_v26  ;;  %v269_v5 = vpop.permute.xlu0 %268 }
  0x9c   : > { %6182 = vst [vmem:[#allocation34_spill] sm:$0xff] %v4954_v40  ;;  %v328_v48 = vpack.c.bf16 %v292_v14, %v292_v14  ;;  %v286_v11 = vadd.f32 %v269_v5, %v4736_v27  ;;  %v348_v42 = vld [vmem:[#allocation2 + $0x28] sm:$0xf]  ;;  %6183 = vst [vmem:[#allocation35_spill] sm:$0xff] %v4957_v10 }
  0x9d   : > { %v667_v12 = vld [vmem:[#allocation2 + $0x28] sm:$0xf]  ;;  %338 = vst.msk [vmem:[#allocation2 + $0x4c] sm:$0xf] %vm296_vm0, %v329_v0  ;;  %v295_v26 = vmul.f32 0.25, %v287_v23  ;;  %v405_v25 = vshrl.u32 %v348_v42, 16 }
  0x9e   : > { %v344_v8 = vld [vmem:[#allocation2 + $0x10] sm:$0xf]  ;;  %v408_v9 = vshll.u32 %v348_v42, 16  ;;  %v723_v4 = vshrl.u32 %v667_v12, 16  ;;  %337 = vst.msk [vmem:[#allocation2 + $0x40] sm:$0xf] %vm296_vm0, %v328_v48 }
  0x9f   : > { %v294_v3 = vmul.f32 0.25, %v286_v11  ;;  %v379_v62 = vshrl.u32 %v344_v8, 16  ;;  %v382_v14 = vshll.u32 %v344_v8, 16  ;;  %v3914_v27 = vcombine.low %v4754_v31, %v344_v8  ;;  %v663_v5 = vld [vmem:[#allocation2 + $0x10] sm:$0xf] }
  0xa0   : > { %v331_v2 = vpack.c.bf16 %v295_v26, %v295_v26  ;;  %v407_v28 = vrot.slane %v405_v25, 7  ;;  %v695_v35 = vshrl.u32 %v663_v5, 16  ;;  %v698_v40 = vshll.u32 %v663_v5, 16  ;;  %v350_v0 = vld [vmem:[#allocation2 + $0x34] sm:$0xf] }
  0xa1   : > { %v330_v60 = vpack.c.bf16 %v294_v3, %v294_v3  ;;  %v381_v10 = vrot.slane %v379_v62, 7  ;;  %4214 = vmatprep.mubr.msk.bf16.mxu0 %vm487_vm8, %v3914_v27  ;;  %v725_v23 = vrot.slane %v723_v4, 4  ;;  %v726_v20 = vshll.u32 %v667_v12, 16  ;;  %v346_v48 = vld [vmem:[#allocation2 + $0x1c] sm:$0xf] }
  0xa2   : > { %340 = vst.msk [vmem:[#allocation2 + $0x64] sm:$0xf] %vm296_vm0, %v331_v2  ;;  %v418_v11 = vshrl.u32 %v350_v0, 16  ;;  %v421_v19 = vshll.u32 %v350_v0, 16  ;;  %v410_v24 = vor.u32 %v408_v9, %v407_v28  ;;  %v697_v18 = vrot.slane %v695_v35, 4 }
  0xa3   : > { %339 = vst.msk [vmem:[#allocation2 + $0x58] sm:$0xf] %vm296_vm0, %v330_v60  ;;  %v392_v31 = vshrl.u32 %v346_v48, 16  ;;  %v395_v26 = vshll.u32 %v346_v48, 16  ;;  %v3915_v8 = vcombine.low %v346_v48, %v348_v42  ;;  %v384_v25 = vor.u32 %v382_v14, %v381_v10  ;;  %v665_v3 = vld [vmem:[#allocation2 + $0x1c] sm:$0xf] }
  0xa4   : > { %v420_v62 = vrot.slane %v418_v11, 7  ;;  %v411_v4 = vsel %vm4847_vm6, %v4769_v58, %v410_v24  ;;  %v700_v12 = vrot.slane %v698_v40, 5  ;;  %v709_v27 = vshrl.u32 %v665_v3, 16  ;;  %v354_v60 = vld [vmem:[#allocation2 + $0x4c] sm:$0xf] }
  0xa5   : > { %v394_v2 = vrot.slane %v392_v31, 7  ;;  %4215 = vmatmul.mubr.msk.bf16.vlgmr.msra.gmra.mxu0 %vm487_vm8, %v3915_v8  ;;  %v385_v35 = vsel %vm4847_vm6, %v4765_v54, %v384_v25  ;;  %v712_v9 = vshll.u32 %v665_v3, 16  ;;  %v728_v5 = vrot.slane %v726_v20, 5  ;;  %v352_v24 = vld [vmem:[#allocation2 + $0x40] sm:$0xf] }
  0xa6   : > { %4233 = vmatpush3.bf16.msra.mxu0 %v4763_v53  ;;  %v6184_v42 = vsel %vm4847_vm6, %v4760_v46, %v4836_v61  ;;  %v444_v40 = vshrl.u32 %v354_v60, 16  ;;  %v447_v10 = vshll.u32 %v354_v60, 16  ;;  %v701_v14 = vor.u32 %v700_v12, %v697_v18  ;;  %v4994_v12 = vld [vmem:[#allocation2 + $0x1c] sm:$0xf] }
  0xa7   : > { %v3922_v58 = vcombine.low %v6184_v42, %v385_v35  ;;  %v431_v28 = vshrl.u32 %v352_v24, 16  ;;  %v434_v48 = vshll.u32 %v352_v24, 16  ;;  %v3916_v11 = vcombine.low %v350_v0, %v352_v24  ;;  %4396 = vmatprep.subr.msk.bf16.mxu0 %vm500_vm1, %v4782_v32 }
  0xa8   : > { %v397_v31 = vor.u32 %v395_v26, %v394_v2  ;;  %v446_v53 = vrot.slane %v444_v40, 7  ;;  %v702_v54 = vrot.slane %v701_v14, 4  ;;  %v423_v20 = vor.u32 %v421_v19, %v420_v62  ;;  %v4992_v62 = vld [vmem:[#allocation2 + $0x10] sm:$0xf] }
  0xa9   : > { %4224 = vmatprep.mubr.msk.bf16.mxu1 %vm487_vm8, %v3922_v58  ;;  %v711_v8 = vrot.slane %v709_v27, 4  ;;  %v433_v25 = vrot.slane %v431_v28, 7  ;;  %4218 = vmatprep.mubr.msk.bf16.mxu0 %vm487_vm8, %v3916_v11  ;;  %v714_v61 = vrot.slane %v712_v9, 5  ;;  %v729_v18 = vor.u32 %v728_v5, %v725_v23  ;;  %v669_v5 = vld [vmem:[#allocation2 + $0x34] sm:$0xf] }
  0xaa   : > { %v398_v46 = vsel %vm4847_vm6, %v4767_v57, %v397_v31  ;;  %v356_v26 = vld [vmem:[#allocation2 + $0x58] sm:$0xf]  ;;  %v707_v32 = vsel %vm4861_vm7, %v702_v54, %v4773_v16  ;;  %v424_v19 = vsel %vm4847_vm6, %v4775_v22, %v423_v20  ;;  %v449_v3 = vor.u32 %v447_v10, %v446_v53  ;;  %v671_v58 = vld [vmem:[#allocation2 + $0x40] sm:$0xf]  ;;  %v5023_v54 = vld [vmem:[#allocation2 + $0x28] sm:$0xf] }
  0xab   : > { %v3923_v0 = vcombine.low %v398_v46, %v411_v4  ;;  %v457_v27 = vshrl.u32 %v356_v26, 16  ;;  %v460_v2 = vshll.u32 %v356_v26, 16  ;;  %v3917_v57 = vcombine.low %v354_v60, %v356_v26 }
  0xac   : > { %v6185_v23 = vsel %vm4861_vm7, %v4777_v29, %v4771_v15  ;;  %v436_v16 = vor.u32 %v434_v48, %v433_v25  ;;  %v450_v22 = vsel %vm4847_vm6, %v4794_v43, %v449_v3  ;;  %v715_v35 = vor.u32 %v714_v61, %v711_v8  ;;  %v5029_v25 = vld [vmem:[#allocation2 + $0x34] sm:$0xf]  ;;  %v675_v3 = vld [vmem:[#allocation2 + $0x58] sm:$0xf] }
  0xad   : > { %v3931_v4 = vcombine.low %v6185_v23, %v707_v32  ;;  %4225 = vmatmul.mubr.msk.bf16.vlgmr.msra.gmra.mxu1 %vm487_vm8, %v3923_v0  ;;  %v730_v9 = vrot.slane %v729_v18, 4  ;;  %v459_v42 = vrot.slane %v457_v27, 7  ;;  %4219 = vmatmul.mubr.msk.bf16.gmra.mxu0 %vm487_vm8, %v3917_v57  ;;  %v916_v60 = vshrl.u32 %v4992_v62, 16  ;;  %v673_v0 = vld [vmem:[#allocation2 + $0x4c] sm:$0xf] }
  0xae   : > { %4243 = vmatpush3.bf16.msra.mxu1 %v4792_v41  ;;  %v919_v15 = vshll.u32 %v4992_v62, 16  ;;  %v929_v29 = vshrl.u32 %v4994_v12, 16  ;;  %v437_v43 = vsel %vm4847_vm6, %v4784_v36, %v436_v16  ;;  %v716_v24 = vrot.slane %v715_v35, 4 }
  0xaf   : > { %4234 = vmatprep.mubr.msk.bf16.mxu0 %vm487_vm8, %v3931_v4  ;;  %v735_v40 = vsel %vm4861_vm7, %v730_v9, %v4796_v44  ;;  %v932_v41 = vshll.u32 %v4994_v12, 16  ;;  %4397 = vmatprep.subr.msk.bf16.mxu1 %vm500_vm1, %v4821_v7  ;;  %v3924_v10 = vcombine.low %v424_v19, %v437_v43  ;;  %v462_v14 = vor.u32 %v460_v2, %v459_v42  ;;  %v5045_v42 = vld [vmem:[#allocation2 + $0x40] sm:$0xf]  ;;  %v5047_v43 = vld [vmem:[#allocation2 + $0x4c] sm:$0xf] }
  0xb0   : > { %v918_v28 = vrot.slane %v916_v60, 7  ;;  %v931_v48 = vrot.slane %v929_v29, 7  ;;  %v721_v11 = vsel %vm4861_vm7, %v716_v24, %v4786_v37  ;;  %v737_v31 = vshrl.u32 %v669_v5, 16 }
  0xb1   : > { %v740_v36 = vshll.u32 %v669_v5, 16  ;;  %v751_v53 = vshrl.u32 %v671_v58, 16  ;;  %4228 = vmatprep.mubr.msk.bf16.mxu1 %vm487_vm8, %v3924_v10  ;;  %v463_v44 = vsel %vm4847_vm6, %v4798_v49, %v462_v14  ;;  %v3932_v7 = vcombine.low %v721_v11, %v735_v40 }
  0xb2   : > { %v921_v20 = vor.u32 %v919_v15, %v918_v28  ;;  %v934_v8 = vor.u32 %v932_v41, %v931_v48  ;;  %v3925_v46 = vcombine.low %v450_v22, %v463_v44  ;;  %v739_v61 = vrot.slane %v737_v31, 4 }
  0xb3   : > { %v742_v18 = vrot.slane %v740_v36, 5  ;;  %v753_v37 = vrot.slane %v751_v53, 4  ;;  %v754_v19 = vshll.u32 %v671_v58, 16  ;;  %v942_v49 = vshrl.u32 %v5023_v54, 16  ;;  %v5063_v36 = vld [vmem:[#allocation2 + $0x58] sm:$0xf] }
  0xb4   : > { %v922_v26 = vsel %vm4847_vm6, %v4788_v38, %v921_v20  ;;  %v935_v32 = vsel %vm4847_vm6, %v4800_v50, %v934_v8  ;;  %v945_v57 = vshll.u32 %v5023_v54, 16  ;;  %v955_v23 = vshrl.u32 %v5029_v25, 16  ;;  %v5068_v20 = vld [vmem:[#allocation2 + $0x64] sm:$0xf] }
  0xb5   : > { %4229 = vmatmul.mubr.msk.bf16.gmra.mxu1 %vm487_vm8, %v3925_v46  ;;  %v3948_v27 = vcombine.low %v922_v26, %v935_v32  ;;  %v743_v2 = vor.u32 %v742_v18, %v739_v61  ;;  %4235 = vmatmul.mubr.msk.bf16.vlgmr.msra.gmra.mxu0 %vm487_vm8, %v3932_v7  ;;  %v756_v4 = vrot.slane %v754_v19, 5  ;;  %v944_v38 = vrot.slane %v942_v49, 7 }
  0xb6   : > { %v958_v16 = vshll.u32 %v5029_v25, 16  ;;  %v765_v22 = vshrl.u32 %v673_v0, 16  ;;  %4253 = vmatpush3.bf16.msra.mxu0 %v4804_v51  ;;  %v957_v35 = vrot.slane %v955_v23, 7  ;;  %v768_v9 = vshll.u32 %v673_v0, 16  ;;  %v6187_v23 = vld [vmem:[#allocation20_spill] sm:$0xff] }
  0xb7   : > { %4244 = vmatprep.mubr.msk.bf16.mxu1 %vm487_vm8, %v3948_v27  ;;  %v744_v50 = vrot.slane %v743_v2, 4  ;;  %v779_v5 = vshrl.u32 %v675_v3, 16  ;;  %v757_v60 = vor.u32 %v756_v4, %v753_v37  ;;  %v947_v15 = vor.u32 %v945_v57, %v944_v38  ;;  %4398 = vmatprep.subr.msk.bf16.mxu0 %vm500_vm1, %v4843_v1  ;;  %v6188_v4 = vld [vmem:[#allocation8_spill] sm:$0xff] }
  0xb8   : > { %v767_v29 = vrot.slane %v765_v22, 4  ;;  %v782_v58 = vshll.u32 %v675_v3, 16  ;;  %v960_v51 = vor.u32 %v958_v16, %v957_v35  ;;  %v770_v40 = vrot.slane %v768_v9, 5  ;;  %v1226_v3 = vld [vmem:[#allocation2 + $0x10] sm:$0xf] }
  0xb9   : > { %v749_v24 = vsel %vm4861_vm7, %v744_v50, %v4808_v55  ;;  %v781_v41 = vrot.slane %v779_v5, 4  ;;  %v758_v10 = vrot.slane %v757_v60, 4  ;;  %v948_v14 = vsel %vm4847_vm6, %v4806_v52, %v947_v15  ;;  %v1230_v22 = vld [vmem:[#allocation2 + $0x28] sm:$0xf] }
  0xba   : > { %v784_v28 = vrot.slane %v782_v58, 5  ;;  %v968_v48 = vshrl.u32 %v5045_v42, 16  ;;  %v961_v11 = vsel %vm4847_vm6, %v4812_v59, %v960_v51  ;;  %v771_v1 = vor.u32 %v770_v40, %v767_v29  ;;  %v6189_v51 = vld [vmem:[#allocation9_spill] sm:$0xff] }
  0xbb   : > { %v971_v31 = vshll.u32 %v5045_v42, 16  ;;  %v981_v55 = vshrl.u32 %v5047_v43, 16  ;;  %v763_v53 = vsel %vm4861_vm7, %v758_v10, %v4810_v56  ;;  %v3949_v44 = vcombine.low %v948_v14, %v961_v11  ;;  %v6190_v10 = vld [vmem:[#allocation10_spill] sm:$0xff] }
  0xbc   : > { %v785_v52 = vor.u32 %v784_v28, %v781_v41  ;;  %v970_v7 = vrot.slane %v968_v48, 7  ;;  %v3933_v8 = vcombine.low %v749_v24, %v763_v53  ;;  %v772_v46 = vrot.slane %v771_v1, 4  ;;  %v1232_v24 = vld [vmem:[#allocation2 + $0x34] sm:$0xf]  ;;  %v1236_v53 = vld [vmem:[#allocation2 + $0x4c] sm:$0xf] }
  0xbd   : > { %v983_v61 = vrot.slane %v981_v55, 7  ;;  %v984_v59 = vshll.u32 %v5047_v43, 16  ;;  %4245 = vmatmul.mubr.msk.bf16.vlgmr.msra.gmra.mxu1 %vm487_vm8, %v3949_v44  ;;  %v3957_v0 = vcombine.low %v4992_v62, %v4994_v12  ;;  %v994_v26 = vshrl.u32 %v5063_v36, 16  ;;  %v6186_v12 = vld [vmem:[#allocation7_spill] sm:$0xff] }
  0xbe   : > { %v786_v18 = vrot.slane %v785_v52, 4  ;;  %v973_v37 = vor.u32 %v971_v31, %v970_v7  ;;  %4238 = vmatprep.mubr.msk.bf16.mxu0 %vm487_vm8, %v3933_v8  ;;  %v777_v56 = vsel %vm4861_vm7, %v772_v46, %v4823_v13  ;;  %4263 = vmatpush3.bf16.msra.mxu1 %v4829_v33  ;;  %v997_v19 = vshll.u32 %v5063_v36, 16  ;;  %v1228_v13 = vld [vmem:[#allocation2 + $0x1c] sm:$0xf] }
  0xbf   : > { %v986_v32 = vor.u32 %v984_v59, %v983_v61  ;;  %v1007_v49 = vshrl.u32 %v5068_v20, 16  ;;  %v996_v2 = vrot.slane %v994_v26, 7  ;;  %v1010_v57 = vshll.u32 %v5068_v20, 16  ;;  %4399 = vmatprep.subr.msk.bf16.mxu1 %vm500_vm1, %v6187_v23 }
  0xc0   : > { %v791_v62 = vsel %vm4861_vm7, %v786_v18, %v4825_v21  ;;  %v974_v27 = vsel %vm4847_vm6, %v6186_v12, %v973_v37  ;;  %v3958_v21 = vcombine.low %v5023_v54, %v5029_v25  ;;  %v1243_v9 = vshrl.u32 %v1226_v3, 16 }
  0xc1   : > { %v3934_v33 = vcombine.low %v777_v56, %v791_v62  ;;  %v987_v38 = vsel %vm4847_vm6, %v6188_v4, %v986_v32  ;;  %v1009_v16 = vrot.slane %v1007_v49, 7  ;;  %v999_v35 = vor.u32 %v997_v19, %v996_v2  ;;  %v5110_v32 = vld [vmem:[#allocation2 + $0x1c] sm:$0xf]  ;;  %v6191_v19 = vld [vmem:[#allocation11_spill] sm:$0xff] }
  0xc2   : > { %v3950_v50 = vcombine.low %v974_v27, %v987_v38  ;;  %v1246_v5 = vshll.u32 %v1226_v3, 16  ;;  %v1257_v15 = vshrl.u32 %v1228_v13, 16  ;;  %v1260_v29 = vshll.u32 %v1228_v13, 16 }
  0xc3   : > { %4239 = vmatmul.mubr.msk.bf16.gmra.mxu0 %vm487_vm8, %v3934_v33  ;;  %v1012_v60 = vor.u32 %v1010_v57, %v1009_v16  ;;  %v3959_v58 = vcombine.low %v5045_v42, %v5047_v43  ;;  %v1000_v54 = vsel %vm4847_vm6, %v6189_v51, %v999_v35  ;;  %v1245_v25 = vrot.slane %v1243_v9, 4  ;;  %v1234_v42 = vld [vmem:[#allocation2 + $0x40] sm:$0xf]  ;;  %v1240_v51 = vld [vmem:[#allocation2 + $0x64] sm:$0xf] }
  0xc4   : > { %4248 = vmatprep.mubr.msk.bf16.mxu1 %vm487_vm8, %v3950_v50  ;;  %4254 = vmatprep.mubr.msk.bf16.mxu0 %vm487_vm8, %v3957_v0  ;;  %v1248_v40 = vrot.slane %v1246_v5, 5  ;;  %v1271_v41 = vshrl.u32 %v1230_v22, 16  ;;  %v1259_v28 = vrot.slane %v1257_v15, 4  ;;  %v1262_v48 = vrot.slane %v1260_v29, 5  ;;  %v6193_v33 = vld [vmem:[#allocation17_spill] sm:$0xff]  ;;  %v6194_v50 = vld [vmem:[#allocation15_spill] sm:$0xff] }
  0xc5   : > { %v1013_v14 = vsel %vm4847_vm6, %v6190_v10, %v1012_v60  ;;  %v1274_v11 = vshll.u32 %v1230_v22, 16  ;;  %v1285_v55 = vshrl.u32 %v1232_v24, 16  ;;  %v1288_v7 = vshll.u32 %v1232_v24, 16  ;;  %v1238_v22 = vld [vmem:[#allocation2 + $0x58] sm:$0xf]  ;;  %v6195_v60 = vld [vmem:[#allocation22_spill] sm:$0xff] }
  0xc6   : > { %v3951_v43 = vcombine.low %v1000_v54, %v1013_v14  ;;  %v1249_v1 = vor.u32 %v1248_v40, %v1245_v25  ;;  %v1273_v31 = vrot.slane %v1271_v41, 4  ;;  %v1263_v44 = vor.u32 %v1262_v48, %v1259_v28  ;;  %v6196_v54 = vld [vmem:[#allocation16_spill] sm:$0xff]  ;;  %v5136_v14 = vld [vmem:[#allocation2 + $0x34] sm:$0xf]  ;;  %v6197_v48 = vld [vmem:[#allocation18_spill] sm:$0xff] }
  0xc7   : > { %v1276_v52 = vrot.slane %v1274_v11, 5  ;;  %v3960_v8 = vcombine.low %v5063_v36, %v5068_v20  ;;  %v1287_v61 = vrot.slane %v1285_v55, 4  ;;  %v1299_v59 = vshrl.u32 %v1234_v42, 16  ;;  %v5115_v36 = vld [vmem:[#allocation2 + $0x28] sm:$0xf]  ;;  %v6192_v20 = vld [vmem:[#allocation12_spill] sm:$0xff] }
  0xc8   : > { %4249 = vmatmul.mubr.msk.bf16.gmra.mxu1 %vm487_vm8, %v3951_v43  ;;  %v1250_v46 = vrot.slane %v1249_v1, 4  ;;  %v1302_v18 = vshll.u32 %v1234_v42, 16  ;;  %v1264_v37 = vrot.slane %v1263_v44, 4  ;;  %v1290_v26 = vrot.slane %v1288_v7, 5  ;;  %v6198_v44 = vld [vmem:[#allocation21_spill] sm:$0xff] }
  0xc9   : > { %v1277_v0 = vor.u32 %v1276_v52, %v1273_v31  ;;  %v1313_v56 = vshrl.u32 %v1236_v53, 16  ;;  %v1301_v3 = vrot.slane %v1299_v59, 4  ;;  %v1316_v12 = vshll.u32 %v1236_v53, 16  ;;  %v6199_v7 = vld [vmem:[#allocation13_spill] sm:$0xff] }
  0xca   : > { %v1255_v49 = vsel %vm4861_vm7, %v1250_v46, %v6191_v19  ;;  %v1304_v62 = vrot.slane %v1302_v18, 5  ;;  %v1269_v27 = vsel %vm4861_vm7, %v1264_v37, %v6192_v20  ;;  %v1291_v57 = vor.u32 %v1290_v26, %v1287_v61  ;;  %v5148_v59 = vld [vmem:[#allocation2 + $0x40] sm:$0xf] }
  0xcb   : > { %4255 = vmatmul.mubr.msk.bf16.vlgmr.msra.gmra.mxu0 %vm487_vm8, %v3958_v21  ;;  %v1278_v2 = vrot.slane %v1277_v0, 4  ;;  %v1315_v13 = vrot.slane %v1313_v56, 4  ;;  %v3966_v23 = vcombine.low %v1255_v49, %v1269_v27  ;;  %v1318_v38 = vrot.slane %v1316_v12, 5  ;;  %v6200_v0 = vld [vmem:[#allocation19_spill] sm:$0xff]  ;;  %v6201_v56 = vld [vmem:[#allocation24_spill] sm:$0xff] }
  0xcc   : > { %4273 = vmatpush3.bf16.msra.mxu0 %v6193_v33  ;;  %4258 = vmatprep.mubr.msk.bf16.mxu0 %vm487_vm8, %v3959_v58  ;;  %v1305_v4 = vor.u32 %v1304_v62, %v1301_v3  ;;  %v1479_v16 = vshrl.u32 %v5110_v32, 16  ;;  %v1292_v35 = vrot.slane %v1291_v57, 4  ;;  %v1482_v9 = vshll.u32 %v5110_v32, 16  ;;  %v5156_v3 = vld [vmem:[#allocation2 + $0x4c] sm:$0xf] }
  0xcd   : > { %v1283_v21 = vsel %vm4861_vm7, %v1278_v2, %v6194_v50  ;;  %v1492_v5 = vshrl.u32 %v5115_v36, 16  ;;  %4400 = vmatprep.subr.msk.bf16.mxu0 %vm500_vm1, %v6195_v60  ;;  %4264 = vmatprep.mubr.msk.bf16.mxu1 %vm487_vm8, %v3966_v23  ;;  %v1319_v29 = vor.u32 %v1318_v38, %v1315_v13  ;;  %v1495_v24 = vshll.u32 %v5115_v36, 16  ;;  %v5159_v2 = vld [vmem:[#allocation2 + $0x58] sm:$0xf]  ;;  %v5171_v50 = vld [vmem:[#allocation2 + $0x64] sm:$0xf] }
  0xce   : > { %v1306_v15 = vrot.slane %v1305_v4, 4  ;;  %v1481_v58 = vrot.slane %v1479_v16, 7  ;;  %v1297_v25 = vsel %vm4861_vm7, %v1292_v35, %v6196_v54  ;;  %v1327_v41 = vshrl.u32 %v1238_v22, 16  ;;  %v1789_v60 = vld [vmem:[#allocation2 + $0x1c] sm:$0xf] }
  0xcf   : > { %v1494_v40 = vrot.slane %v1492_v5, 7  ;;  %v1330_v10 = vshll.u32 %v1238_v22, 16  ;;  %v3967_v28 = vcombine.low %v1283_v21, %v1297_v25  ;;  %v1320_v42 = vrot.slane %v1319_v29, 4  ;;  %v6203_v21 = vld [vmem:[#allocation25_spill] sm:$0xff]  ;;  %v6204_v29 = vld [vmem:[#allocation23_spill] sm:$0xff] }
  0xd0   : > { %v1311_v11 = vsel %vm4861_vm7, %v1306_v15, %v6197_v48  ;;  %v1484_v43 = vor.u32 %v1482_v9, %v1481_v58  ;;  %v1329_v31 = vrot.slane %v1327_v41, 4  ;;  %v1341_v53 = vshrl.u32 %v1240_v51, 16  ;;  %v1791_v48 = vld [vmem:[#allocation2 + $0x28] sm:$0xf] }
  0xd1   : > { %v1497_v1 = vor.u32 %v1495_v24, %v1494_v40  ;;  %v1332_v55 = vrot.slane %v1330_v10, 5  ;;  %4265 = vmatmul.mubr.msk.bf16.vlgmr.msra.gmra.mxu1 %vm487_vm8, %v3967_v28  ;;  %v1325_v52 = vsel %vm4861_vm7, %v1320_v42, %v6198_v44  ;;  %v1344_v61 = vshll.u32 %v1240_v51, 16  ;;  %v6205_v10 = vld [vmem:[#allocation27_spill] sm:$0xff] }
  0xd2   : > { %v1485_v46 = vsel %vm4847_vm6, %v6199_v7, %v1484_v43  ;;  %v1505_v18 = vshrl.u32 %v5136_v14, 16  ;;  %v3968_v37 = vcombine.low %v1311_v11, %v1325_v52  ;;  %4283 = vmatpush3.bf16.msra.mxu1 %v6201_v56  ;;  %v1343_v49 = vrot.slane %v1341_v53, 4  ;;  %v6206_v43 = vld [vmem:[#allocation26_spill] sm:$0xff]  ;;  %v1793_v53 = vld [vmem:[#allocation2 + $0x34] sm:$0xf]  ;;  %v6207_v52 = vld [vmem:[#allocation29_spill] sm:$0xff] }
  0xd3   : > { %4259 = vmatmul.mubr.msk.bf16.gmra.mxu0 %vm487_vm8, %v3960_v8  ;;  %v1498_v26 = vsel %vm4847_vm6, %v6200_v0, %v1497_v1  ;;  %v1333_v19 = vor.u32 %v1332_v55, %v1329_v31  ;;  %v1346_v12 = vrot.slane %v1344_v61, 5  ;;  %v1508_v27 = vshll.u32 %v5136_v14, 16  ;;  %v1795_v0 = vld [vmem:[#allocation2 + $0x40] sm:$0xf] }
  0xd4   : > { %v3983_v62 = vcombine.low %v1485_v46, %v1498_v26  ;;  %v1507_v20 = vrot.slane %v1505_v18, 7  ;;  %4268 = vmatprep.mubr.msk.bf16.mxu1 %vm487_vm8, %v3968_v37  ;;  %v1518_v57 = vshrl.u32 %v5148_v59, 16  ;;  %v1521_v13 = vshll.u32 %v5148_v59, 16 }
  0xd5   : > { %v1334_v8 = vrot.slane %v1333_v19, 4  ;;  %v6202_v23 = vshll.u32 %v4922_v34, 16  ;;  %v1347_v4 = vor.u32 %v1346_v12, %v1343_v49  ;;  %v1531_v16 = vshrl.u32 %v5156_v3, 16  ;;  %v6208_v12 = vld [vmem:[#allocation28_spill] sm:$0xff] }
  0xd6   : > { %4274 = vmatprep.mubr.msk.bf16.mxu0 %vm487_vm8, %v3983_v62  ;;  %v1510_v38 = vor.u32 %v1508_v27, %v1507_v20  ;;  %v1534_v22 = vshll.u32 %v5156_v3, 16  ;;  %v1520_v9 = vrot.slane %v1518_v57, 7  ;;  %v3992_v34 = vcombine.low %v5110_v32, %v5115_v36  ;;  %v1797_v62 = vld [vmem:[#allocation2 + $0x4c] sm:$0xf]  ;;  %v1799_v57 = vld [vmem:[#allocation2 + $0x58] sm:$0xf] }
  0xd7   : > { %v5166_v33 = vrot.slane %v6202_v23, 5  ;;  %v1339_v35 = vsel %vm4861_vm7, %v1334_v8, %v6203_v21  ;;  %v1544_v5 = vshrl.u32 %v5159_v2, 16  ;;  %v1348_v15 = vrot.slane %v1347_v4, 4 }
  0xd8   : > { %v1511_v58 = vsel %vm4847_vm6, %v6204_v29, %v1510_v38  ;;  %v1533_v24 = vrot.slane %v1531_v16, 7  ;;  %v1547_v51 = vshll.u32 %v5159_v2, 16  ;;  %v1523_v54 = vor.u32 %v1521_v13, %v1520_v9 }
  0xd9   : > { %v1546_v25 = vrot.slane %v1544_v5, 7  ;;  %v1557_v40 = vshrl.u32 %v5171_v50, 16  ;;  %v1560_v41 = vshll.u32 %v5171_v50, 16  ;;  %v1353_v32 = vsel %vm4861_vm7, %v1348_v15, %v6205_v10  ;;  %v1801_v5 = vld [vmem:[#allocation2 + $0x64] sm:$0xf] }
  0xda   : > { %v1536_v36 = vor.u32 %v1534_v22, %v1533_v24  ;;  %v3993_v28 = vcombine.low %v5136_v14, %v5148_v59  ;;  %v1806_v11 = vshrl.u32 %v1789_v60, 16  ;;  %v3969_v42 = vcombine.low %v1339_v35, %v1353_v32  ;;  %v1802_v10 = vld [vmem:[#allocation2 + $0x68] sm:$0x1] }
  0xdb   : > { %v1524_v1 = vsel %vm4847_vm6, %v6206_v43, %v1523_v54  ;;  %v1549_v31 = vor.u32 %v1547_v51, %v1546_v25  ;;  %v1559_v55 = vrot.slane %v1557_v40, 7  ;;  %v1809_v61 = vshll.u32 %v1789_v60, 16  ;;  %v6210_v54 = vld [vmem:[#allocation31_spill] sm:$0xff] }
  0xdc   : > { %v3984_v44 = vcombine.low %v1511_v58, %v1524_v1  ;;  %v1537_v7 = vsel %vm4847_vm6, %v6207_v52, %v1536_v36  ;;  %v1808_v46 = vrot.slane %v1806_v11, 4  ;;  %4269 = vmatmul.mubr.msk.bf16.gmra.mxu1 %vm487_vm8, %v3969_v42  ;;  %v1820_v18 = vshrl.u32 %v1791_v48, 16  ;;  %v1804_v11 = vld [vmem:[#allocation2 + $0x74] sm:$0x1]  ;;  %v6211_v1 = vld [vmem:[#allocation30_spill] sm:$0xff] }
  0xdd   : > { %v1550_v14 = vsel %vm4847_vm6, %v4933_v47, %v1549_v31  ;;  %v1562_v59 = vor.u32 %v1560_v41, %v1559_v55  ;;  %v1823_v37 = vshll.u32 %v1791_v48, 16  ;;  %4284 = vmatprep.mubr.msk.bf16.mxu1 %vm487_vm8, %v3992_v34  ;;  %v3994_v56 = vcombine.low %v5156_v3, %v5159_v2 }
  0xde   : > { %4275 = vmatmul.mubr.msk.bf16.vlgmr.msra.gmra.mxu0 %vm487_vm8, %v3984_v44  ;;  %v3985_v26 = vcombine.low %v1537_v7, %v1550_v14  ;;  %v1811_v19 = vrot.slane %v1809_v61, 5  ;;  %v1834_v49 = vshrl.u32 %v1793_v53, 16  ;;  %v1822_v20 = vrot.slane %v1820_v18, 4  ;;  %v6214_v14 = vld [vmem:[#allocation33_spill] sm:$0xff]  ;;  %v6215_v18 = vld [vmem:[#allocation35_spill] sm:$0xff] }
  0xdf   : > { %4293 = vmatpush3.bf16.msra.mxu0 %v6208_v12  ;;  %v1563_v47 = vsel %vm4847_vm6, %v4937_v63, %v1562_v59  ;;  %v1825_v27 = vrot.slane %v1823_v37, 5  ;;  %v1837_v8 = vshll.u32 %v1793_v53, 16  ;;  %v6209_v3 = vsel %vm4847_vm6, %v4925_v30, %v4928_v39 }
  0xe0   : > { %4278 = vmatprep.mubr.msk.bf16.mxu0 %vm487_vm8, %v3985_v26  ;;  %v3986_v2 = vcombine.low %v1563_v47, %v6209_v3  ;;  %v1812_v13 = vor.u32 %v1811_v19, %v1808_v46  ;;  %v1836_v23 = vrot.slane %v1834_v49, 4  ;;  %v1848_v4 = vshrl.u32 %v1795_v0, 16  ;;  %v6213_v46 = vld [vmem:[#allocation32_spill] sm:$0xff]  ;;  %v6216_v26 = vld [vmem:[#allocation34_spill] sm:$0xff] }
  0xe1   : > { %v1826_v38 = vor.u32 %v1825_v27, %v1822_v20  ;;  %v1839_v16 = vrot.slane %v1837_v8, 5  ;;  %v1851_v22 = vshll.u32 %v1795_v0, 16  ;;  %v1862_v21 = vshrl.u32 %v1797_v62, 16 }
  0xe2   : > { %v1813_v63 = vrot.slane %v1812_v13, 4  ;;  %v1850_v35 = vrot.slane %v1848_v4, 4  ;;  %v1865_v9 = vshll.u32 %v1797_v62, 16  ;;  %v1876_v34 = vshrl.u32 %v1799_v57, 16  ;;  %v6217_v62 = vld [vmem:[#allocation14_spill] sm:$0xff] }
  0xe3   : > { %v1827_v60 = vrot.slane %v1826_v38, 4  ;;  %v1840_v15 = vor.u32 %v1839_v16, %v1836_v23  ;;  %v1853_v29 = vrot.slane %v1851_v22, 5  ;;  %v1864_v58 = vrot.slane %v1862_v21, 4  ;;  %v4018_v4 = vld [vmem:[%s6136_s3 + $0x4] sm:$0xf] }
  0xe4   : > { %v1818_v30 = vsel %vm4861_vm7, %v1813_v63, %v4939_v45  ;;  %v1867_v39 = vrot.slane %v1865_v9, 5  ;;  %v1878_v24 = vrot.slane %v1876_v34, 4  ;;  %v1879_v51 = vshll.u32 %v1799_v57, 16  ;;  %4285 = vmatmul.mubr.msk.bf16.vlgmr.msra.gmra.mxu1 %vm487_vm8, %v3993_v28  ;;  %4401 = vmatprep.subr.msk.bf16.mxu1 %vm2259_vm10, %v4018_v4  ;;  %v2223_v16 = vld [vmem:[%s6136_s3] sm:$0xf] }
  0xe5   : > { %v1832_v25 = vsel %vm4861_vm7, %v1827_v60, %v6210_v54  ;;  %v1841_v40 = vrot.slane %v1840_v15, 4  ;;  %v1854_v41 = vor.u32 %v1853_v29, %v1850_v35  ;;  %v1890_v32 = vshrl.u32 %v1801_v5, 16  ;;  %4288 = vmatprep.mubr.msk.bf16.mxu1 %vm487_vm8, %v3994_v56  ;;  %4402 = vmatprep.subr.msk.bf16.mxu0 %vm2259_vm10, %v2223_v16  ;;  %v5314_v21 = vld [vmem:[%s6136_s3 + $0x8] sm:$0xf]  ;;  %v5321_v63 = vld [vmem:[%s6136_s3 + $0xc] sm:$0xf] }
  0xe6   : > { %4279 = vmatmul.mubr.msk.bf16.gmra.mxu0 %vm487_vm8, %v3986_v2  ;;  %v4001_v36 = vcombine.low %v1818_v30, %v1832_v25  ;;  %v1868_v48 = vor.u32 %v1867_v39, %v1864_v58  ;;  %v1881_v45 = vrot.slane %v1879_v51, 5  ;;  %v1893_v42 = vshll.u32 %v1801_v5, 16 }
  0xe7   : > { %v1855_v43 = vrot.slane %v1854_v41, 4  ;;  %v6212_v28 = vshll.u32 %v6211_v1, 16  ;;  %v1892_v55 = vrot.slane %v1890_v32, 4  ;;  %v1899_v7 = vshll.u32 %v1802_v10, 16 }
  0xe8   : > { %4294 = vmatprep.mubr.msk.bf16.mxu0 %vm487_vm8, %v4001_v36  ;;  %v1869_v53 = vrot.slane %v1868_v48, 4  ;;  %v1882_v44 = vor.u32 %v1881_v45, %v1878_v24  ;;  %v1895_v52 = vrot.slane %v1893_v42, 5  ;;  %v1846_v61 = vsel %vm4861_vm7, %v1841_v40, %v6213_v46 }
  0xe9   : > { %v1887_v31 = vrot.slane %v6212_v28, 5  ;;  %v1860_v59 = vsel %vm4861_vm7, %v1855_v43, %v6214_v14  ;;  %v1910_v37 = vor.u32 %v5166_v33, %v6215_v18  ;;  %v1913_v0 = vshll.u32 %v1804_v11, 16 }
  0xea   : > { %v1874_v56 = vsel %vm4861_vm7, %v1869_v53, %v6216_v26  ;;  %v1883_v19 = vrot.slane %v1882_v44, 4  ;;  %v1896_v49 = vor.u32 %v1895_v52, %v1892_v55  ;;  %v3995_v12 = vcombine.low %v5171_v50, %v6217_v62 }
  0xeb   : > { %v4002_v47 = vcombine.low %v1846_v61, %v1860_v59  ;;  %v1901_v27 = vrot.slane %v1899_v7, 5  ;;  %v1911_v33 = vrot.slane %v1910_v37, 4  ;;  %v1915_v3 = vrot.slane %v1913_v0, 5 }
  0xec   : > { %v1888_v20 = vsel %vm4861_vm7, %v1883_v19, %v1887_v31  ;;  %4289 = vmatmul.mubr.msk.bf16.gmra.mxu1 %vm487_vm8, %v3995_v12  ;;  %v1897_v57 = vrot.slane %v1896_v49, 4  ;;  %v6218_v23 = vmov 0   ;;  %v2261_v38 = vsel %vm2259_vm10, %v4018_v4, 0 }
  0xed   : > { %v4003_v8 = vcombine.low %v1874_v56, %v1888_v20  ;;  %v1916_v50 = vsel %vm4861_vm7, %v1911_v33, %v1915_v3  ;;  %2059 = vst.msk [vmem:[#allocation3] sm:$0xf] %vm2058_vm9, %v6218_v23  ;;  %2060 = vst.msk [vmem:[#allocation3 + $0x4] sm:$0xf] %vm2058_vm9, %v6218_v23  ;;  %4303 = vmatpush3.bf16.msra.mxu1 %v2261_v38  ;;  %v2353_v22 = vsel %vm2259_vm10, %v2223_v16, 0 }
  0xee   : > { %4295 = vmatmul.mubr.msk.bf16.vlgmr.msra.gmra.mxu0 %vm487_vm8, %v4002_v47  ;;  %v1902_v2 = vsel %vm4861_vm7, %v1897_v57, %v1901_v27  ;;  %2061 = vst.msk [vmem:[#allocation3 + $0x8] sm:$0xf] %vm2058_vm9, %v6218_v23  ;;  %2063 = vst.msk [vmem:[#allocation3 + $0x6c] sm:$0xf] %vm2058_vm9, %v6218_v23  ;;  %4403 = vmatprep.subr.msk.bf16.mxu1 %vm2259_vm10, %v5314_v21 }
  0xef   : > { %4298 = vmatprep.mubr.msk.bf16.mxu0 %vm487_vm8, %v4003_v8  ;;  %v4004_v13 = vcombine.low %v1902_v2, %v1916_v50  ;;  %2064 = vst.msk [vmem:[#allocation3 + $0x70] sm:$0xf] %vm2058_vm9, %v6218_v23  ;;  %2065 = vst.msk [vmem:[#allocation3 + $0x74] sm:$0xf] %vm2058_vm9, %v6218_v23  ;;  %4313 = vmatpush3.bf16.msra.mxu0 %v2353_v22 }
  0xf0   : > { %2067 = vst.msk [vmem:[#allocation3 + $0xc] sm:$0xf] %vm2058_vm9, %v6218_v23  ;;  %2068 = vst.msk [vmem:[#allocation3 + $0x18] sm:$0xf] %vm2058_vm9, %v6218_v23  ;;  %4404 = vmatprep.subr.msk.bf16.mxu0 %vm2259_vm10, %v5321_v63 }
  0xf1   : > { %2069 = vst.msk [vmem:[#allocation3 + $0x24] sm:$0xf] %vm2058_vm9, %v6218_v23  ;;  %2070 = vst.msk [vmem:[#allocation3 + $0x30] sm:$0xf] %vm2058_vm9, %v6218_v23 }
  0xf2   : > { %2071 = vst.msk [vmem:[#allocation3 + $0x3c] sm:$0xf] %vm2058_vm9, %v6218_v23  ;;  %2072 = vst.msk [vmem:[#allocation3 + $0x48] sm:$0xf] %vm2058_vm9, %v6218_v23 }
  0xf3   : > { %2073 = vst.msk [vmem:[#allocation3 + $0x54] sm:$0xf] %vm2058_vm9, %v6218_v23  ;;  %2074 = vst.msk [vmem:[#allocation3 + $0x60] sm:$0xf] %vm2058_vm9, %v6218_v23 }
  0xf4   : > { %2077 = vst.msk [vmem:[#allocation3 + $0x14] sm:$0xf] %vm2058_vm9, %v6218_v23  ;;  %2078 = vst.msk [vmem:[#allocation3 + $0x20] sm:$0xf] %vm2058_vm9, %v6218_v23  ;;  %v2420_v42 = vld [vmem:[#allocation3 + $0x4] sm:$0xf] }
  0xf5   : > { %2079 = vst.msk [vmem:[#allocation3 + $0x2c] sm:$0xf] %vm2058_vm9, %v6218_v23  ;;  %2080 = vst.msk [vmem:[#allocation3 + $0x38] sm:$0xf] %vm2058_vm9, %v6218_v23  ;;  %v5371_v1 = vld [vmem:[#allocation3 + $0x4] sm:$0xf] }
  0xf6   : > { %4299 = vmatmul.mubr.msk.bf16.gmra.mxu0 %vm487_vm8, %v4004_v13  ;;  %2081 = vst.msk [vmem:[#allocation3 + $0x44] sm:$0xf] %vm2058_vm9, %v6218_v23  ;;  %2082 = vst.msk [vmem:[#allocation3 + $0x50] sm:$0xf] %vm2058_vm9, %v6218_v23  ;;  %v2437_v44 = vshrl.u32 %v2420_v42, 16  ;;  %v2440_v52 = vshll.u32 %v2420_v42, 16 }
  0xf7   : > { %2083 = vst.msk [vmem:[#allocation3 + $0x5c] sm:$0xf] %vm2058_vm9, %v6218_v23  ;;  %2084 = vst.msk [vmem:[#allocation3 + $0x68] sm:$0xf] %vm2058_vm9, %v6218_v23  ;;  %v2105_v31 = vld [vmem:[#allocation3 + $0xc] sm:$0x8] }
  0xf8   : > { %2066 = vst.msk [vmem:[#allocation3] sm:$0xf] %vm2058_vm9, %v6218_v23  ;;  %2075 = vst.msk [vmem:[#allocation3 + $0x6c] sm:$0xf] %vm2058_vm9, %v6218_v23  ;;  %v2125_v46 = vshrl.u32 %v5371_v1, 16  ;;  %v2133_v14 = vshrl.u32 %v2105_v31, 16 }
  0xf9   : > { %2076 = vst.msk [vmem:[#allocation3 + $0x8] sm:$0xf] %vm2058_vm9, %v6218_v23  ;;  %2085 = vst.msk [vmem:[#allocation3 + $0x74] sm:$0xf] %vm2058_vm9, %v6218_v23  ;;  %v2107_v59 = vld [vmem:[#allocation3 + $0x18] sm:$0x8] }
  0xfa   : > { %v2109_v18 = vld [vmem:[#allocation3 + $0x24] sm:$0x8]  ;;  %v2111_v56 = vld [vmem:[#allocation3 + $0x30] sm:$0x8]  ;;  %v2113_v19 = vld [vmem:[#allocation3 + $0x3c] sm:$0x8] }
  0xfb   : > { %v2423_v0 = vld [vmem:[#allocation3 + $0x14] sm:$0x1]  ;;  %v2115_v49 = vld [vmem:[#allocation3 + $0x48] sm:$0x8]  ;;  %v2146_v12 = vshrl.u32 %v2107_v59, 16  ;;  %v2439_v47 = vrot.slane %v2437_v44, 4 }
  0xfc   : > { %v2442_v20 = vrot.slane %v2440_v52, 5  ;;  %v2159_v8 = vshrl.u32 %v2109_v18, 16  ;;  %v2460_v33 = vshll.u32 %v2423_v0, 16  ;;  %v2117_v3 = vld [vmem:[#allocation3 + $0x54] sm:$0x8]  ;;  %v2172_v13 = vshrl.u32 %v2111_v56, 16 }
  0xfd   : > { %v2185_v23 = vshrl.u32 %v2113_v19, 16  ;;  %v2198_v4 = vshrl.u32 %v2115_v49, 16  ;;  %v2425_v38 = vld [vmem:[#allocation3 + $0x20] sm:$0x1]  ;;  %v5391_v22 = vrot.slane %v2125_v46, 7  ;;  %v5395_v42 = vsel %vm2259_vm10, %v5314_v21, 0 }
  0xfe   : > { %6223 = vst [vmem:[#allocation10_spill] sm:$0xff] %v5395_v42  ;;  %v5399_v31 = vrot.slane %v2133_v14, 11  ;;  %v5403_v52 = vrot.slane %v2146_v12, 11  ;;  %v2443_v59 = vor.u32 %v2442_v20, %v2439_v47  ;;  %v2211_v18 = vshrl.u32 %v2117_v3, 16  ;;  %v2650_v0 = vld [vmem:[#allocation3 + $0xc] sm:$0x8] }
  0xff   : > { %v2103_v28 = vld [vmem:[#allocation3] sm:$0x8]  ;;  %v5407_v46 = vrot.slane %v2159_v8, 11  ;;  %v5411_v21 = vrot.slane %v2460_v33, 5  ;;  %v5415_v14 = vrot.slane %v2172_v13, 11  ;;  %v5417_v50 = vrot.slane %v2185_v23, 11 }
 0x100   : > { %v2120_v61 = vshrl.u32 %v2103_v28, 16  ;;  %v2421_v37 = vld [vmem:[#allocation3 + $0x8] sm:$0x1]  ;;  %6224 = vst [vmem:[#allocation11_spill] sm:$0xff] %v5399_v31  ;;  %6226 = vst [vmem:[#allocation17_spill] sm:$0xff] %v5403_v52  ;;  %v5421_v12 = vsel %vm2259_vm10, %v5321_v63, 0 }
 0x101   : > { %v2446_v57 = vshll.u32 %v2421_v37, 16  ;;  %v2427_v37 = vld [vmem:[#allocation3 + $0x2c] sm:$0x1]  ;;  %6227 = vst [vmem:[#allocation15_spill] sm:$0xff] %v5407_v46  ;;  %6228 = vst [vmem:[#allocation22_spill] sm:$0xff] %v5411_v21  ;;  %v5423_v47 = vrot.slane %v2198_v4, 11 }
 0x102   : > { %v5397_v28 = vrot.slane %v2120_v61, 11  ;;  %v2474_v61 = vshll.u32 %v2425_v38, 16  ;;  %6230 = vst [vmem:[#allocation18_spill] sm:$0xff] %v5415_v14  ;;  %6231 = vst [vmem:[#allocation21_spill] sm:$0xff] %v5417_v50  ;;  %v2652_v20 = vld [vmem:[#allocation3 + $0x18] sm:$0x8] }
 0x103   : > { %v5409_v19 = vrot.slane %v2446_v57, 5  ;;  %6232 = vst [vmem:[#allocation13_spill] sm:$0xff] %v5421_v12  ;;  %6233 = vst [vmem:[#allocation19_spill] sm:$0xff] %v5423_v47  ;;  %v2488_v57 = vshll.u32 %v2427_v37, 16  ;;  %v2667_v3 = vshrl.u32 %v2650_v0, 16  ;;  %v5427_v38 = vrot.slane %v2443_v59, 4 }
 0x104   : > { %v2429_v33 = vld [vmem:[#allocation3 + $0x38] sm:$0x1]  ;;  %v2431_v21 = vld [vmem:[#allocation3 + $0x44] sm:$0x1]  ;;  %v5429_v52 = vrot.slane %v2211_v18, 11  ;;  %v5438_v4 = vrot.slane %v2474_v61, 5 }
 0x105   : > { %v5434_v13 = vld [vmem:[%s6136_s3 + $0x10] sm:$0xf]  ;;  %v2654_v63 = vld [vmem:[#allocation3 + $0x24] sm:$0x8]  ;;  %v2680_v47 = vshrl.u32 %v2652_v20, 16  ;;  %v2502_v50 = vshll.u32 %v2429_v33, 16 }
 0x106   : > { %6234 = vst [vmem:[#allocation24_spill] sm:$0xff] %v5429_v52  ;;  %6235 = vst [vmem:[#allocation25_spill] sm:$0xff] %v5434_v13  ;;  %v2656_v12 = vld [vmem:[#allocation3 + $0x30] sm:$0x8]  ;;  %v2433_v37 = vld [vmem:[#allocation3 + $0x50] sm:$0x1] }
 0x107   : > { %6237 = vst [vmem:[#allocation27_spill] sm:$0xff] %v5438_v4  ;;  %v2516_v59 = vshll.u32 %v2431_v21, 16  ;;  %v2435_v14 = vld [vmem:[#allocation3 + $0x5c] sm:$0x1]  ;;  %v2658_v18 = vld [vmem:[#allocation3 + $0x3c] sm:$0x8] }
 0x108   : > { %v5444_v42 = vrot.slane %v2488_v57, 5  ;;  %v5446_v31 = vrot.slane %v2667_v3, 11  ;;  %v5450_v46 = vsel %vm2259_vm10, %v5434_v13, 0  ;;  %v2693_v61 = vshrl.u32 %v2654_v63, 16  ;;  %v2660_v20 = vld [vmem:[#allocation3 + $0x48] sm:$0x8] }
 0x109   : > { %6241 = vst [vmem:[#allocation31_spill] sm:$0xff] %v5450_v46  ;;  %v2662_v33 = vld [vmem:[#allocation3 + $0x54] sm:$0x8]  ;;  %v2664_v21 = vld [vmem:[#allocation3 + $0x60] sm:$0x8]  ;;  %v5460_v13 = vrot.slane %v2502_v50, 5 }
 0x10a   : > { %6239 = vst [vmem:[#allocation29_spill] sm:$0xff] %v5444_v42  ;;  %6240 = vst [vmem:[#allocation28_spill] sm:$0xff] %v5446_v31  ;;  %v2983_v57 = vld [vmem:[#allocation3 + $0x14] sm:$0x1]  ;;  %v2985_v42 = vld [vmem:[#allocation3 + $0x20] sm:$0x1] }
 0x10b   : > { %v5458_v31 = vrot.slane %v2680_v47, 11  ;;  %6245 = vst [vmem:[#allocation35_spill] sm:$0xff] %v5460_v13  ;;  %v5462_v63 = vrot.slane %v2516_v59, 5  ;;  %v2732_v46 = vshrl.u32 %v2660_v20, 16  ;;  %v5478_v50 = vld [vmem:[%s6136_s3 + $0x14] sm:$0xf] }
 0x10c   : > { %v3008_v59 = vshll.u32 %v2983_v57, 16  ;;  %v3022_v20 = vshll.u32 %v2985_v42, 16  ;;  %v2993_v57 = vld [vmem:[#allocation3 + $0x50] sm:$0x1] }
 0x10d   : > { %6244 = vst [vmem:[#allocation33_spill] sm:$0xff] %v5458_v31  ;;  %6246 = vst [vmem:[#allocation34_spill] sm:$0xff] %v5462_v63 }
 0x165   : > { %v5325_v35 = vpop.f32.mrf.mxu0 }
 0x167   : > { %v5327_v9 = vpop.f32.mrf.mxu0 }
 0x169   : > { %v5329_v34 = vpop.f32.mrf.mxu0 }
 0x16b   : > { %v5331_v5 = vpop.f32.mrf.mxu0 }
 0x16d   : > { %v5333_v60 = vpop.f32.mrf.mxu1  ;;  %v5335_v15 = vpop.f32.mrf.mxu0 }
 0x16f   : > { %v5337_v29 = vpop.f32.mrf.mxu1  ;;  %v5339_v58 = vpop.f32.mrf.mxu0 }
 0x171   : > { %v5341_v30 = vpop.f32.mrf.mxu1  ;;  %v5343_v39 = vpop.f32.mrf.mxu0 }
 0x173   : > { %v5345_v24 = vpop.f32.mrf.mxu1  ;;  %v5347_v51 = vpop.f32.mrf.mxu0 }
 0x175   : > { %v5349_v54 = vpop.f32.mrf.mxu1  ;;  %v5351_v25 = vpop.f32.mrf.mxu0 }
 0x177   : > { %v5353_v40 = vpop.f32.mrf.mxu1  ;;  %v5355_v41 = vpop.f32.mrf.mxu0 }
 0x179   : > { %v5357_v10 = vpop.f32.mrf.mxu1  ;;  %v5359_v32 = vpop.f32.mrf.mxu0 }
 0x17b   : > { %v5361_v36 = vpop.f32.mrf.mxu1  ;;  %v5365_v45 = vpop.f32.mrf.mxu0 }
 0x17d   : > { %v5363_v48 = vpop.f32.mrf.mxu1 }
 0x17f   : > { %v5367_v11 = vpop.f32.mrf.mxu1 }
 0x181   : > { %v5369_v43 = vpop.f32.mrf.mxu1 }
 0x183   : > { %v5373_v55 = vpop.f32.mrf.mxu0  ;;  %v5375_v53 = vpop.f32.mrf.mxu1 }
 0x185   : > { %v5377_v7 = vpop.f32.mrf.mxu0 }
 0x187   : > { %v5380_v26 = vpop.f32.mrf.mxu0 }
 0x188   : > { %6219 = vst [vmem:[#allocation7_spill] sm:$0xff] %v5380_v26  ;;  %v5382_v62 = vpop.f32.mrf.mxu1  ;;  %v3215_v26 = vld [vmem:[#allocation3 + $0x24] sm:$0x8] }
 0x189   : > { %6220 = vst [vmem:[#allocation20_spill] sm:$0xff] %v5382_v62  ;;  %v5384_v27 = vpop.f32.mrf.mxu0  ;;  %v2987_v62 = vld [vmem:[#allocation3 + $0x2c] sm:$0x1]  ;;  %v3243_v42 = vshrl.u32 %v3215_v26, 16 }
 0x18a   : > { %6221 = vst [vmem:[#allocation8_spill] sm:$0xff] %v5384_v27  ;;  %v5386_v2 = vpop.f32.mrf.mxu1  ;;  %v2989_v27 = vld [vmem:[#allocation3 + $0x38] sm:$0x1] }
 0x18b   : > { %6222 = vst [vmem:[#allocation9_spill] sm:$0xff] %v5386_v2  ;;  %v5389_v16 = vpop.f32.mrf.mxu0  ;;  %v2544_v2 = vshll.u32 %v2435_v14, 16  ;;  %v2745_v14 = vshrl.u32 %v2662_v33, 16 }
 0x18c   : > { %v5401_v44 = vpop.f32.mrf.mxu1 }
 0x18d   : > { %6225 = vst [vmem:[#allocation12_spill] sm:$0xff] %v5401_v44  ;;  %v5405_v56 = vpop.f32.mrf.mxu0  ;;  %v2530_v44 = vshll.u32 %v2433_v37, 16  ;;  %v6247_v37 = vshll.u32 %v5371_v1, 16 }
 0x18e   : > { %v5413_v49 = vpop.f32.mrf.mxu1 }
 0x18f   : > { %6229 = vst [vmem:[#allocation16_spill] sm:$0xff] %v5413_v49  ;;  %v5425_v8 = vpop.f32.mrf.mxu0  ;;  %v2706_v49 = vshrl.u32 %v2656_v12, 16  ;;  %v5482_v13 = vrot.slane %v2530_v44, 5  ;;  %v5501_v44 = vrot.slane %v2745_v14, 11 }
 0x191   : > { %v5436_v23 = vpop.f32.mrf.mxu0  ;;  %v5440_v0 = vpop.f32.mrf.mxu1  ;;  %v5473_v47 = vrot.slane %v2706_v49, 11  ;;  %6250 = vst [vmem:[#allocation37_spill] sm:$0xff] %v5482_v13  ;;  %v5491_v49 = vld [vmem:[%s6136_s3 + $0x18] sm:$0xf]  ;;  %6256 = vst [vmem:[#allocation43_spill] sm:$0xff] %v5501_v44  ;;  %v3078_v44 = vshll.u32 %v2993_v57, 16  ;;  %v642_v57 = vadd.f32 %v5341_v30, %v5329_v34 }
 0x192   : > { %6236 = vst [vmem:[#allocation23_spill] sm:$0xff] %v5436_v23  ;;  %6253 = vst [vmem:[#allocation40_spill] sm:$0xff] %v5491_v49  ;;  %v3227_v30 = vld [vmem:[#allocation3 + $0x6c] sm:$0x8] }
 0x193   : > { %v5442_v52 = vpop.f32.mrf.mxu0  ;;  %v5452_v4 = vpop.f32.mrf.mxu1  ;;  %6249 = vst [vmem:[#allocation36_spill] sm:$0xff] %v5473_v47  ;;  %v2991_v47 = vld [vmem:[#allocation3 + $0x44] sm:$0x1]  ;;  %v889_v13 = vadd.f32 %v5359_v32, %v642_v57 }
 0x194   : > { %6238 = vst [vmem:[#allocation26_spill] sm:$0xff] %v5442_v52  ;;  %v2719_v52 = vshrl.u32 %v2658_v18, 16  ;;  %v2758_v18 = vshrl.u32 %v2664_v21, 16 }
 0x195   : > { %v5454_v23 = vpop.f32.mrf.mxu0  ;;  %v5456_v3 = vpop.f32.mrf.mxu1 }
 0x196   : > { %6242 = vst [vmem:[#allocation30_spill] sm:$0xff] %v5454_v23  ;;  %6243 = vst [vmem:[#allocation32_spill] sm:$0xff] %v5456_v3  ;;  %v5469_v23 = vor.u32 %v6247_v37, %v5391_v22  ;;  %v5471_v3 = vrot.slane %v2693_v61, 11  ;;  %v5484_v22 = vrot.slane %v2544_v2, 5  ;;  %v5486_v33 = vrot.slane %v2719_v52, 11 }
 0x197   : > { %v5464_v12 = vpop.f32.mrf.mxu0  ;;  %v5480_v63 = vpop.f32.mrf.mxu1  ;;  %v3036_v61 = vshll.u32 %v2987_v62, 16  ;;  %v3050_v37 = vshll.u32 %v2989_v27, 16  ;;  %v5499_v2 = vsel %vm2259_vm10, %v5478_v50, 0  ;;  %v5503_v52 = vrot.slane %v2758_v18, 11 }
 0x198   : > { %6248 = vst [vmem:[#allocation14_spill] sm:$0xff] %v5471_v3  ;;  %6251 = vst [vmem:[#allocation38_spill] sm:$0xff] %v5484_v22  ;;  %v5495_v3 = vrot.slane %v2732_v46, 11  ;;  %v5513_v27 = vrot.slane %v3008_v59, 5  ;;  %v5515_v46 = vrot.slane %v3022_v20, 5  ;;  %v5523_v18 = vsel %vm2259_vm10, %v5491_v49, 0 }
 0x199   : > { %6252 = vst [vmem:[#allocation39_spill] sm:$0xff] %v5486_v33  ;;  %v5493_v21 = vpop.f32.mrf.mxu0  ;;  %6255 = vst [vmem:[#allocation42_spill] sm:$0xff] %v5499_v2  ;;  %v5517_v33 = vld [vmem:[#allocation3 + $0x70] sm:$0xf]  ;;  %v3064_v62 = vshll.u32 %v2991_v47, 16  ;;  %v639_v59 = vadd.f32 %v5333_v60, %v5325_v35  ;;  %v631_v20 = vadd.f32 %v5337_v29, %v5327_v9  ;;  %v634_v35 = vadd.f32 %v5345_v24, %v5331_v5 }
 0x19a   : > { %6254 = vst [vmem:[#allocation41_spill] sm:$0xff] %v5495_v3  ;;  %6257 = vst [vmem:[#allocation44_spill] sm:$0xff] %v5503_v52  ;;  %v3217_v3 = vld [vmem:[#allocation3 + $0x30] sm:$0x8]  ;;  %v5525_v52 = vrot.slane %v3036_v61, 5  ;;  %v5559_v24 = vadd.f32 %v5357_v10, %v5343_v39 }
 0x19b   : > { %6258 = vst [vmem:[#allocation45_spill] sm:$0xff] %v5513_v27  ;;  %6259 = vst [vmem:[#allocation46_spill] sm:$0xff] %v5515_v46  ;;  %v3213_v22 = vld [vmem:[#allocation3 + $0x18] sm:$0x8]  ;;  %v5533_v46 = vrot.slane %v3050_v37, 5  ;;  %v5535_v27 = vrot.slane %v3243_v42, 11  ;;  %v886_v5 = vadd.f32 %v5355_v41, %v631_v20 }
 0x19c   : > { %v5519_v14 = vpop.f32.mrf.mxu1  ;;  %6260 = vst [vmem:[#allocation47_spill] sm:$0xff] %v5523_v18  ;;  %6261 = vst [vmem:[#allocation48_spill] sm:$0xff] %v5525_v52  ;;  %v5540_v61 = vld [vmem:[%s6136_s3 + $0x1c] sm:$0xf]  ;;  %v2995_v47 = vld [vmem:[#allocation3 + $0x5c] sm:$0x1]  ;;  %v647_v52 = vadd.f32 %v5353_v40, %v5339_v58 }
 0x19d   : > { %6262 = vst [vmem:[#allocation49_spill] sm:$0xff] %v5533_v46  ;;  %6263 = vst [vmem:[#allocation50_spill] sm:$0xff] %v5535_v27  ;;  %v2997_v9 = vld [vmem:[#allocation3 + $0x68] sm:$0x1]  ;;  %v3256_v29 = vshrl.u32 %v3217_v3, 16  ;;  %v3326_v42 = vshrl.u32 %v5517_v33, 16  ;;  %v655_v27 = vadd.f32 %v5349_v54, %v5335_v15  ;;  %v888_v46 = vadd.f32 %v5351_v25, %v639_v59 }
 0x19e   : > { %v5531_v26 = vpop.f32.mrf.mxu0  ;;  %v5546_v60 = vpop.f32.mrf.mxu1  ;;  %v3223_v37 = vld [vmem:[#allocation3 + $0x54] sm:$0x8]  ;;  %v3230_v34 = vshrl.u32 %v3213_v22, 16  ;;  %v5563_v2 = vrot.slane %v3064_v62, 5  ;;  %v5565_v15 = vrot.slane %v3078_v44, 5  ;;  %v5571_v58 = vsel %vm2259_vm10, %v5540_v61, 0 }
 0x19f   : > { %v3219_v54 = vld [vmem:[#allocation3 + $0x3c] sm:$0x8]  ;;  %v3225_v25 = vld [vmem:[#allocation3 + $0x60] sm:$0x8]  ;;  %6266 = vst [vmem:[#allocation53_spill] sm:$0xff] %v5571_v58  ;;  %v3092_v40 = vshll.u32 %v2995_v47, 16 }
 0x1a0   : > { %v5554_v18 = vpop.f32.mrf.mxu0  ;;  %v5561_v3 = vpop.f32.mrf.mxu1  ;;  %6264 = vst [vmem:[#allocation51_spill] sm:$0xff] %v5563_v2  ;;  %6265 = vst [vmem:[#allocation52_spill] sm:$0xff] %v5565_v15  ;;  %v3106_v41 = vshll.u32 %v2997_v9, 16  ;;  %v3221_v22 = vld [vmem:[#allocation3 + $0x48] sm:$0x8]  ;;  %v3295_v20 = vshrl.u32 %v3223_v37, 16  ;;  %v650_v9 = vadd.f32 %v5361_v36, %v5347_v51  ;;  %v887_v37 = vadd.f32 %v5365_v45, %v634_v35 }
 0x1a1   : > { %v5575_v10 = vrot.slane %v3256_v29, 11  ;;  %v3321_v62 = vshrl.u32 %v3227_v30, 16  ;;  %v3328_v2 = vrot.slane %v3326_v42, 7  ;;  %v3329_v44 = vshll.u32 %v5517_v33, 16  ;;  %v3546_v15 = vld [vmem:[#allocation3 + $0x20] sm:$0x1] }
 0x1a2   : > { %v5567_v59 = vpop.f32.mrf.mxu0  ;;  %v5573_v39 = vpop.f32.mrf.mxu1  ;;  %v5581_v31 = vrot.slane %v3230_v34, 11  ;;  %v3269_v58 = vshrl.u32 %v3219_v54, 16  ;;  %v3308_v47 = vshrl.u32 %v3225_v25, 16  ;;  %v1110_v29 = vadd.f32 %v5363_v48, %v888_v46  ;;  %v5590_v33 = vld [vmem:[%s6136_s3 + $0x20] sm:$0xf] }
 0x1a3   : > { %6267 = vst [vmem:[#allocation54_spill] sm:$0xff] %v5575_v10  ;;  %v3282_v32 = vshrl.u32 %v3221_v22, 16  ;;  %v5594_v42 = vrot.slane %v3092_v40, 5  ;;  %v5596_v34 = vrot.slane %v3106_v41, 5  ;;  %v5598_v54 = vrot.slane %v3295_v20, 11 }
 0x1a4   : > { %v5579_v49 = vpop.f32.mrf.mxu0  ;;  %v4286_v30 = vpop.f32.mrf.mxu1  ;;  %v3571_v51 = vshll.u32 %v3546_v15, 16  ;;  %v1108_v36 = vadd.f32 %v5367_v11, %v886_v5  ;;  %v1220_v48 = vadd.f32 %v5389_v16, %v1110_v29  ;;  %v5602_v46 = vrot.slane %v3321_v62, 11  ;;  %v5606_v25 = vld [vmem:[#allocation3 + $0x2c] sm:$0x1]  ;;  %v5622_v62 = vld [vmem:[#allocation3 + $0x38] sm:$0x1] }
 0x1a5   : > { %v5604_v35 = vor.u32 %v3329_v44, %v3328_v2  ;;  %v1111_v22 = vadd.f32 %v5369_v43, %v889_v13  ;;  %v5609_v10 = vrot.slane %v3269_v58, 11  ;;  %v5613_v41 = vsel %vm2259_vm10, %v5590_v33, 0 }
 0x1a6   : > { %v5592_v57 = vpop.f32.mrf.mxu0  ;;  %v1750_v45 = vpop.f32.mrf.mxu1  ;;  %6268 = vst [vmem:[#allocation55_spill] sm:$0xff] %v5602_v46  ;;  %v5615_v15 = vrot.slane %v3308_v47, 11  ;;  %v892_v11 = vadd.f32 %v5373_v55, %v655_v27  ;;  %v1218_v16 = vadd.f32 %v5405_v56, %v1108_v36  ;;  %v1450_v2 = vadd.f32 %v5440_v0, %v1220_v48  ;;  %v6275_v48 = vld [vmem:[#allocation9_spill] sm:$0xff] }
 0x1a7   : > { %6269 = vst [vmem:[#allocation56_spill] sm:$0xff] %v5604_v35  ;;  %v5620_v20 = vrot.slane %v3282_v32, 11  ;;  %v890_v43 = vadd.f32 %v5377_v7, %v647_v52  ;;  %v1109_v13 = vadd.f32 %v5375_v53, %v887_v37  ;;  %v5626_v44 = vrot.slane %v3571_v51, 5  ;;  %v5636_v7 = vld [vmem:[#allocation3 + $0x5c] sm:$0x1]  ;;  %v6273_v32 = vld [vmem:[#allocation8_spill] sm:$0xff] }
 0x1a8   : > { %v1656_v40 = vpop.f32.mrf.mxu0  ;;  %6270 = vst [vmem:[#allocation57_spill] sm:$0xff] %v5615_v15  ;;  %v4287_v5 = vpop.f32.mrf.mxu1  ;;  %v1221_v55 = vadd.f32 %v5425_v8, %v1111_v22  ;;  %v1448_v56 = vadd.f32 %v5452_v4, %v1218_v16  ;;  %v1673_v0 = vadd.f32 %v5531_v26, %v1450_v2  ;;  %v5638_v53 = vld [vmem:[#allocation3 + $0x70] sm:$0xf]  ;;  %v6272_v52 = vld [vmem:[#allocation7_spill] sm:$0xff]  ;;  %v891_v51 = vadd.f32 %v6273_v32, %v650_v9  ;;  %v6274_v8 = vld [vmem:[#allocation20_spill] sm:$0xff] }
 0x1a9   : > { %6271 = vst [vmem:[#allocation58_spill] sm:$0xff] %v5626_v44  ;;  %v893_v37 = vadd.f32 %v6272_v52, %v5559_v24  ;;  %v1114_v36 = vadd.f32 %v6274_v8, %v892_v11  ;;  %v1112_v22 = vadd.f32 %v6275_v48, %v890_v43  ;;  %v6276_v16 = vld [vmem:[#allocation32_spill] sm:$0xff]  ;;  %v6277_v35 = vld [vmem:[#allocation23_spill] sm:$0xff]  ;;  %v6278_v15 = vld [vmem:[#allocation26_spill] sm:$0xff] }
 0x1aa   : > { %v4281_v58 = vpop.f32.mrf.mxu0  ;;  %v1753_v27 = vpop.f32.mrf.mxu1  ;;  %v1451_v2 = vadd.f32 %v6276_v16, %v1221_v55  ;;  %v1671_v29 = vadd.f32 %v5554_v18, %v1448_v56  ;;  %v1783_v47 = vadd.f32 %v4286_v30, %v1673_v0  ;;  %v1219_v46 = vadd.f32 %v6277_v35, %v1109_v13  ;;  %v5655_v9 = vld [vmem:[%s6135_s2] ss:$0 sm:$0xff]  ;;  %v6279_v32 = vld [vmem:[#allocation12_spill] sm:$0xff]  ;;  %v6281_v13 = vld [vmem:[#allocation30_spill] sm:$0xff] }
 0x1ab   : > { %v1224_v24 = vadd.f32 %v6278_v15, %v1114_v36  ;;  %v1115_v55 = vadd.f32 %v6279_v32, %v893_v37  ;;  %v6280_v0 = vld [vmem:[#allocation16_spill] sm:$0xff]  ;;  %v1222_v15 = vadd.f32 %v6281_v13, %v1112_v22 }
 0x1ac   : > { %v5644_v4 = vpop.f32.mrf.mxu0  ;;  %v4290_v44 = vpop.f32.mrf.mxu1  ;;  %v1674_v18 = vadd.f32 %v5567_v59, %v1451_v2  ;;  %v1781_v30 = vadd.f32 %v1750_v45, %v1671_v29  ;;  %v1113_v35 = vadd.f32 %v6280_v0, %v891_v51  ;;  %v1449_v8 = vadd.f32 %v5480_v63, %v1219_v46 }
 0x1ad   : > { %v1454_v36 = vadd.f32 %v5519_v14, %v1224_v24  ;;  %v1225_v16 = vadd.f32 %v5464_v12, %v1115_v55  ;;  %v1452_v45 = vadd.f32 %v5546_v60, %v1222_v15 }
 0x1ae   : > { %v4296_v52 = vpop.f32.mrf.mxu0  ;;  %v1784_v11 = vadd.f32 %v4287_v5, %v1674_v18  ;;  %v1766_v26 = vpop.f32.mrf.mxu1  ;;  %v1223_v59 = vadd.f32 %v5493_v21, %v1113_v35 }
 0x1af   : > { %v2013_v56 = vadd.f32 %v4296_v52, %v1783_v47  ;;  %v1672_v47 = vadd.f32 %v5579_v49, %v1449_v8  ;;  %v1677_v29 = vadd.f32 %v5592_v57, %v1454_v36  ;;  %v1455_v12 = vadd.f32 %v5561_v3, %v1225_v16  ;;  %v3552_v8 = vld [vmem:[#allocation3 + $0x44] sm:$0x1] }
 0x1b0   : > { %v1980_v48 = vpop.f32.mrf.mxu0  ;;  %v1675_v5 = vadd.f32 %v1656_v40, %v1452_v45  ;;  %v4291_v60 = vpop.f32.mrf.mxu1  ;;  %v1453_v3 = vadd.f32 %v5573_v39, %v1223_v59 }
 0x1b1   : > { %v2028_v43 = vadd.f32 %v5655_v9, %v2013_v56  ;;  %v2011_v37 = vadd.f32 %v1980_v48, %v1781_v30  ;;  %v1782_v22 = vadd.f32 %v1753_v27, %v1672_v47  ;;  %v1787_v2 = vadd.f32 %v4290_v44, %v1677_v29 }
 0x1b2   : > { %v4297_v51 = vpop.f32.mrf.mxu0  ;;  %v1678_v32 = vadd.f32 %v4281_v58, %v1455_v12  ;;  %v1785_v55 = vadd.f32 %v1766_v26, %v1675_v5  ;;  %v1769_v13 = vpop.f32.mrf.mxu1  ;;  %v1676_v36 = vadd.f32 %v5644_v4, %v1453_v3 }
 0x1b3   : > { %vm2036_vm11 = vcmp.ge.f32.partialorder %v2028_v43, 0.0  ;;  %v2044_v63 = vmul.f32 0.2, %v2028_v43  ;;  %v2026_v14 = vadd.f32 %v5655_v9, %v2011_v37  ;;  %v2014_v46 = vadd.f32 %v4297_v51, %v1784_v11 }
 0x1b4   : > { %v1983_v24 = vpop.f32.mrf.mxu0  ;;  %v1788_v35 = vadd.f32 %v4291_v60, %v1678_v32  ;;  %v1786_v47 = vadd.f32 %v1769_v13, %v1676_v36  ;;  %v5692_v60 = vld [vmem:[#allocation3 + $0x50] sm:$0x1]  ;;  %v6284_v32 = vshll.u32 %v5636_v7, 16 }
 0x1b5   : > { %v2052_v52 = vsel %vm2036_vm11, %v2028_v43, %v2044_v63  ;;  %vm2034_vm12 = vcmp.ge.f32.partialorder %v2026_v14, 0.0  ;;  %v2042_v21 = vmul.f32 0.2, %v2026_v14  ;;  %v2029_v49 = vadd.f32 %v5655_v9, %v2014_v46 }
 0x1b6   : > { %v2088_v57 = vpack.c.bf16 %v2052_v52, %v2052_v52  ;;  %v2012_v18 = vadd.f32 %v1983_v24, %v1782_v22  ;;  %v4300_v30 = vpop.f32.mrf.mxu0  ;;  %v3663_v43 = vshll.u32 %v5638_v53, 16  ;;  %v6282_v63 = vshll.u32 %v5606_v25, 16 }
 0x1b7   : > { %v2050_v56 = vsel %vm2034_vm12, %v2026_v14, %v2042_v21  ;;  %vm2037_vm13 = vcmp.ge.f32.partialorder %v2029_v49, 0.0  ;;  %v2045_v11 = vmul.f32 0.2, %v2029_v49  ;;  %v2017_v0 = vadd.f32 %v4300_v30, %v1787_v2 }
 0x1b8   : > { %2097 = vst.msk [vmem:[#allocation3 + $0x28] sm:$0xf] %vm2058_vm9, %v2088_v57  ;;  %v2086_v40 = vpack.c.bf16 %v2050_v56, %v2050_v56  ;;  %v2027_v44 = vadd.f32 %v5655_v9, %v2012_v18  ;;  %v1996_v27 = vpop.f32.mrf.mxu0  ;;  %v5685_v4 = vrot.slane %v6282_v63, 5  ;;  %v3613_v14 = vshll.u32 %v3552_v8, 16 }
 0x1b9   : > { %v2053_v58 = vsel %vm2037_vm13, %v2029_v49, %v2045_v11  ;;  %v2032_v26 = vadd.f32 %v5655_v9, %v2017_v0  ;;  %v2015_v15 = vadd.f32 %v1996_v27, %v1785_v55  ;;  %v6283_v52 = vshll.u32 %v5622_v62, 16 }
 0x1ba   : > { %2095 = vst.msk [vmem:[#allocation3 + $0x10] sm:$0xf] %vm2058_vm9, %v2086_v40  ;;  %v2089_v39 = vpack.c.bf16 %v2053_v58, %v2053_v58  ;;  %vm2035_vm14 = vcmp.ge.f32.partialorder %v2027_v44, 0.0  ;;  %v2043_v48 = vmul.f32 0.2, %v2027_v44  ;;  %v4301_v16 = vpop.f32.mrf.mxu0  ;;  %v5697_v57 = vrot.slane %v6284_v32, 5 }
 0x1bb   : > { %vm2040_vm0 = vcmp.ge.f32.partialorder %v2032_v26, 0.0  ;;  %v2048_v37 = vmul.f32 0.2, %v2032_v26  ;;  %v2030_v59 = vadd.f32 %v5655_v9, %v2015_v15  ;;  %v2018_v45 = vadd.f32 %v4301_v16, %v1788_v35  ;;  %v6287_v32 = vld [vmem:[#allocation11_spill] sm:$0xff] }
 0x1bc   : > { %2098 = vst.msk [vmem:[#allocation3 + $0x34] sm:$0xf] %vm2058_vm9, %v2089_v39  ;;  %v2051_v29 = vsel %vm2035_vm14, %v2027_v44, %v2043_v48  ;;  %v1999_v51 = vpop.f32.mrf.mxu0  ;;  %v5690_v21 = vrot.slane %v6283_v52, 5  ;;  %v6285_v55 = vshrl.u32 %v5638_v53, 16  ;;  %v5703_v30 = vrot.slane %v3663_v43, 5 }
 0x1bd   : > { %v2087_v46 = vpack.c.bf16 %v2051_v29, %v2051_v29  ;;  %v2056_v12 = vsel %vm2040_vm0, %v2032_v26, %v2048_v37  ;;  %vm2038_vm1 = vcmp.ge.f32.partialorder %v2030_v59, 0.0  ;;  %v2046_v5 = vmul.f32 0.2, %v2030_v59 }
 0x1be   : > { %v2092_v22 = vpack.c.bf16 %v2056_v12, %v2056_v12  ;;  %v2033_v2 = vadd.f32 %v5655_v9, %v2018_v45  ;;  %v2016_v24 = vadd.f32 %v1999_v51, %v1786_v47  ;;  %v5701_v18 = vrot.slane %v6285_v55, 4 }
 0x1bf   : > { %2096 = vst.msk [vmem:[#allocation3 + $0x1c] sm:$0xf] %vm2058_vm9, %v2087_v46  ;;  %v2054_v25 = vsel %vm2038_vm1, %v2030_v59, %v2046_v5  ;;  %v2110_v49 = vld [vmem:[#allocation3 + $0x28] sm:$0xf]  ;;  %v5707_v44 = vrot.slane %v3613_v14, 5  ;;  %v3627_v7 = vshll.u32 %v5692_v60, 16 }
 0x1c0   : > { %2101 = vst.msk [vmem:[#allocation3 + $0x58] sm:$0xf] %vm2058_vm9, %v2092_v22  ;;  %v2090_v62 = vpack.c.bf16 %v2054_v25, %v2054_v25  ;;  %vm2041_vm2 = vcmp.ge.f32.partialorder %v2033_v2, 0.0  ;;  %v2049_v56 = vmul.f32 0.2, %v2033_v2  ;;  %v2031_v11 = vadd.f32 %v5655_v9, %v2016_v24  ;;  %v6286_v24 = vld [vmem:[#allocation15_spill] sm:$0xff] }
 0x1c1   : > { %v2106_v0 = vld [vmem:[#allocation3 + $0x10] sm:$0xf]  ;;  %v2164_v3 = vshrl.u32 %v2110_v49, 16  ;;  %v2167_v40 = vshll.u32 %v2110_v49, 16  ;;  %v5712_v8 = vld [vmem:[#allocation3 + $0x28] sm:$0xf] }
 0x1c2   : > { %2099 = vst.msk [vmem:[#allocation3 + $0x40] sm:$0xf] %vm2058_vm9, %v2090_v62  ;;  %v2057_v53 = vsel %vm2041_vm2, %v2033_v2, %v2049_v56  ;;  %vm2039_vm3 = vcmp.ge.f32.partialorder %v2031_v11, 0.0  ;;  %v2047_v27 = vmul.f32 0.2, %v2031_v11  ;;  %v2138_v43 = vshrl.u32 %v2106_v0, 16 }
 0x1c3   : > { %v2422_v35 = vld [vmem:[#allocation3 + $0x10] sm:$0xf]  ;;  %v2093_v58 = vpack.c.bf16 %v2057_v53, %v2057_v53  ;;  %v2141_v13 = vshll.u32 %v2106_v0, 16  ;;  %v4019_v26 = vcombine.low %v5371_v1, %v2106_v0  ;;  %v2166_v15 = vrot.slane %v2164_v3, 7  ;;  %v2112_v9 = vld [vmem:[#allocation3 + $0x34] sm:$0xf] }
 0x1c4   : > { %v2055_v36 = vsel %vm2039_vm3, %v2031_v11, %v2047_v27  ;;  %v2140_v39 = vrot.slane %v2138_v43, 7  ;;  %v2177_v48 = vshrl.u32 %v2112_v9, 16  ;;  %v2180_v16 = vshll.u32 %v2112_v9, 16  ;;  %v5714_v37 = vld [vmem:[#allocation3 + $0x34] sm:$0xf] }
 0x1c5   : > { %2102 = vst.msk [vmem:[#allocation3 + $0x64] sm:$0xf] %vm2058_vm9, %v2093_v58  ;;  %v2091_v59 = vpack.c.bf16 %v2055_v36, %v2055_v36  ;;  %4304 = vmatprep.mubr.msk.bf16.mxu1 %vm2246_vm15, %v4019_v26  ;;  %v2169_v45 = vor.u32 %v2167_v40, %v2166_v15  ;;  %v2451_v47 = vshrl.u32 %v2422_v35, 16  ;;  %v2454_v29 = vshll.u32 %v2422_v35, 16  ;;  %v5718_v51 = vld [vmem:[#allocation3 + $0x28] sm:$0xf] }
 0x1c6   : > { %v2108_v1 = vld [vmem:[#allocation3 + $0x1c] sm:$0xf]  ;;  %v2143_v63 = vor.u32 %v2141_v13, %v2140_v39  ;;  %v2179_v14 = vrot.slane %v2177_v48, 7  ;;  %v2479_v46 = vshrl.u32 %v5712_v8, 16  ;;  %v4063_v12 = vcombine.low %v5718_v51, %v5714_v37  ;;  %v6289_v35 = vld [vmem:[#allocation10_spill] sm:$0xff] }
 0x1c7   : > { %2100 = vst.msk [vmem:[#allocation3 + $0x4c] sm:$0xf] %vm2058_vm9, %v2091_v59  ;;  %v2151_v5 = vshrl.u32 %v2108_v1, 16  ;;  %v2154_v22 = vshll.u32 %v2108_v1, 16  ;;  %v4020_v2 = vcombine.low %v2108_v1, %v2110_v49  ;;  %v2170_v52 = vsel %vm4847_vm6, %v6286_v24, %v2169_v45  ;;  %v2118_v25 = vld [vmem:[#allocation3 + $0x58] sm:$0xf] }
 0x1c8   : > { %v2144_v55 = vsel %vm4847_vm6, %v6287_v32, %v2143_v63  ;;  %v2216_v62 = vshrl.u32 %v2118_v25, 16  ;;  %v2219_v56 = vshll.u32 %v2118_v25, 16  ;;  %v2453_v11 = vrot.slane %v2451_v47, 4  ;;  %v2424_v0 = vld [vmem:[#allocation3 + $0x1c] sm:$0xf]  ;;  %v6290_v48 = vld [vmem:[#allocation18_spill] sm:$0xff] }
 0x1c9   : > { %v2153_v3 = vrot.slane %v2151_v5, 7  ;;  %4305 = vmatmul.mubr.msk.bf16.vlgmr.msra.gmra.mxu1 %vm2246_vm15, %v4020_v2  ;;  %v6288_v49 = vsel %vm4847_vm6, %v5397_v28, %v5469_v23  ;;  %v2114_v53 = vld [vmem:[#allocation3 + $0x40] sm:$0xf]  ;;  %v2456_v27 = vrot.slane %v2454_v29, 5  ;;  %v2182_v43 = vor.u32 %v2180_v16, %v2179_v14  ;;  %v6291_v45 = vld [vmem:[#allocation25_spill] sm:$0xff] }
 0x1ca   : > { %v4027_v40 = vcombine.low %v6288_v49, %v2144_v55  ;;  %4323 = vmatpush3.bf16.msra.mxu1 %v6289_v35  ;;  %v2190_v58 = vshrl.u32 %v2114_v53, 16  ;;  %v2193_v13 = vshll.u32 %v2114_v53, 16  ;;  %v4021_v26 = vcombine.low %v2112_v9, %v2114_v53  ;;  %v6292_v9 = vld [vmem:[#allocation17_spill] sm:$0xff]  ;;  %v6293_v32 = vld [vmem:[#allocation24_spill] sm:$0xff]  ;;  %v2428_v35 = vld [vmem:[#allocation3 + $0x34] sm:$0xf] }
 0x1cb   : > { %v2218_v15 = vrot.slane %v2216_v62, 7  ;;  %v2156_v36 = vor.u32 %v2154_v22, %v2153_v3  ;;  %v2457_v39 = vor.u32 %v2456_v27, %v2453_v11  ;;  %v2183_v59 = vsel %vm4847_vm6, %v6290_v48, %v2182_v43  ;;  %4405 = vmatprep.subr.msk.bf16.mxu1 %vm2259_vm10, %v6291_v45  ;;  %v5751_v11 = vld [vmem:[#allocation3 + $0x10] sm:$0xf]  ;;  %v6296_v53 = vld [vmem:[#allocation21_spill] sm:$0xff] }
 0x1cc   : > { %4314 = vmatprep.mubr.msk.bf16.mxu0 %vm2246_vm15, %v4027_v40  ;;  %v2465_v28 = vshrl.u32 %v2424_v0, 16  ;;  %v2192_v23 = vrot.slane %v2190_v58, 7  ;;  %4308 = vmatprep.mubr.msk.bf16.mxu1 %vm2246_vm15, %v4021_v26  ;;  %v2468_v47 = vshll.u32 %v2424_v0, 16  ;;  %v2481_v29 = vrot.slane %v2479_v46, 4  ;;  %v6294_v3 = vld [vmem:[#allocation22_spill] sm:$0xff]  ;;  %v6297_v26 = vld [vmem:[#allocation13_spill] sm:$0xff] }
 0x1cd   : > { %v2221_v16 = vor.u32 %v2219_v56, %v2218_v15  ;;  %v2157_v1 = vsel %vm4847_vm6, %v6292_v9, %v2156_v36  ;;  %v2458_v63 = vrot.slane %v2457_v39, 4  ;;  %v2482_v5 = vshll.u32 %v5712_v8, 16  ;;  %v5756_v40 = vld [vmem:[#allocation3 + $0x1c] sm:$0xf]  ;;  %v2430_v39 = vld [vmem:[#allocation3 + $0x40] sm:$0xf] }
 0x1ce   : > { %v2467_v14 = vrot.slane %v2465_v28, 4  ;;  %v4028_v22 = vcombine.low %v2157_v1, %v2170_v52  ;;  %v2116_v2 = vld [vmem:[#allocation3 + $0x4c] sm:$0xf]  ;;  %v2195_v24 = vor.u32 %v2193_v13, %v2192_v23  ;;  %v2470_v62 = vrot.slane %v2468_v47, 5  ;;  %v6298_v47 = vld [vmem:[#allocation27_spill] sm:$0xff] }
 0x1cf   : > { %v2222_v55 = vsel %vm4847_vm6, %v6293_v32, %v2221_v16  ;;  %v2203_v56 = vshrl.u32 %v2116_v2, 16  ;;  %v2206_v46 = vshll.u32 %v2116_v2, 16  ;;  %v4022_v0 = vcombine.low %v2116_v2, %v2118_v25  ;;  %v6300_v32 = vld [vmem:[#allocation29_spill] sm:$0xff]  ;;  %v5928_v60 = vld [vmem:[#allocation3 + $0x64] sm:$0xf] }
 0x1d0   : > { %v2463_v49 = vsel %vm4861_vm7, %v2458_v63, %v6294_v3  ;;  %4315 = vmatmul.mubr.msk.bf16.vlgmr.msra.gmra.mxu0 %vm2246_vm15, %v4028_v22  ;;  %v6295_v8 = vsel %vm4861_vm7, %v5427_v38, %v5409_v19  ;;  %v2196_v27 = vsel %vm4847_vm6, %v6296_v53, %v2195_v24  ;;  %v2471_v43 = vor.u32 %v2470_v62, %v2467_v14  ;;  %v6299_v14 = vld [vmem:[#allocation19_spill] sm:$0xff]  ;;  %v6301_v3 = vld [vmem:[#allocation28_spill] sm:$0xff]  ;;  %v2432_v53 = vld [vmem:[#allocation3 + $0x4c] sm:$0xf] }
 0x1d1   : > { %v4036_v52 = vcombine.low %v6295_v8, %v2463_v49  ;;  %v2484_v25 = vrot.slane %v2482_v5, 5  ;;  %v2205_v58 = vrot.slane %v2203_v56, 7  ;;  %4309 = vmatmul.mubr.msk.bf16.gmra.mxu1 %vm2246_vm15, %v4022_v0  ;;  %v4029_v13 = vcombine.low %v2183_v59, %v2196_v27  ;;  %4333 = vmatpush3.bf16.msra.mxu0 %v6297_v26  ;;  %v6302_v27 = vld [vmem:[#allocation33_spill] sm:$0xff] }
 0x1d2   : > { %v2672_v15 = vshrl.u32 %v5751_v11, 16  ;;  %v2675_v36 = vshll.u32 %v5751_v11, 16  ;;  %v2472_v19 = vrot.slane %v2471_v43, 4  ;;  %v2685_v48 = vshrl.u32 %v5756_v40, 16  ;;  %4406 = vmatprep.subr.msk.bf16.mxu0 %vm2259_vm10, %v5478_v50 }
 0x1d3   : > { %4324 = vmatprep.mubr.msk.bf16.mxu1 %vm2246_vm15, %v4036_v52  ;;  %v2485_v38 = vor.u32 %v2484_v25, %v2481_v29  ;;  %v2688_v45 = vshll.u32 %v5756_v40, 16  ;;  %4318 = vmatprep.mubr.msk.bf16.mxu0 %vm2246_vm15, %v4029_v13  ;;  %v2208_v59 = vor.u32 %v2206_v46, %v2205_v58  ;;  %v2493_v23 = vshrl.u32 %v2428_v35, 16  ;;  %v2434_v58 = vld [vmem:[#allocation3 + $0x58] sm:$0xf] }
 0x1d4   : > { %v2674_v28 = vrot.slane %v2672_v15, 7  ;;  %v2496_v16 = vshll.u32 %v2428_v35, 16  ;;  %v2477_v9 = vsel %vm4861_vm7, %v2472_v19, %v6298_v47  ;;  %v2687_v63 = vrot.slane %v2685_v48, 7 }
 0x1d5   : > { %v2486_v1 = vrot.slane %v2485_v38, 4  ;;  %v2507_v29 = vshrl.u32 %v2430_v39, 16  ;;  %v2209_v5 = vsel %vm4847_vm6, %v6299_v14, %v2208_v59  ;;  %v2495_v2 = vrot.slane %v2493_v23, 4  ;;  %v5799_v59 = vld [vmem:[#allocation3 + $0x40] sm:$0xf] }
 0x1d6   : > { %v2677_v22 = vor.u32 %v2675_v36, %v2674_v28  ;;  %v2498_v50 = vrot.slane %v2496_v16, 5  ;;  %v4030_v24 = vcombine.low %v2209_v5, %v2222_v55  ;;  %v2690_v56 = vor.u32 %v2688_v45, %v2687_v63  ;;  %v6304_v28 = vld [vmem:[#allocation35_spill] sm:$0xff] }
 0x1d7   : > { %v2491_v62 = vsel %vm4861_vm7, %v2486_v1, %v6300_v32  ;;  %v2509_v46 = vrot.slane %v2507_v29, 4  ;;  %v2510_v52 = vshll.u32 %v2430_v39, 16  ;;  %v2698_v43 = vshrl.u32 %v5718_v51, 16  ;;  %v6303_v39 = vld [vmem:[#allocation31_spill] sm:$0xff]  ;;  %v6305_v1 = vld [vmem:[#allocation40_spill] sm:$0xff] }
 0x1d8   : > { %v4037_v0 = vcombine.low %v2477_v9, %v2491_v62  ;;  %v2678_v49 = vsel %vm4847_vm6, %v6301_v3, %v2677_v22  ;;  %v2499_v8 = vor.u32 %v2498_v50, %v2495_v2  ;;  %4319 = vmatmul.mubr.msk.bf16.gmra.mxu0 %vm2246_vm15, %v4030_v24  ;;  %v2691_v55 = vsel %vm4847_vm6, %v6302_v27, %v2690_v56  ;;  %v5807_v24 = vld [vmem:[#allocation3 + $0x4c] sm:$0xf]  ;;  %v6306_v62 = vld [vmem:[#allocation14_spill] sm:$0xff] }
 0x1d9   : > { %v2701_v25 = vshll.u32 %v5718_v51, 16  ;;  %v2711_v35 = vshrl.u32 %v5714_v37, 16  ;;  %v4053_v13 = vcombine.low %v2678_v49, %v2691_v55  ;;  %v2512_v15 = vrot.slane %v2510_v52, 5  ;;  %v6308_v52 = vld [vmem:[#allocation34_spill] sm:$0xff] }
 0x1da   : > { %4325 = vmatmul.mubr.msk.bf16.vlgmr.msra.gmra.mxu1 %vm2246_vm15, %v4037_v0  ;;  %v2500_v26 = vrot.slane %v2499_v8, 4  ;;  %v2714_v36 = vshll.u32 %v5714_v37, 16  ;;  %v2700_v19 = vrot.slane %v2698_v43, 7  ;;  %v2521_v48 = vshrl.u32 %v2432_v53, 16  ;;  %v5817_v8 = vld [vmem:[#allocation3 + $0x58] sm:$0xf] }
 0x1db   : > { %4343 = vmatpush3.bf16.msra.mxu1 %v6303_v39  ;;  %v2713_v38 = vrot.slane %v2711_v35, 7  ;;  %v2524_v45 = vshll.u32 %v2432_v53, 16  ;;  %4334 = vmatprep.mubr.msk.bf16.mxu0 %vm2246_vm15, %v4053_v13  ;;  %v2513_v16 = vor.u32 %v2512_v15, %v2509_v46  ;;  %v2535_v47 = vshrl.u32 %v2434_v58, 16  ;;  %v6307_v46 = vld [vmem:[#allocation36_spill] sm:$0xff] }
 0x1dc   : > { %v2505_v23 = vsel %vm4861_vm7, %v2500_v26, %v6304_v28  ;;  %v2538_v9 = vshll.u32 %v2434_v58, 16  ;;  %4407 = vmatprep.subr.msk.bf16.mxu1 %vm2259_vm10, %v6305_v1  ;;  %v2703_v63 = vor.u32 %v2701_v25, %v2700_v19  ;;  %v2523_v14 = vrot.slane %v2521_v48, 4  ;;  %v5822_v25 = vld [vmem:[#allocation3 + $0x64] sm:$0xf]  ;;  %v6309_v48 = vld [vmem:[#allocation37_spill] sm:$0xff]  ;;  %v6311_v1 = vld [vmem:[#allocation38_spill] sm:$0xff] }
 0x1dd   : > { %v2716_v29 = vor.u32 %v2714_v36, %v2713_v38  ;;  %v2526_v5 = vrot.slane %v2524_v45, 5  ;;  %v2514_v22 = vrot.slane %v2513_v16, 4  ;;  %v2537_v2 = vrot.slane %v2535_v47, 4  ;;  %v2982_v38 = vld [vmem:[#allocation3 + $0x10] sm:$0xf]  ;;  %v6319_v37 = vld [vmem:[#allocation48_spill] sm:$0xff] }
 0x1de   : > { %v2540_v50 = vrot.slane %v2538_v9, 5  ;;  %v2724_v32 = vshrl.u32 %v5799_v59, 16  ;;  %v2704_v56 = vsel %vm4847_vm6, %v6306_v62, %v2703_v63  ;;  %v2727_v49 = vshll.u32 %v5799_v59, 16  ;;  %v2984_v9 = vld [vmem:[#allocation3 + $0x1c] sm:$0xf] }
 0x1df   : > { %v2717_v0 = vsel %vm4847_vm6, %v6307_v46, %v2716_v29  ;;  %v2527_v3 = vor.u32 %v2526_v5, %v2523_v14  ;;  %v2519_v53 = vsel %vm4861_vm7, %v2514_v22, %v6308_v52  ;;  %v2737_v13 = vshrl.u32 %v5807_v24, 16 }
 0x1e0   : > { %v4054_v27 = vcombine.low %v2704_v56, %v2717_v0  ;;  %v2541_v55 = vor.u32 %v2540_v50, %v2537_v2  ;;  %v2726_v43 = vrot.slane %v2724_v32, 7  ;;  %v4038_v35 = vcombine.low %v2505_v23, %v2519_v53  ;;  %v6310_v23 = vld [vmem:[#allocation42_spill] sm:$0xff]  ;;  %v2986_v0 = vld [vmem:[#allocation3 + $0x28] sm:$0xf] }
 0x1e1   : > { %v2528_v58 = vrot.slane %v2527_v3, 4  ;;  %v2740_v26 = vshll.u32 %v5807_v24, 16  ;;  %v4062_v39 = vcombine.low %v5751_v11, %v5756_v40  ;;  %v2750_v19 = vshrl.u32 %v5817_v8, 16  ;;  %v6312_v40 = vld [vmem:[#allocation39_spill] sm:$0xff]  ;;  %v6313_v3 = vld [vmem:[#allocation41_spill] sm:$0xff] }
 0x1e2   : > { %4335 = vmatmul.mubr.msk.bf16.vlgmr.msra.gmra.mxu0 %vm2246_vm15, %v4054_v27  ;;  %v2542_v15 = vrot.slane %v2541_v55, 4  ;;  %v2729_v36 = vor.u32 %v2727_v49, %v2726_v43  ;;  %4328 = vmatprep.mubr.msk.bf16.mxu1 %vm2246_vm15, %v4038_v35  ;;  %v2739_v28 = vrot.slane %v2737_v13, 7  ;;  %v2753_v16 = vshll.u32 %v5817_v8, 16  ;;  %v2988_v27 = vld [vmem:[#allocation3 + $0x34] sm:$0xf]  ;;  %v6314_v43 = vld [vmem:[#allocation43_spill] sm:$0xff] }
 0x1e3   : > { %v2533_v45 = vsel %vm4861_vm7, %v2528_v58, %v6309_v48  ;;  %4353 = vmatpush3.bf16.msra.mxu0 %v6310_v23  ;;  %v2763_v47 = vshrl.u32 %v5822_v25, 16  ;;  %v2752_v29 = vrot.slane %v2750_v19, 7  ;;  %v2766_v14 = vshll.u32 %v5822_v25, 16  ;;  %v2990_v48 = vld [vmem:[#allocation3 + $0x40] sm:$0xf] }
 0x1e4   : > { %v2547_v11 = vsel %vm4861_vm7, %v2542_v15, %v6311_v1  ;;  %v2730_v63 = vsel %vm4847_vm6, %v6312_v40, %v2729_v36  ;;  %4408 = vmatprep.subr.msk.bf16.mxu0 %vm2259_vm10, %v5540_v61  ;;  %v2742_v22 = vor.u32 %v2740_v26, %v2739_v28  ;;  %v2999_v50 = vshrl.u32 %v2982_v38, 16  ;;  %v6315_v26 = vld [vmem:[#allocation44_spill] sm:$0xff]  ;;  %v2992_v28 = vld [vmem:[#allocation3 + $0x4c] sm:$0xf] }
 0x1e5   : > { %v4039_v5 = vcombine.low %v2533_v45, %v2547_v11  ;;  %v2765_v2 = vrot.slane %v2763_v47, 7  ;;  %v2755_v32 = vor.u32 %v2753_v16, %v2752_v29  ;;  %v3002_v62 = vshll.u32 %v2982_v38, 16 }
 0x1e6   : > { %v3013_v56 = vshrl.u32 %v2984_v9, 16  ;;  %v3016_v46 = vshll.u32 %v2984_v9, 16  ;;  %v2743_v49 = vsel %vm4847_vm6, %v6313_v3, %v2742_v22  ;;  %v3001_v53 = vrot.slane %v2999_v50, 4  ;;  %v6316_v50 = vld [vmem:[#allocation45_spill] sm:$0xff] }
 0x1e7   : > { %4329 = vmatmul.mubr.msk.bf16.gmra.mxu1 %vm2246_vm15, %v4039_v5  ;;  %v2768_v52 = vor.u32 %v2766_v14, %v2765_v2  ;;  %v4064_v61 = vcombine.low %v5799_v59, %v5807_v24  ;;  %v4055_v55 = vcombine.low %v2730_v63, %v2743_v49  ;;  %v2756_v35 = vsel %vm4847_vm6, %v6314_v43, %v2755_v32  ;;  %v5863_v2 = vld [vmem:[#allocation3 + $0x1c] sm:$0xf] }
 0x1e8   : > { %4344 = vmatprep.mubr.msk.bf16.mxu1 %vm2246_vm15, %v4062_v39  ;;  %v3004_v58 = vrot.slane %v3002_v62, 5  ;;  %v3015_v13 = vrot.slane %v3013_v56, 4  ;;  %v3018_v36 = vrot.slane %v3016_v46, 5  ;;  %v3027_v19 = vshrl.u32 %v2986_v0, 16 }
 0x1e9   : > { %v2769_v15 = vsel %vm4847_vm6, %v6315_v26, %v2768_v52  ;;  %v3030_v38 = vshll.u32 %v2986_v0, 16  ;;  %4338 = vmatprep.mubr.msk.bf16.mxu0 %vm2246_vm15, %v4055_v55  ;;  %v3041_v45 = vshrl.u32 %v2988_v27, 16  ;;  %v3044_v39 = vshll.u32 %v2988_v27, 16  ;;  %v6318_v27 = vld [vmem:[#allocation47_spill] sm:$0xff] }
 0x1ea   : > { %v4056_v59 = vcombine.low %v2756_v35, %v2769_v15  ;;  %v3005_v24 = vor.u32 %v3004_v58, %v3001_v53  ;;  %v3019_v23 = vor.u32 %v3018_v36, %v3015_v13  ;;  %v3029_v16 = vrot.slane %v3027_v19, 4  ;;  %v2994_v58 = vld [vmem:[#allocation3 + $0x58] sm:$0xf]  ;;  %v2996_v15 = vld [vmem:[#allocation3 + $0x64] sm:$0xf] }
 0x1eb   : > { %v3032_v47 = vrot.slane %v3030_v38, 5  ;;  %v4065_v9 = vcombine.low %v5817_v8, %v5822_v25  ;;  %v3043_v11 = vrot.slane %v3041_v45, 4  ;;  %v3046_v40 = vrot.slane %v3044_v39, 5  ;;  %v5868_v8 = vld [vmem:[#allocation3 + $0x28] sm:$0xf]  ;;  %v6317_v25 = vld [vmem:[#allocation46_spill] sm:$0xff] }
 0x1ec   : > { %4339 = vmatmul.mubr.msk.bf16.gmra.mxu0 %vm2246_vm15, %v4056_v59  ;;  %v3006_v1 = vrot.slane %v3005_v24, 4  ;;  %v3055_v63 = vshrl.u32 %v2990_v48, 16  ;;  %v3020_v29 = vrot.slane %v3019_v23, 4  ;;  %v3058_v5 = vshll.u32 %v2990_v48, 16 }
 0x1ed   : > { %v3033_v14 = vor.u32 %v3032_v47, %v3029_v16  ;;  %v3069_v22 = vshrl.u32 %v2992_v28, 16  ;;  %v3047_v62 = vor.u32 %v3046_v40, %v3043_v11  ;;  %v3072_v46 = vshll.u32 %v2992_v28, 16 }
 0x1ee   : > { %v3011_v32 = vsel %vm4861_vm7, %v3006_v1, %v6316_v50  ;;  %v3057_v56 = vrot.slane %v3055_v63, 4  ;;  %v3025_v0 = vsel %vm4861_vm7, %v3020_v29, %v6317_v25  ;;  %v3060_v49 = vrot.slane %v3058_v5, 5  ;;  %v5892_v1 = vld [vmem:[#allocation3 + $0x34] sm:$0xf]  ;;  %v6322_v5 = vld [vmem:[#allocation52_spill] sm:$0xff] }
 0x1ef   : > { %4345 = vmatmul.mubr.msk.bf16.vlgmr.msra.gmra.mxu1 %vm2246_vm15, %v4063_v12  ;;  %v3034_v3 = vrot.slane %v3033_v14, 4  ;;  %v3071_v52 = vrot.slane %v3069_v22, 4  ;;  %v4071_v53 = vcombine.low %v3011_v32, %v3025_v0  ;;  %v3048_v55 = vrot.slane %v3047_v62, 4  ;;  %v5898_v14 = vld [vmem:[#allocation3 + $0x40] sm:$0xf]  ;;  %v6323_v32 = vld [vmem:[#allocation53_spill] sm:$0xff] }
 0x1f0   : > { %4363 = vmatpush3.bf16.msra.mxu1 %v6318_v27  ;;  %4348 = vmatprep.mubr.msk.bf16.mxu1 %vm2246_vm15, %v4064_v61  ;;  %v3074_v43 = vrot.slane %v3072_v46, 5  ;;  %v3235_v35 = vshrl.u32 %v5863_v2, 16  ;;  %v3061_v12 = vor.u32 %v3060_v49, %v3057_v56  ;;  %v3238_v13 = vshll.u32 %v5863_v2, 16  ;;  %v6320_v61 = vld [vmem:[#allocation49_spill] sm:$0xff]  ;;  %v6324_v25 = vld [vmem:[#allocation50_spill] sm:$0xff] }
 0x1f1   : > { %v3039_v51 = vsel %vm4861_vm7, %v3034_v3, %v6319_v37  ;;  %v3248_v26 = vshrl.u32 %v5868_v8, 16  ;;  %4409 = vmatprep.subr.msk.bf16.mxu1 %vm2259_vm10, %v5590_v33  ;;  %4354 = vmatprep.mubr.msk.bf16.mxu0 %vm2246_vm15, %v4071_v53  ;;  %v3053_v36 = vsel %vm4861_vm7, %v3048_v55, %v6320_v61  ;;  %v3251_v48 = vshll.u32 %v5868_v8, 16  ;;  %v6321_v33 = vld [vmem:[#allocation51_spill] sm:$0xff] }
 0x1f2   : > { %v3075_v19 = vor.u32 %v3074_v43, %v3071_v52  ;;  %v3237_v38 = vrot.slane %v3235_v35, 7  ;;  %v4072_v59 = vcombine.low %v3039_v51, %v3053_v36  ;;  %v3062_v24 = vrot.slane %v3061_v12, 4  ;;  %v5912_v52 = vld [vmem:[#allocation3 + $0x4c] sm:$0xf]  ;;  %v5915_v55 = vld [vmem:[#allocation3 + $0x58] sm:$0xf] }
 0x1f3   : > { %v3250_v45 = vrot.slane %v3248_v26, 7  ;;  %v3083_v39 = vshrl.u32 %v2994_v58, 16  ;;  %v3086_v16 = vshll.u32 %v2994_v58, 16  ;;  %v3097_v47 = vshrl.u32 %v2996_v15, 16 }
 0x1f4   : > { %v3076_v28 = vrot.slane %v3075_v19, 4  ;;  %v3240_v23 = vor.u32 %v3238_v13, %v3237_v38  ;;  %4355 = vmatmul.mubr.msk.bf16.vlgmr.msra.gmra.mxu0 %vm2246_vm15, %v4072_v59  ;;  %v3067_v11 = vsel %vm4861_vm7, %v3062_v24, %v6321_v33  ;;  %v3100_v29 = vshll.u32 %v2996_v15, 16 }
 0x1f5   : > { %v3253_v40 = vor.u32 %v3251_v48, %v3250_v45  ;;  %v3085_v63 = vrot.slane %v3083_v39, 4  ;;  %4373 = vmatpush3.bf16.msra.mxu0 %v6323_v32  ;;  %v3088_v62 = vrot.slane %v3086_v16, 5  ;;  %v3099_v56 = vrot.slane %v3097_v47, 4  ;;  %v3545_v39 = vld [vmem:[#allocation3 + $0x1c] sm:$0xf]  ;;  %v6325_v16 = vld [vmem:[#allocation54_spill] sm:$0xff] }
 0x1f6   : > { %v3081_v22 = vsel %vm4861_vm7, %v3076_v28, %v6322_v5  ;;  %v3241_v50 = vsel %vm4847_vm6, %v5581_v31, %v3240_v23  ;;  %v3102_v3 = vrot.slane %v3100_v29, 5  ;;  %v3261_v49 = vshrl.u32 %v5892_v1, 16  ;;  %v3547_v28 = vld [vmem:[#allocation3 + $0x28] sm:$0xf] }
 0x1f7   : > { %4349 = vmatmul.mubr.msk.bf16.gmra.mxu1 %vm2246_vm15, %v4065_v9  ;;  %v4073_v46 = vcombine.low %v3067_v11, %v3081_v22  ;;  %v3254_v0 = vsel %vm4847_vm6, %v6324_v25, %v3253_v40  ;;  %v3089_v27 = vor.u32 %v3088_v62, %v3085_v63  ;;  %v3274_v31 = vshrl.u32 %v5898_v14, 16  ;;  %v3549_v22 = vld [vmem:[#allocation3 + $0x34] sm:$0xf] }
 0x1f8   : > { %v4088_v53 = vcombine.low %v3241_v50, %v3254_v0  ;;  %v5919_v43 = vrot.slane %v3627_v7, 5  ;;  %v3103_v9 = vor.u32 %v3102_v3, %v3099_v56  ;;  %v3263_v35 = vrot.slane %v3261_v49, 7  ;;  %v3551_v56 = vld [vmem:[#allocation3 + $0x40] sm:$0xf]  ;;  %v3553_v3 = vld [vmem:[#allocation3 + $0x4c] sm:$0xf] }
 0x1f9   : > { %4358 = vmatprep.mubr.msk.bf16.mxu0 %vm2246_vm15, %v4073_v46  ;;  %v3264_v58 = vshll.u32 %v5892_v1, 16  ;;  %v3277_v37 = vshll.u32 %v5898_v14, 16  ;;  %v3090_v51 = vrot.slane %v3089_v27, 4  ;;  %v3276_v12 = vrot.slane %v3274_v31, 7  ;;  %v6326_v49 = vld [vmem:[#allocation57_spill] sm:$0xff] }
 0x1fa   : > { %4364 = vmatprep.mubr.msk.bf16.mxu1 %vm2246_vm15, %v4088_v53  ;;  %v4097_v13 = vcombine.low %v5863_v2, %v5868_v8  ;;  %v3287_v26 = vshrl.u32 %v5912_v52, 16  ;;  %v3104_v7 = vrot.slane %v3103_v9, 4  ;;  %v3290_v61 = vshll.u32 %v5912_v52, 16 }
 0x1fb   : > { %v3266_v15 = vor.u32 %v3264_v58, %v3263_v35  ;;  %v3300_v36 = vshrl.u32 %v5915_v55, 16  ;;  %v3095_v19 = vsel %vm4861_vm7, %v3090_v51, %v5594_v42  ;;  %v3279_v38 = vor.u32 %v3277_v37, %v3276_v12  ;;  %v3555_v51 = vld [vmem:[#allocation3 + $0x58] sm:$0xf] }
 0x1fc   : > { %v3289_v48 = vrot.slane %v3287_v26, 7  ;;  %v3303_v59 = vshll.u32 %v5915_v55, 16  ;;  %v3109_v2 = vsel %vm4861_vm7, %v3104_v7, %v5596_v34  ;;  %v4098_v24 = vcombine.low %v5892_v1, %v5898_v14 }
 0x1fd   : > { %v3302_v8 = vrot.slane %v3300_v36, 7  ;;  %v3313_v45 = vshrl.u32 %v5928_v60, 16  ;;  %v4074_v23 = vcombine.low %v3095_v19, %v3109_v2  ;;  %v3267_v42 = vsel %vm4847_vm6, %v6325_v16, %v3266_v15  ;;  %v3558_v16 = vld [vmem:[#allocation3 + $0x68] sm:$0x1] }
 0x1fe   : > { %v3280_v47 = vsel %vm4847_vm6, %v5609_v10, %v3279_v38  ;;  %v3292_v33 = vor.u32 %v3290_v61, %v3289_v48  ;;  %v3316_v63 = vshll.u32 %v5928_v60, 16  ;;  %v3562_v29 = vshrl.u32 %v3545_v39, 16  ;;  %v3557_v38 = vld [vmem:[#allocation3 + $0x64] sm:$0xf] }
 0x1ff   : > { %v4089_v11 = vcombine.low %v3267_v42, %v3280_v47  ;;  %v3305_v34 = vor.u32 %v3303_v59, %v3302_v8  ;;  %v3315_v40 = vrot.slane %v3313_v45, 7  ;;  %4359 = vmatmul.mubr.msk.bf16.gmra.mxu0 %vm2246_vm15, %v4074_v23  ;;  %v3565_v14 = vshll.u32 %v3545_v39, 16  ;;  %v6330_v8 = vld [vmem:[#allocation58_spill] sm:$0xff] }
 0x200   : > { %v3293_v1 = vsel %vm4847_vm6, %v5620_v20, %v3292_v33  ;;  %v3576_v5 = vshrl.u32 %v3547_v28, 16  ;;  %4374 = vmatprep.mubr.msk.bf16.mxu0 %vm2246_vm15, %v4097_v13  ;;  %v4099_v32 = vcombine.low %v5912_v52, %v5915_v55  ;;  %v3579_v62 = vshll.u32 %v3547_v28, 16  ;;  %v6327_v52 = vld [vmem:[#allocation55_spill] sm:$0xff]  ;;  %v6328_v55 = vld [vmem:[#allocation56_spill] sm:$0xff]  ;;  %v3560_v42 = vld [vmem:[#allocation3 + $0x74] sm:$0x1] }
 0x201   : > { %4365 = vmatmul.mubr.msk.bf16.vlgmr.msra.gmra.mxu1 %vm2246_vm15, %v4089_v11  ;;  %v3306_v10 = vsel %vm4847_vm6, %v5598_v54, %v3305_v34  ;;  %v3318_v50 = vor.u32 %v3316_v63, %v3315_v40  ;;  %v3564_v46 = vrot.slane %v3562_v29, 4  ;;  %v3567_v25 = vrot.slane %v3565_v14, 5 }
 0x202   : > { %4383 = vmatpush3.bf16.msra.mxu1 %v5613_v41  ;;  %v4090_v20 = vcombine.low %v3293_v1, %v3306_v10  ;;  %v3578_v0 = vrot.slane %v3576_v5, 4  ;;  %v3581_v27 = vrot.slane %v3579_v62, 5  ;;  %v3590_v31 = vshrl.u32 %v3549_v22, 16 }
 0x203   : > { %v3319_v53 = vsel %vm4847_vm6, %v6326_v49, %v3318_v50  ;;  %v3593_v54 = vshll.u32 %v3549_v22, 16  ;;  %v6329_v9 = vsel %vm4847_vm6, %v6327_v52, %v6328_v55  ;;  %v3568_v35 = vor.u32 %v3567_v25, %v3564_v46 }
 0x204   : > { %4368 = vmatprep.mubr.msk.bf16.mxu1 %vm2246_vm15, %v4090_v20  ;;  %v4091_v41 = vcombine.low %v3319_v53, %v6329_v9  ;;  %v3604_v58 = vshrl.u32 %v3551_v56, 16  ;;  %v3607_v37 = vshll.u32 %v3551_v56, 16  ;;  %v3582_v12 = vor.u32 %v3581_v27, %v3578_v0  ;;  %v4477_v56 = vld [vmem:[#allocation3 + $0x70] sm:$0xf] }
 0x205   : > { %v3592_v13 = vrot.slane %v3590_v31, 4  ;;  %v3595_v26 = vrot.slane %v3593_v54, 5  ;;  %v3618_v7 = vshrl.u32 %v3553_v3, 16  ;;  %v3569_v15 = vrot.slane %v3568_v35, 4 }
 0x206   : > { %v3606_v61 = vrot.slane %v3604_v58, 4  ;;  %v3609_v36 = vrot.slane %v3607_v37, 5  ;;  %v3621_v19 = vshll.u32 %v3553_v3, 16  ;;  %v3583_v48 = vrot.slane %v3582_v12, 4 }
 0x207   : > { %v3596_v59 = vor.u32 %v3595_v26, %v3592_v13  ;;  %v3620_v6 = vrot.slane %v3618_v7, 4  ;;  %v3632_v2 = vshrl.u32 %v3555_v51, 16  ;;  %4375 = vmatmul.mubr.msk.bf16.vlgmr.msra.gmra.mxu0 %vm2246_vm15, %v4098_v24  ;;  %v3574_v45 = vsel %vm4861_vm7, %v3569_v15, %v6330_v8 }
 0x208   : > { %v3610_v39 = vor.u32 %v3609_v36, %v3606_v61  ;;  %v3623_v28 = vrot.slane %v3621_v19, 5  ;;  %v3635_v23 = vshll.u32 %v3555_v51, 16  ;;  %4378 = vmatprep.mubr.msk.bf16.mxu0 %vm2246_vm15, %v4099_v32  ;;  %v3588_v47 = vsel %vm4861_vm7, %v3583_v48, %v5685_v4 }
 0x209   : > { %4369 = vmatmul.mubr.msk.bf16.gmra.mxu1 %vm2246_vm15, %v4091_v41  ;;  %v3597_v33 = vrot.slane %v3596_v59, 4  ;;  %v3634_v11 = vrot.slane %v3632_v2, 4  ;;  %v3646_v24 = vshrl.u32 %v3557_v38, 16  ;;  %v4106_v34 = vcombine.low %v3574_v45, %v3588_v47 }
 0x20a   : > { %v3611_v40 = vrot.slane %v3610_v39, 4  ;;  %v3624_v63 = vor.u32 %v3623_v28, %v3620_v6  ;;  %v3637_v1 = vrot.slane %v3635_v23, 5  ;;  %v3649_v14 = vshll.u32 %v3557_v38, 16 }
 0x20b   : > { %v3648_v29 = vrot.slane %v3646_v24, 4  ;;  %v3655_v5 = vshll.u32 %v3558_v16, 16  ;;  %v3669_v22 = vshll.u32 %v3560_v42, 16  ;;  %4384 = vmatprep.mubr.msk.bf16.mxu1 %vm2246_vm15, %v4106_v34  ;;  %v3666_v4 = vor.u32 %v5703_v30, %v5701_v18 }
 0x20c   : > { %v3616_v10 = vsel %vm4861_vm7, %v3611_v40, %v5707_v44  ;;  %v3625_v50 = vrot.slane %v3624_v63, 4  ;;  %v3638_v32 = vor.u32 %v3637_v1, %v3634_v11  ;;  %v3651_v62 = vrot.slane %v3649_v14, 5 }
 0x20d   : > { %v4100_v20 = vcombine.low %v5928_v60, %v4477_v56  ;;  %v3602_v46 = vsel %vm4861_vm7, %v3597_v33, %v5690_v21  ;;  %v3657_v30 = vrot.slane %v3655_v5, 5  ;;  %v3667_v49 = vrot.slane %v3666_v4, 4 }
 0x20e   : > { %v3630_v25 = vsel %vm4861_vm7, %v3625_v50, %v5919_v43  ;;  %v3639_v0 = vrot.slane %v3638_v32, 4  ;;  %v4107_v3 = vcombine.low %v3602_v46, %v3616_v10  ;;  %v3652_v44 = vor.u32 %v3651_v62, %v3648_v29 }
 0x20f   : > { %4379 = vmatmul.mubr.msk.bf16.gmra.mxu0 %vm2246_vm15, %v4100_v20  ;;  %v3671_v60 = vrot.slane %v3669_v22, 5 }
 0x210   : > { %v3644_v18 = vsel %vm4861_vm7, %v3639_v0, %v5697_v57  ;;  %v3653_v21 = vrot.slane %v3652_v44, 4 }
 0x211   : > { %4385 = vmatmul.mubr.msk.bf16.vlgmr.msra.gmra.mxu1 %vm2246_vm15, %v4107_v3  ;;  %v4108_v53 = vcombine.low %v3630_v25, %v3644_v18  ;;  %v3672_v27 = vsel %vm4861_vm7, %v3667_v49, %v3671_v60 }
 0x212   : > { %v3658_v43 = vsel %vm4861_vm7, %v3653_v21, %v3657_v30 }
 0x213   : > { %4388 = vmatprep.mubr.msk.bf16.mxu1 %vm2246_vm15, %v4108_v53  ;;  %v4109_v31 = vcombine.low %v3658_v43, %v3672_v27 }
 0x219   : > { %4389 = vmatmul.mubr.msk.bf16.gmra.mxu1 %vm2246_vm15, %v4109_v31 }
 0x289   : > { %v4306_v54 = vpop.f32.mrf.mxu1 }
 0x28b   : > { %v2297_v57 = vpop.f32.mrf.mxu1 }
 0x28d   : > { %v4307_v52 = vpop.f32.mrf.mxu1 }
 0x28f   : > { %v2300_v55 = vpop.f32.mrf.mxu1 }
 0x290   : > { %v4316_v9 = vpop.f32.mrf.mxu0 }
 0x291   : > { %v4310_v41 = vpop.f32.mrf.mxu1  ;;  %v2398_v56 = vadd.f32 %v4316_v9, %v4306_v54 }
 0x292   : > { %v2389_v35 = vpop.f32.mrf.mxu0 }
 0x293   : > { %v6003_v58 = vpop.f32.mrf.mxu1  ;;  %v2390_v25 = vadd.f32 %v2389_v35, %v2297_v57 }
 0x294   : > { %v4317_v37 = vpop.f32.mrf.mxu0 }
 0x295   : > { %v6005_v51 = vpop.f32.mrf.mxu1  ;;  %v2401_v18 = vadd.f32 %v4317_v37, %v4307_v52 }
 0x296   : > { %v2392_v12 = vpop.f32.mrf.mxu0 }
 0x297   : > { %v6007_v13 = vpop.f32.mrf.mxu1 }
 0x298   : > { %v4320_v17 = vpop.f32.mrf.mxu0 }
 0x29a   : > { %v4326_v26 = vpop.f32.mrf.mxu1  ;;  %v2405_v7 = vpop.f32.mrf.mxu0 }
 0x29b   : > { %v2644_v0 = vadd.f32 %v4326_v26, %v2398_v56  ;;  %v2406_v35 = vadd.f32 %v2405_v7, %v6003_v58 }
 0x29c   : > { %v2611_v15 = vpop.f32.mrf.mxu1  ;;  %v6009_v61 = vpop.f32.mrf.mxu0 }
 0x29d   : > { %v2642_v30 = vadd.f32 %v2611_v15, %v2390_v25 }
 0x29e   : > { %v4327_v36 = vpop.f32.mrf.mxu1  ;;  %v6011_v19 = vpop.f32.mrf.mxu0 }
 0x29f   : > { %v2645_v21 = vadd.f32 %v4327_v36, %v2401_v18 }
 0x2a0   : > { %v2614_v48 = vpop.f32.mrf.mxu1 }
 0x2a2   : > { %v4336_v38 = vpop.f32.mrf.mxu0 }
 0x2a3   : > { %v2866_v49 = vadd.f32 %v4336_v38, %v2644_v0 }
 0x2a4   : > { %v2833_v59 = vpop.f32.mrf.mxu0 }
 0x2a5   : > { %v2864_v43 = vadd.f32 %v2833_v59, %v2642_v30  ;;  %v2417_v59 = vadd.f32 %v6009_v61, %v6005_v51  ;;  %v6043_v61 = vld [vmem:[%s6137_s4] ss:$0 sm:$0xff] }
 0x2a6   : > { %v4337_v6 = vpop.f32.mrf.mxu0 }
 0x2a7   : > { %v4330_v2 = vpop.f32.mrf.mxu1  ;;  %v2867_v9 = vadd.f32 %v4337_v6, %v2645_v21  ;;  %v2409_v6 = vadd.f32 %v6011_v19, %v6007_v13 }
 0x2a8   : > { %v2836_v8 = vpop.f32.mrf.mxu0 }
 0x2a9   : > { %v2627_v45 = vpop.f32.mrf.mxu1 }
 0x2ab   : > { %v6013_v39 = vpop.f32.mrf.mxu1 }
 0x2ac   : > { %v4340_v28 = vpop.f32.mrf.mxu0 }
 0x2ad   : > { %v6015_v23 = vpop.f32.mrf.mxu1 }
 0x2ae   : > { %v2849_v16 = vpop.f32.mrf.mxu0 }
 0x2af   : > { %v4346_v42 = vpop.f32.mrf.mxu1 }
 0x2b0   : > { %v6017_v47 = vpop.f32.mrf.mxu0  ;;  %v2976_v27 = vadd.f32 %v4346_v42, %v2866_v49  ;;  %v2649_v42 = vadd.f32 %v6013_v39, %v2417_v59 }
 0x2b1   : > { %v2943_v33 = vpop.f32.mrf.mxu1 }
 0x2b2   : > { %v6019_v11 = vpop.f32.mrf.mxu0 }
 0x2b3   : > { %v4347_v24 = vpop.f32.mrf.mxu1 }
 0x2b4   : > { %v4356_v40 = vpop.f32.mrf.mxu0  ;;  %v2977_v37 = vadd.f32 %v4347_v24, %v2867_v9 }
 0x2b5   : > { %v2946_v34 = vpop.f32.mrf.mxu1 }
 0x2b6   : > { %v3173_v1 = vpop.f32.mrf.mxu0 }
 0x2b7   : > { %v4350_v63 = vpop.f32.mrf.mxu1 }
 0x2b8   : > { %v4357_v14 = vpop.f32.mrf.mxu0 }
 0x2b9   : > { %v2959_v29 = vpop.f32.mrf.mxu1  ;;  %v3207_v58 = vadd.f32 %v4357_v14, %v2977_v37 }
 0x2ba   : > { %v3176_v22 = vpop.f32.mrf.mxu0 }
 0x2bb   : > { %v6021_v5 = vpop.f32.mrf.mxu1 }
 0x2bc   : > { %6331 = vst [vmem:[#allocation7_spill] sm:$0xff] %v6021_v5  ;;  %v3206_v5 = vadd.f32 %v4356_v40, %v2976_v27 }
 0x2bd   : > { %v6023_v10 = vpop.f32.mrf.mxu1 }
 0x2be   : > { %6332 = vst [vmem:[#allocation8_spill] sm:$0xff] %v6023_v10  ;;  %v2393_v10 = vadd.f32 %v2392_v12, %v2300_v55  ;;  %v2646_v55 = vadd.f32 %v2627_v45, %v2406_v35 }
 0x2bf   : > { %v4360_v50 = vpop.f32.mrf.mxu0 }
 0x2c0   : > { %v2643_v26 = vadd.f32 %v2614_v48, %v2393_v10 }
 0x2c1   : > { %v4366_v32 = vpop.f32.mrf.mxu1  ;;  %v6025_v4 = vpop.f32.mrf.mxu0 }
 0x2c2   : > { %6333 = vst [vmem:[#allocation20_spill] sm:$0xff] %v6025_v4  ;;  %v2414_v4 = vadd.f32 %v4320_v17, %v4310_v41  ;;  %v3429_v38 = vadd.f32 %v4366_v32, %v3206_v5  ;;  %v2865_v41 = vadd.f32 %v2836_v8, %v2643_v26  ;;  %v2647_v8 = vadd.f32 %v6015_v23, %v2409_v6 }
 0x2c3   : > { %v3396_v62 = vpop.f32.mrf.mxu1  ;;  %v6027_v20 = vpop.f32.mrf.mxu0 }
 0x2c4   : > { %6334 = vst [vmem:[#allocation9_spill] sm:$0xff] %v6027_v20  ;;  %v2974_v20 = vadd.f32 %v2943_v33, %v2864_v43  ;;  %v2648_v56 = vadd.f32 %v4330_v2, %v2414_v4  ;;  %v2868_v33 = vadd.f32 %v2849_v16, %v2646_v55  ;;  %v2975_v24 = vadd.f32 %v2946_v34, %v2865_v41  ;;  %v6335_v4 = vld [vmem:[#allocation7_spill] sm:$0xff] }
 0x2c5   : > { %v4367_v46 = vpop.f32.mrf.mxu1  ;;  %v6029_v3 = vpop.f32.mrf.mxu0  ;;  %v2869_v16 = vadd.f32 %v6019_v11, %v2647_v8 }
 0x2c6   : > { %v3204_v15 = vadd.f32 %v3173_v1, %v2974_v20  ;;  %v2870_v12 = vadd.f32 %v4340_v28, %v2648_v56  ;;  %v3430_v13 = vadd.f32 %v4367_v46, %v3207_v58  ;;  %v2871_v28 = vadd.f32 %v6017_v47, %v2649_v42 }
 0x2c7   : > { %v3399_v44 = vpop.f32.mrf.mxu1  ;;  %v4376_v60 = vpop.f32.mrf.mxu0  ;;  %v2978_v1 = vadd.f32 %v2959_v29, %v2868_v33  ;;  %v3205_v14 = vadd.f32 %v3176_v22, %v2975_v24 }
 0x2c8   : > { %v3427_v7 = vadd.f32 %v3396_v62, %v3204_v15  ;;  %v3539_v48 = vadd.f32 %v4376_v60, %v3429_v38  ;;  %v2980_v40 = vadd.f32 %v4350_v63, %v2870_v12  ;;  %v2981_v23 = vadd.f32 %v6335_v4, %v2871_v28 }
 0x2c9   : > { %v4370_v53 = vpop.f32.mrf.mxu1  ;;  %v3506_v31 = vpop.f32.mrf.mxu0  ;;  %v6336_v62 = vld [vmem:[#allocation20_spill] sm:$0xff]  ;;  %v3428_v46 = vadd.f32 %v3399_v44, %v3205_v14 }
 0x2ca   : > { %v3537_v19 = vadd.f32 %v3506_v31, %v3427_v7  ;;  %v3210_v5 = vadd.f32 %v4360_v50, %v2980_v40  ;;  %v3208_v20 = vadd.f32 %v6336_v62, %v2978_v1  ;;  %v6338_v44 = vld [vmem:[#allocation8_spill] sm:$0xff] }
 0x2cb   : > { %v3412_v54 = vpop.f32.mrf.mxu1  ;;  %v4377_v57 = vpop.f32.mrf.mxu0  ;;  %v6337_v0 = vld [vmem:[#allocation9_spill] sm:$0xff] }
 0x2cc   : > { %v3540_v34 = vadd.f32 %v4377_v57, %v3430_v13  ;;  %v3433_v25 = vadd.f32 %v4370_v53, %v3210_v5  ;;  %v3211_v18 = vadd.f32 %v6337_v0, %v2981_v23  ;;  %v3431_v11 = vadd.f32 %v3412_v54, %v3208_v20 }
 0x2cd   : > { %v4371_v52 = vpop.f32.mrf.mxu1  ;;  %v3509_v36 = vpop.f32.mrf.mxu0  ;;  %v2979_v53 = vadd.f32 %v6338_v44, %v2869_v16 }
 0x2ce   : > { %v3538_v30 = vadd.f32 %v3509_v36, %v3428_v46  ;;  %v3434_v9 = vadd.f32 %v4371_v52, %v3211_v18 }
 0x2cf   : > { %v6034_v17 = vpop.f32.mrf.mxu1  ;;  %v4380_v2 = vpop.f32.mrf.mxu0  ;;  %v3209_v15 = vadd.f32 %v6029_v3, %v2979_v53 }
 0x2d0   : > { %v3543_v49 = vadd.f32 %v4380_v2, %v3433_v25 }
 0x2d1   : > { %v4386_v51 = vpop.f32.mrf.mxu1  ;;  %v3522_v10 = vpop.f32.mrf.mxu0  ;;  %v3432_v6 = vadd.f32 %v6034_v17, %v3209_v15 }
 0x2d2   : > { %v3769_v45 = vadd.f32 %v4386_v51, %v3539_v48  ;;  %v3541_v57 = vadd.f32 %v3522_v10, %v3431_v11 }
 0x2d3   : > { %v3736_v39 = vpop.f32.mrf.mxu1  ;;  %v4381_v27 = vpop.f32.mrf.mxu0 }
 0x2d4   : > { %v3784_v63 = vadd.f32 %v6043_v61, %v3769_v45  ;;  %v3767_v32 = vadd.f32 %v3736_v39, %v3537_v19  ;;  %v3544_v36 = vadd.f32 %v4381_v27, %v3434_v9 }
 0x2d5   : > { %v4387_v47 = vpop.f32.mrf.mxu1  ;;  %v3525_v55 = vpop.f32.mrf.mxu0 }
 0x2d6   : > { %vm3792_vm4 = vcmp.ge.f32.partialorder %v3784_v63, 0.0  ;;  %v3800_v29 = vmul.f32 0.2, %v3784_v63  ;;  %v3782_v22 = vadd.f32 %v6043_v61, %v3767_v32  ;;  %v3770_v50 = vadd.f32 %v4387_v47, %v3540_v34 }
 0x2d7   : > { %v3739_v60 = vpop.f32.mrf.mxu1  ;;  %v3542_v42 = vadd.f32 %v3525_v55, %v3432_v6 }
 0x2d8   : > { %v3808_v21 = vsel %vm3792_vm4, %v3784_v63, %v3800_v29  ;;  %vm3790_vm5 = vcmp.ge.f32.partialorder %v3782_v22, 0.0  ;;  %v3798_v43 = vmul.f32 0.2, %v3782_v22  ;;  %v3785_v31 = vadd.f32 %v6043_v61, %v3770_v50 }
 0x2d9   : > { %3816 = vst.msk [vmem:[%s6057_s30 + $0x10] sm:$0xff] %vm2246_vm15, %v3808_v21  ;;  %v3768_v54 = vadd.f32 %v3739_v60, %v3538_v30  ;;  %v4390_v35 = vpop.f32.mrf.mxu1 }
 0x2da   : > { %v3806_v26 = vsel %vm3790_vm5, %v3782_v22, %v3798_v43  ;;  %vm3793_vm6 = vcmp.ge.f32.partialorder %v3785_v31, 0.0  ;;  %v3801_v56 = vmul.f32 0.2, %v3785_v31  ;;  %v3773_v37 = vadd.f32 %v4390_v35, %v3543_v49 }
 0x2db   : > { %3814 = vst.msk [vmem:[%s6057_s30] sm:$0xff] %vm2246_vm15, %v3806_v26  ;;  %v3783_v52 = vadd.f32 %v6043_v61, %v3768_v54  ;;  %v3752_v38 = vpop.f32.mrf.mxu1 }
 0x2dc   : > { %v3809_v59 = vsel %vm3793_vm6, %v3785_v31, %v3801_v56  ;;  %v3788_v41 = vadd.f32 %v6043_v61, %v3773_v37  ;;  %v3771_v12 = vadd.f32 %v3752_v38, %v3541_v57 }
 0x2dd   : > { %3817 = vst.msk [vmem:[%s6057_s30 + $0x18] sm:$0xff] %vm2246_vm15, %v3809_v59  ;;  %vm3791_vm7 = vcmp.ge.f32.partialorder %v3783_v52, 0.0  ;;  %v3799_v58 = vmul.f32 0.2, %v3783_v52  ;;  %v4391_v3 = vpop.f32.mrf.mxu1 }
 0x2de   : > { %vm3796_vm8 = vcmp.ge.f32.partialorder %v3788_v41, 0.0  ;;  %v3804_v7 = vmul.f32 0.2, %v3788_v41  ;;  %v3786_v48 = vadd.f32 %v6043_v61, %v3771_v12  ;;  %v3774_v2 = vadd.f32 %v4391_v3, %v3544_v36 }
 0x2df   : > { %v3807_v33 = vsel %vm3791_vm7, %v3783_v52, %v3799_v58  ;;  %v3755_v24 = vpop.f32.mrf.mxu1 }
 0x2e0   : > { %3815 = vst.msk [vmem:[%s6057_s30 + $0x8] sm:$0xff] %vm2246_vm15, %v3807_v33  ;;  %v3812_v17 = vsel %vm3796_vm8, %v3788_v41, %v3804_v7  ;;  %vm3794_vm9 = vcmp.ge.f32.partialorder %v3786_v48, 0.0  ;;  %v3802_v40 = vmul.f32 0.2, %v3786_v48  ;;  %v3789_v51 = vadd.f32 %v6043_v61, %v3774_v2 }
 0x2e1   : > { %3820 = vst.msk [vmem:[%s6057_s30 + $0x30] sm:$0xff] %vm2246_vm15, %v3812_v17  ;;  %v3772_v8 = vadd.f32 %v3755_v24, %v3542_v42 }
 0x2e2   : > { %v3810_v13 = vsel %vm3794_vm9, %v3786_v48, %v3802_v40  ;;  %vm3797_vm10 = vcmp.ge.f32.partialorder %v3789_v51, 0.0  ;;  %v3805_v19 = vmul.f32 0.2, %v3789_v51 }
 0x2e3   : > { %3818 = vst.msk [vmem:[%s6057_s30 + $0x20] sm:$0xff] %vm2246_vm15, %v3810_v13  ;;  %v3787_v45 = vadd.f32 %v6043_v61, %v3772_v8 }
 0x2e4   : > { %v3813_v28 = vsel %vm3797_vm10, %v3789_v51, %v3805_v19 }
 0x2e5   : > { %3821 = vst.msk [vmem:[%s6057_s30 + $0x38] sm:$0xff] %vm2246_vm15, %v3813_v28  ;;  %vm3795_vm11 = vcmp.ge.f32.partialorder %v3787_v45, 0.0  ;;  %v3803_v1 = vmul.f32 0.2, %v3787_v45 }
 0x2e7   : > { %v3811_v14 = vsel %vm3795_vm11, %v3787_v45, %v3803_v1 }
 0x2e8   : > { %3819 = vst.msk [vmem:[%s6057_s30 + $0x28] sm:$0xff] %vm2246_vm15, %v3811_v14 }
 0x2e9   : > { %4491 = shalt.err (!%p4488_p3)
}
 0x2ea   : > { %s4492_s15 = scalar_lea.hbm %s6085_s10, 1024  ;;  %s4496_s23 = scalar_lea.hbm %s6138_s5, 2048 }
 0x2eb   : > { %p4493_p4 = scmp.ne.s32.totalorder %s6085_s10, %s4492_s15  ;;  %p4497_p9 = scmp.lt.s32.totalorder %s6085_s10, %s6138_s5 }
 0x2ec   : > { %p4498_p10 = scmp.lt.s32.totalorder %s4496_s23, %s4492_s15 }
 0x2ed   : > { %p4494_p7 = pnand %p4493_p4, %p4613_p5 }
 0x2ee   : > { %p4499_p11 = por %p4498_p10, %p4497_p9 }
 0x2ef   : > { %p4495_p8 = pneg %p4494_p7 }
 0x2f1   : > { %p4500_p12 = pnand %p4499_p11, %p4495_p8 }
 0x2f3   : > { %4503 = shalt.err (!%p4500_p12)
}
 0x2f4   : > { %s4543_s30 = smov 128   ;;  %s4544_s6 = smov 8  }
 0x2f5   : > { %4410 = dma.vmem_to_hbm [thread:$0]  (%p4613_p5), %s6087_s7, 1024, %s6085_s10, %s6093_s22, %s4543_s30, %s4543_s30, %s4544_s6  }
 0x2f6 PF: > { %p4416_p13 = scmp.ge.s32.totalorder %s4538_s21, 2  ;;  %s3851_s8 = sand.u32 1, %s4526_s18  }
 0x2f7   : > { %s3852_s9 = scalar_lea.sflag [#allocation5], %s3851_s8 }
 0x2f8   : > { %p4413_p0 = pnand %p4416_p13, %p4617_p6 }
 0x2fa   : > { %p4414_p1 = pneg %p4413_p0 }
 0x2fc   : > { %4521 = dma.done.wait (%p4414_p1), %s3852_s9, 1024  }
 0x2fd   : > { %4523 = vsyncadd (%p4414_p1), %s3852_s9, 4294966272  ;;  %p15_p2 = scmp.ge.s32.totalorder %s4600_s24, 4   ;;  %s6339_s18 = smov %s4530_s19 }
 0x2fe   : > { %s6340_s19 = smov %s4534_s20  ;;  %s6341_s20 = smov %s4611_s27 }
 0x2ff   : > { %s6342_s21 = smov %s4600_s24  ;;  %17 = sbr.rel (!%p15_p2) target bundleno = 3 (0x3), region = 97 }
 0x304   :  { %3857 = vsyncpa [#allocation5], 1 }
 0x305   :  { %3859 = vsyncpa [#allocation5 + $0x1], 1 }

</bundles_post_ra>
